<compile_context>
chip_gen: v6e
topology: v6e:2x2x1
jax: 0.10.0
libtpu: 0.0.40
codegen_flags: <defaults>
</compile_context>

<pallas_src>
import functools

import jax
import jax.numpy as jnp
from jax.experimental import pallas as pl
from jax.experimental.pallas import tpu as pltpu


def _round_up(x, m):
    return (x + m - 1) // m * m


def _cdiv(a, b):
    return (a + b - 1) // b


# ---------------------------------------------------------------------------
# Fused batched matmul kernel:
#   out[g] = act_out( act_in(A[g]) @ B[g] + bias )
#   stats  = per-(g, i-block) per-channel [sum, sum_sq] of the raw accumulator
# ---------------------------------------------------------------------------
def _mm_kernel(*refs, act_in, act_out, has_bias):
    if has_bias:
        a_ref, b_ref, bias_ref, o_ref, stats_ref, acc_ref = refs
    else:
        a_ref, b_ref, o_ref, stats_ref, acc_ref = refs
        bias_ref = None

    k = pl.program_id(3)

    @pl.when(k == 0)
    def _():
        acc_ref[...] = jnp.zeros_like(acc_ref)

    a = a_ref[0]                                   # (tm, tk) bf16
    if act_in == "lrelu":
        a = jnp.where(a >= 0, a, a * 0.2)
    elif act_in == "relu":
        a = jnp.maximum(a, 0)
    acc_ref[...] += jnp.dot(a, b_ref[0], preferred_element_type=jnp.float32)

    @pl.when(k == pl.num_programs(3) - 1)
    def _():
        acc = acc_ref[...]
        # partial BatchNorm statistics of the raw (pre-epilogue) conv output
        s = jnp.concatenate(
            [jnp.sum(acc, axis=0, keepdims=True),
             jnp.sum(acc * acc, axis=0, keepdims=True)], axis=0)   # (2, tn)
        stats_ref[...] = s.reshape(stats_ref.shape)
        y = acc
        if has_bias:
            y = y + bias_ref[...]                   # (1, tn) broadcast
        if act_out == "tanh":
            y = jnp.tanh(y)
        o_ref[0] = y.astype(o_ref.dtype)


def fused_matmul(a, b, bias=None, act_in="none", act_out="none",
                 out_dtype=jnp.bfloat16):
    """Batched matmul (G,M,K)@(G,K,N) with bf16 operands / f32 accumulation,
    fused pre-activation on A, fused bias/activation epilogue, and fused
    per-channel [sum, sum_sq] statistics of the raw accumulator.

    Returns (out[G,M,N] in out_dtype, stats[2,N] f32)."""
    G, M, K = a.shape
    _, _, N = b.shape

    tm = min(512, _round_up(M, 128))
    tn = min(512, _round_up(N, 128))
    tk = min(512, _round_up(K, 128))
    # v7x has 2 TensorCores: keep >=2 parallel blocks when the data allows it.
    while tm > 128 and G * _cdiv(M, tm) * _cdiv(N, tn) < 2:
        tm //= 2

    Mp, Kp, Np = _round_up(M, tm), _round_up(K, tk), _round_up(N, tn)
    gm, gn, gk = Mp // tm, Np // tn, Kp // tk

    ap = jnp.pad(a.astype(jnp.bfloat16), ((0, 0), (0, Mp - M), (0, Kp - K)))
    bp = jnp.pad(b.astype(jnp.bfloat16), ((0, 0), (0, Kp - K), (0, Np - N)))

    inputs = [ap, bp]
    in_specs = [
        pl.BlockSpec((1, tm, tk), lambda g, i, j, k: (g, i, k)),
        pl.BlockSpec((1, tk, tn), lambda g, i, j, k: (g, k, j)),
    ]
    has_bias = bias is not None
    if has_bias:
        biasp = jnp.pad(bias.astype(jnp.float32).reshape(1, -1),
                        ((0, 0), (0, Np - N)))
        inputs.append(biasp)
        in_specs.append(pl.BlockSpec((1, tn), lambda g, i, j, k: (0, j)))

    kernel = functools.partial(_mm_kernel, act_in=act_in, act_out=act_out,
                               has_bias=has_bias)

    out, stats = pl.pallas_call(
        kernel,
        out_shape=(jax.ShapeDtypeStruct((G, Mp, Np), out_dtype),
                   jax.ShapeDtypeStruct((G * gm, 2, Np), jnp.float32)),
        grid_spec=pltpu.PrefetchScalarGridSpec(
            num_scalar_prefetch=0,
            grid=(G, gm, gn, gk),
            in_specs=in_specs,
            out_specs=(
                pl.BlockSpec((1, tm, tn), lambda g, i, j, k: (g, i, j)),
                pl.BlockSpec((1, 2, tn), lambda g, i, j, k: (g * gm + i, 0, j)),
            ),
            scratch_shapes=[pltpu.VMEM((tm, tn), jnp.float32)],
        ),
        compiler_params=pltpu.CompilerParams(
            dimension_semantics=("parallel", "parallel", "parallel", "arbitrary"),
            vmem_limit_bytes=32 * 1024 * 1024),
    )(*inputs)

    out = out[:, :M, :N]
    stats = stats.sum(axis=0)[:, :N]        # (2, N): [sum, sum_sq]; zero pads add 0
    return out, stats


# ---------------------------------------------------------------------------
# Pointwise per-channel affine (BatchNorm apply), bf16 slab, large row tiles.
# ---------------------------------------------------------------------------
def _affine_kernel(x_ref, s_ref, t_ref, o_ref):
    x = x_ref[...].astype(jnp.float32)
    o_ref[...] = (x * s_ref[...] + t_ref[...]).astype(o_ref.dtype)


def bn_affine(x2d, scale, shift):
    M, C = x2d.shape
    Cp = _round_up(C, 128)
    bm = max(8, min(1024, ((1 << 19) // Cp) // 8 * 8))   # ~1 MiB bf16 per block
    bm = min(bm, _round_up(M, 8))
    Mp = _round_up(M, bm)
    xp = jnp.pad(x2d, ((0, Mp - M), (0, Cp - C)))
    sp = jnp.pad(scale.astype(jnp.float32).reshape(1, -1), ((0, 0), (0, Cp - C)))
    tp = jnp.pad(shift.astype(jnp.float32).reshape(1, -1), ((0, 0), (0, Cp - C)))
    out = pl.pallas_call(
        _affine_kernel,
        out_shape=jax.ShapeDtypeStruct((Mp, Cp), x2d.dtype),
        grid=(Mp // bm,),
        in_specs=[pl.BlockSpec((bm, Cp), lambda i: (i, 0)),
                  pl.BlockSpec((1, Cp), lambda i: (0, 0)),
                  pl.BlockSpec((1, Cp), lambda i: (0, 0))],
        out_specs=pl.BlockSpec((bm, Cp), lambda i: (i, 0)),
        compiler_params=pltpu.CompilerParams(
            dimension_semantics=("parallel",),
            vmem_limit_bytes=32 * 1024 * 1024),
    )(xp, sp, tp)
    return out[:M, :C]


def batch_norm_from_stats(x_nhwc, stats, gamma, beta, eps=1e-5):
    """Training-mode BatchNorm using [sum, sum_sq] already produced by the
    conv matmul (saves a full-tensor stats read pass)."""
    shape = x_nhwc.shape
    C = shape[-1]
    x2d = x_nhwc.reshape(-1, C)
    count = x2d.shape[0]
    mean = stats[0] / count
    var = jnp.maximum(stats[1] / count - mean * mean, 0.0)
    scale = gamma / jnp.sqrt(var + eps)
    shift = beta - mean * scale
    return bn_affine(x2d, scale, shift).reshape(shape)


# ---------------------------------------------------------------------------
# Conv / ConvTranspose as fused matmuls (NHWC, bf16 activations)
# ---------------------------------------------------------------------------
def conv_down(x, w, act_in="none", act_out="none", bias=None,
              out_dtype=jnp.bfloat16):
    """Conv2d(k=4, s=2, p=1).  x: NHWC bf16, w: (Cout, Cin, 4, 4) f32.
    Pre-activation act_in is fused inside the matmul (act(0)=0 keeps padding exact)."""
    N, H, W, C = x.shape
    Cout = w.shape[0]
    Ho, Wo = H // 2, W // 2
    xp = jnp.pad(x, ((0, 0), (1, 1), (1, 1), (0, 0)))
    cols = [xp[:, di:di + 2 * Ho:2, dj:dj + 2 * Wo:2, :]
            for di in range(4) for dj in range(4)]
    patches = jnp.concatenate(cols, axis=-1).reshape(1, N * Ho * Wo, 16 * C)
    w2 = jnp.transpose(w, (2, 3, 1, 0)).reshape(1, 16 * C, Cout)
    out, stats = fused_matmul(patches, w2, bias=bias, act_in=act_in,
                              act_out=act_out, out_dtype=out_dtype)
    return out[0].reshape(N, Ho, Wo, Cout), stats


def conv_transpose_up(x, wt, bias=None, act_in="none", act_out="none",
                      out_dtype=jnp.bfloat16):
    """ConvTranspose2d(k=4, s=2, p=1) via sub-pixel decomposition: 4 output
    parity phases, each a 2x2 conv (K = 4*Cin), batched in one pallas_call.
    x: NHWC bf16, wt: (Cin, Cout, 4, 4) f32."""
    N, H, W, C = x.shape
    Cout = wt.shape[1]
    xp = jnp.pad(x, ((0, 0), (1, 1), (1, 1), (0, 0)))
    a_phases, b_phases = [], []
    for ry in (0, 1):
        for rx in (0, 1):
            taps = [xp[:, ry + dy:ry + dy + H, rx + dx:rx + dx + W, :]
                    for dy in (0, 1) for dx in (0, 1)]
            a_phases.append(jnp.concatenate(taps, axis=-1).reshape(N * H * W, 4 * C))
            wtaps = [wt[:, :, 3 - ry - 2 * dy, 3 - rx - 2 * dx]
                     for dy in (0, 1) for dx in (0, 1)]
            b_phases.append(jnp.concatenate(wtaps, axis=0))          # (4C, Cout)
    a = jnp.stack(a_phases, axis=0)                                  # (4, NHW, 4C)
    b = jnp.stack(b_phases, axis=0)                                  # (4, 4C, Cout)
    out, stats = fused_matmul(a, b, bias=bias, act_in=act_in,
                              act_out=act_out, out_dtype=out_dtype)
    # interleave phases: out[2*ry+rx, n*H*W + h*W + w, c] -> y[n, 2h+ry, 2w+rx, c]
    y = out.reshape(2, 2, N, H, W, Cout).transpose(2, 3, 0, 4, 1, 5)
    return y.reshape(N, 2 * H, 2 * W, Cout), stats


# ---------------------------------------------------------------------------
# Parameter construction (mirrors UnetSkipConnectionBlockLoc.__init__,
# norm_layer=BatchNorm2d => use_bias=False; outermost downconv takes input_nc*2)
# ---------------------------------------------------------------------------
def make_block(key, outer_nc, inner_nc, input_nc=None, submodule=None,
               outermost=False, innermost=False):
    if input_nc is None:
        input_nc = outer_nc
    k1, k2, k3 = jax.random.split(key, 3)
    std = 0.02
    p = {"sub": submodule,
         "kind": "outermost" if outermost else ("innermost" if innermost else "middle")}
    if outermost:
        p["dw"] = std * jax.random.normal(k1, (inner_nc, input_nc * 2, 4, 4), jnp.float32)
        p["uw"] = std * jax.random.normal(k2, (inner_nc * 2, outer_nc, 4, 4), jnp.float32)
        p["ub"] = std * jax.random.normal(k3, (outer_nc,), jnp.float32)
    elif innermost:
        p["dw"] = std * jax.random.normal(k1, (inner_nc, input_nc, 4, 4), jnp.float32)
        p["uw"] = std * jax.random.normal(k2, (inner_nc, outer_nc, 4, 4), jnp.float32)
        p["un_g"] = jnp.ones((outer_nc,), jnp.float32)
        p["un_b"] = jnp.zeros((outer_nc,), jnp.float32)
    else:
        p["dw"] = std * jax.random.normal(k1, (inner_nc, input_nc, 4, 4), jnp.float32)
        p["dn_g"] = jnp.ones((inner_nc,), jnp.float32)
        p["dn_b"] = jnp.zeros((inner_nc,), jnp.float32)
        p["uw"] = std * jax.random.normal(k2, (inner_nc * 2, outer_nc, 4, 4), jnp.float32)
        p["un_g"] = jnp.ones((outer_nc,), jnp.float32)
        p["un_b"] = jnp.zeros((outer_nc,), jnp.float32)
    return p


def build_unet_params(key, input_nc, output_nc, ngf=8):
    k0, k1, k2, k3 = jax.random.split(key, 4)
    blk = make_block(k0, ngf * 4, ngf * 8, innermost=True)
    blk = make_block(k1, ngf * 2, ngf * 4, submodule=blk)
    blk = make_block(k2, ngf, ngf * 2, submodule=blk)
    blk = make_block(k3, output_nc, ngf, input_nc=input_nc, submodule=blk,
                     outermost=True)
    return blk


# ---------------------------------------------------------------------------
# Forward pass (mirrors UnetSkipConnectionBlockLoc.forward)
# ---------------------------------------------------------------------------
def block_forward(p, x):
    kind = p["kind"]
    if kind == "outermost":
        # [downconv] -> submodule -> [ReLU, upconv(+bias), Tanh]
        h, _ = conv_down(x, p["dw"], act_in="none")
        h = block_forward(p["sub"], h)
        y, _ = conv_transpose_up(h, p["uw"], bias=p["ub"],
                                 act_in="relu", act_out="tanh",
                                 out_dtype=jnp.float32)
        return y
    if kind == "innermost":
        # [LReLU, downconv] -> [ReLU, upconv, BN] ; skip cat
        h, _ = conv_down(x, p["dw"], act_in="lrelu")
        h, st = conv_transpose_up(h, p["uw"], act_in="relu")
        h = batch_norm_from_stats(h, st, p["un_g"], p["un_b"])
        return jnp.concatenate([x, h], axis=-1)
    # middle: [LReLU, downconv, BN] -> submodule -> [ReLU, upconv, BN] ; skip cat
    h, st = conv_down(x, p["dw"], act_in="lrelu")
    h = batch_norm_from_stats(h, st, p["dn_g"], p["dn_b"])
    h = block_forward(p["sub"], h)
    h, st = conv_transpose_up(h, p["uw"], act_in="relu")
    h = batch_norm_from_stats(h, st, p["un_g"], p["un_b"])
    # TODO(synk): use_dropout branch (nn.Dropout(0.5)) not implemented; default use_dropout=False.
    return jnp.concatenate([x, h], axis=-1)


def unet_forward(params, x_nchw):
    x = jnp.transpose(x_nchw, (0, 2, 3, 1)).astype(jnp.bfloat16)   # NCHW -> NHWC bf16
    y = block_forward(params, x)
    return jnp.transpose(y, (0, 3, 1, 2)).astype(jnp.float32)      # NHWC -> NCHW


# ---------------------------------------------------------------------------
if __name__ == "__main__":
    key = jax.random.PRNGKey(0)
    k_param, k_input = jax.random.split(key)

    # Small config: 4 U-Net levels, 16x16 input reaches 1x1 at the innermost conv.
    INPUT_NC, OUTPUT_NC, NGF = 2, 3, 8
    N, H, W = 2, 16, 16

    params = build_unet_params(k_param, INPUT_NC, OUTPUT_NC, ngf=NGF)
    # Loc variant: outermost downconv expects input_nc * 2 channels.
    x = jax.random.normal(k_input, (N, 2 * INPUT_NC, H, W), jnp.float32)

    fwd = jax.jit(functools.partial(unet_forward, params))
    out = jax.block_until_ready(fwd(x))

    assert out.shape == (N, OUTPUT_NC, H, W), out.shape
    assert bool(jnp.all(jnp.isfinite(out)))
    print("KERNEL_OK")
</pallas_src>

<mosaic_0001>
module attributes {stable_mosaic.version = 11 : i64} {
  func.func @_mm_kernel(%arg0: i32, %arg1: i32, %arg2: i32, %arg3: i32, %arg4: memref<1x128x128xbf16, #tpu.memory_space<vmem>>, %arg5: memref<1x128x128xbf16, #tpu.memory_space<vmem>>, %arg6: memref<1x128x128xbf16, #tpu.memory_space<vmem>>, %arg7: memref<1x2x128xf32, #tpu.memory_space<vmem>>, %arg8: memref<128x128xf32, #tpu.memory_space<vmem>>) attributes {dimension_semantics = [#tpu.dimension_semantics<parallel>, #tpu.dimension_semantics<parallel>, #tpu.dimension_semantics<parallel>, #tpu.dimension_semantics<arbitrary>], iteration_bounds = array<i64: 1, 1, 1, 1>, scalar_prefetch = 0 : i64, scratch_operands = 1 : i64, tpu.core_type = #tpu.core_type<tc>, window_params = [{transform_indices = @transform_0, window_bounds = array<i64: 1, 128, 128>}, {transform_indices = @transform_1, window_bounds = array<i64: 1, 128, 128>}, {transform_indices = @transform_2, window_bounds = array<i64: 1, 128, 128>}, {transform_indices = @transform_3, window_bounds = array<i64: 1, 2, 128>}]} {
    %c0_i32 = arith.constant 0 : i32
    %0 = arith.cmpi eq, %arg3, %c0_i32 : i32
    %1 = arith.extui %0 : i1 to i32
    %c0_i32_0 = arith.constant 0 : i32
    %2 = arith.cmpi ne, %1, %c0_i32_0 : i32
    scf.if %2 {
      %cst_12 = arith.constant 0.000000e+00 : f32
      %14 = vector.broadcast %cst_12 : f32 to vector<128x128xf32>
      %c0_13 = arith.constant 0 : index
      %c0_14 = arith.constant 0 : index
      %15 = vector.load %arg8[%c0_13, %c0_14] : memref<128x128xf32, #tpu.memory_space<vmem>>, vector<128x128xf32>
      tpu.vector_store %arg8[%c0_13, %c0_14], %14 {strides = array<i32>} : memref<128x128xf32, #tpu.memory_space<vmem>>, vector<128x128xf32>,
    } else {
    }
    %c0 = arith.constant 0 : index
    %c0_1 = arith.constant 0 : index
    %c0_2 = arith.constant 0 : index
    %3 = vector.load %arg4[%c0, %c0_1, %c0_2] : memref<1x128x128xbf16, #tpu.memory_space<vmem>>, vector<1x128x128xbf16>
    %4 = vector.shape_cast %3 : vector<1x128x128xbf16> to vector<128x128xbf16>
    %c0_3 = arith.constant 0 : index
    %c0_4 = arith.constant 0 : index
    %5 = vector.load %arg8[%c0_3, %c0_4] : memref<128x128xf32, #tpu.memory_space<vmem>>, vector<128x128xf32>
    %c0_5 = arith.constant 0 : index
    %c0_6 = arith.constant 0 : index
    %c0_7 = arith.constant 0 : index
    %6 = vector.load %arg5[%c0_5, %c0_6, %c0_7] : memref<1x128x128xbf16, #tpu.memory_space<vmem>>, vector<1x128x128xbf16>
    %7 = vector.shape_cast %6 : vector<1x128x128xbf16> to vector<128x128xbf16>
    %cst = arith.constant dense<0.000000e+00> : vector<128x128xf32>
    %8 = tpu.matmul %4, %7, %cst {dimension_numbers = #tpu.dot_dimension_numbers<[1], [0], [0], [1], [0, 0, 1, 1], [], []>} : vector<128x128xbf16>, vector<128x128xbf16>, vector<128x128xf32> -> vector<128x128xf32>
    %9 = arith.addf %5, %8 : vector<128x128xf32>
    %c0_8 = arith.constant 0 : index
    %c0_9 = arith.constant 0 : index
    %10 = vector.load %arg8[%c0_8, %c0_9] : memref<128x128xf32, #tpu.memory_space<vmem>>, vector<128x128xf32>
    tpu.vector_store %arg8[%c0_8, %c0_9], %9 {strides = array<i32>} : memref<128x128xf32, #tpu.memory_space<vmem>>, vector<128x128xf32>,
    %c0_i32_10 = arith.constant 0 : i32
    %11 = arith.cmpi eq, %arg3, %c0_i32_10 : i32
    %12 = arith.extui %11 : i1 to i32
    %c0_i32_11 = arith.constant 0 : i32
    %13 = arith.cmpi ne, %12, %c0_i32_11 : i32
    scf.if %13 {
      %c0_12 = arith.constant 0 : index
      %c0_13 = arith.constant 0 : index
      %14 = vector.load %arg8[%c0_12, %c0_13] : memref<128x128xf32, #tpu.memory_space<vmem>>, vector<128x128xf32>
      %cst_14 = arith.constant dense<0.000000e+00> : vector<128xf32>
      %15 = vector.multi_reduction <add>, %14, %cst_14 [0] : vector<128x128xf32> to vector<128xf32>
      %16 = vector.shape_cast %15 : vector<128xf32> to vector<1x128xf32>
      %17 = arith.mulf %14, %14 : vector<128x128xf32>
      %cst_15 = arith.constant dense<0.000000e+00> : vector<128xf32>
      %18 = vector.multi_reduction <add>, %17, %cst_15 [0] : vector<128x128xf32> to vector<128xf32>
      %19 = vector.shape_cast %18 : vector<128xf32> to vector<1x128xf32>
      %20 = tpu.concatenate %16, %19 in 0 : vector<1x128xf32>, vector<1x128xf32> -> vector<2x128xf32>
      %21 = vector.shape_cast %20 : vector<2x128xf32> to vector<1x2x128xf32>
      %c0_16 = arith.constant 0 : index
      %c0_17 = arith.constant 0 : index
      %c0_18 = arith.constant 0 : index
      %22 = vector.load %arg7[%c0_16, %c0_17, %c0_18] : memref<1x2x128xf32, #tpu.memory_space<vmem>>, vector<1x2x128xf32>
      tpu.vector_store %arg7[%c0_16, %c0_17, %c0_18], %21 {strides = array<i32>} : memref<1x2x128xf32, #tpu.memory_space<vmem>>, vector<1x2x128xf32>,
      %23 = arith.truncf %14 : vector<128x128xf32> to vector<128x128xbf16>
      %c0_19 = arith.constant 0 : index
      %c0_20 = arith.constant 0 : index
      %c0_21 = arith.constant 0 : index
      %24 = vector.load %arg6[%c0_19, %c0_20, %c0_21] : memref<1x128x128xbf16, #tpu.memory_space<vmem>>, vector<1x128x128xbf16>
      %25 = vector.shape_cast %24 : vector<1x128x128xbf16> to vector<128x128xbf16>
      %26 = vector.shape_cast %23 : vector<128x128xbf16> to vector<1x128x128xbf16>
      tpu.vector_store %arg6[%c0_19, %c0_20, %c0_21], %26 {strides = array<i32>} : memref<1x128x128xbf16, #tpu.memory_space<vmem>>, vector<1x128x128xbf16>,
    } else {
    }
    return
  }
  func.func @transform_0(%arg0: i32, %arg1: i32, %arg2: i32, %arg3: i32) -> (i32, i32, i32) {
    %c0_i32 = arith.constant 0 : i32
    return %arg0, %arg1, %arg3 : i32, i32, i32
  }
  func.func @transform_1(%arg0: i32, %arg1: i32, %arg2: i32, %arg3: i32) -> (i32, i32, i32) {
    %c0_i32 = arith.constant 0 : i32
    return %arg0, %arg3, %arg2 : i32, i32, i32
  }
  func.func @transform_2(%arg0: i32, %arg1: i32, %arg2: i32, %arg3: i32) -> (i32, i32, i32) {
    %c0_i32 = arith.constant 0 : i32
    return %arg0, %arg1, %arg2 : i32, i32, i32
  }
  func.func @transform_3(%arg0: i32, %arg1: i32, %arg2: i32, %arg3: i32) -> (i32, i32, i32) {
    %c1_i32 = arith.constant 1 : i32
    %0 = arith.muli %arg0, %c1_i32 : i32
    %1 = arith.addi %0, %arg1 : i32
    %c0_i32 = arith.constant 0 : i32
    %c0_i32_0 = arith.constant 0 : i32
    return %1, %c0_i32, %arg2 : i32, i32, i32
  }
}

module attributes {stable_mosaic.version = 11 : i64} {
  func.func @_mm_kernel(%arg0: i32, %arg1: i32, %arg2: i32, %arg3: i32, %arg4: memref<1x128x128xbf16, #tpu.memory_space<vmem>>, %arg5: memref<1x128x128xbf16, #tpu.memory_space<vmem>>, %arg6: memref<1x128x128xbf16, #tpu.memory_space<vmem>>, %arg7: memref<1x2x128xf32, #tpu.memory_space<vmem>>, %arg8: memref<128x128xf32, #tpu.memory_space<vmem>>) attributes {dimension_semantics = [#tpu.dimension_semantics<parallel>, #tpu.dimension_semantics<parallel>, #tpu.dimension_semantics<parallel>, #tpu.dimension_semantics<arbitrary>], iteration_bounds = array<i64: 1, 1, 1, 1>, scalar_prefetch = 0 : i64, scratch_operands = 1 : i64, tpu.core_type = #tpu.core_type<tc>, window_params = [{transform_indices = @transform_0, window_bounds = array<i64: 1, 128, 128>}, {transform_indices = @transform_1, window_bounds = array<i64: 1, 128, 128>}, {transform_indices = @transform_2, window_bounds = array<i64: 1, 128, 128>}, {transform_indices = @transform_3, window_bounds = array<i64: 1, 2, 128>}]} {
    %c0_i32 = arith.constant 0 : i32
    %0 = arith.cmpi eq, %arg3, %c0_i32 : i32
    %1 = arith.extui %0 : i1 to i32
    %c0_i32_0 = arith.constant 0 : i32
    %2 = arith.cmpi ne, %1, %c0_i32_0 : i32
    scf.if %2 {
      %cst_14 = arith.constant 0.000000e+00 : f32
      %19 = vector.broadcast %cst_14 : f32 to vector<128x128xf32>
      %c0_15 = arith.constant 0 : index
      %c0_16 = arith.constant 0 : index
      %20 = vector.load %arg8[%c0_15, %c0_16] : memref<128x128xf32, #tpu.memory_space<vmem>>, vector<128x128xf32>
      tpu.vector_store %arg8[%c0_15, %c0_16], %19 {strides = array<i32>} : memref<128x128xf32, #tpu.memory_space<vmem>>, vector<128x128xf32>,
    } else {
    }
    %c0 = arith.constant 0 : index
    %c0_1 = arith.constant 0 : index
    %c0_2 = arith.constant 0 : index
    %3 = vector.load %arg4[%c0, %c0_1, %c0_2] : memref<1x128x128xbf16, #tpu.memory_space<vmem>>, vector<1x128x128xbf16>
    %4 = vector.shape_cast %3 : vector<1x128x128xbf16> to vector<128x128xbf16>
    %cst = arith.constant 0.000000e+00 : bf16
    %5 = vector.broadcast %cst : bf16 to vector<128x128xbf16>
    %6 = arith.cmpf oge, %4, %5 : vector<128x128xbf16>
    %cst_3 = arith.constant 2.001950e-01 : bf16
    %7 = vector.broadcast %cst_3 : bf16 to vector<128x128xbf16>
    %8 = arith.mulf %4, %7 : vector<128x128xbf16>
    %9 = arith.select %6, %4, %8 : vector<128x128xi1>, vector<128x128xbf16>
    %c0_4 = arith.constant 0 : index
    %c0_5 = arith.constant 0 : index
    %10 = vector.load %arg8[%c0_4, %c0_5] : memref<128x128xf32, #tpu.memory_space<vmem>>, vector<128x128xf32>
    %c0_6 = arith.constant 0 : index
    %c0_7 = arith.constant 0 : index
    %c0_8 = arith.constant 0 : index
    %11 = vector.load %arg5[%c0_6, %c0_7, %c0_8] : memref<1x128x128xbf16, #tpu.memory_space<vmem>>, vector<1x128x128xbf16>
    %12 = vector.shape_cast %11 : vector<1x128x128xbf16> to vector<128x128xbf16>
    %cst_9 = arith.constant dense<0.000000e+00> : vector<128x128xf32>
    %13 = tpu.matmul %9, %12, %cst_9 {dimension_numbers = #tpu.dot_dimension_numbers<[1], [0], [0], [1], [0, 0, 1, 1], [], []>} : vector<128x128xbf16>, vector<128x128xbf16>, vector<128x128xf32> -> vector<128x128xf32>
    %14 = arith.addf %10, %13 : vector<128x128xf32>
    %c0_10 = arith.constant 0 : index
    %c0_11 = arith.constant 0 : index
    %15 = vector.load %arg8[%c0_10, %c0_11] : memref<128x128xf32, #tpu.memory_space<vmem>>, vector<128x128xf32>
    tpu.vector_store %arg8[%c0_10, %c0_11], %14 {strides = array<i32>} : memref<128x128xf32, #tpu.memory_space<vmem>>, vector<128x128xf32>,
    %c0_i32_12 = arith.constant 0 : i32
    %16 = arith.cmpi eq, %arg3, %c0_i32_12 : i32
    %17 = arith.extui %16 : i1 to i32
    %c0_i32_13 = arith.constant 0 : i32
    %18 = arith.cmpi ne, %17, %c0_i32_13 : i32
    scf.if %18 {
      %c0_14 = arith.constant 0 : index
      %c0_15 = arith.constant 0 : index
      %19 = vector.load %arg8[%c0_14, %c0_15] : memref<128x128xf32, #tpu.memory_space<vmem>>, vector<128x128xf32>
      %cst_16 = arith.constant dense<0.000000e+00> : vector<128xf32>
      %20 = vector.multi_reduction <add>, %19, %cst_16 [0] : vector<128x128xf32> to vector<128xf32>
      %21 = vector.shape_cast %20 : vector<128xf32> to vector<1x128xf32>
      %22 = arith.mulf %19, %19 : vector<128x128xf32>
      %cst_17 = arith.constant dense<0.000000e+00> : vector<128xf32>
      %23 = vector.multi_reduction <add>, %22, %cst_17 [0] : vector<128x128xf32> to vector<128xf32>
      %24 = vector.shape_cast %23 : vector<128xf32> to vector<1x128xf32>
      %25 = tpu.concatenate %21, %24 in 0 : vector<1x128xf32>, vector<1x128xf32> -> vector<2x128xf32>
      %26 = vector.shape_cast %25 : vector<2x128xf32> to vector<1x2x128xf32>
      %c0_18 = arith.constant 0 : index
      %c0_19 = arith.constant 0 : index
      %c0_20 = arith.constant 0 : index
      %27 = vector.load %arg7[%c0_18, %c0_19, %c0_20] : memref<1x2x128xf32, #tpu.memory_space<vmem>>, vector<1x2x128xf32>
      tpu.vector_store %arg7[%c0_18, %c0_19, %c0_20], %26 {strides = array<i32>} : memref<1x2x128xf32, #tpu.memory_space<vmem>>, vector<1x2x128xf32>,
      %28 = arith.truncf %19 : vector<128x128xf32> to vector<128x128xbf16>
      %c0_21 = arith.constant 0 : index
      %c0_22 = arith.constant 0 : index
      %c0_23 = arith.constant 0 : index
      %29 = vector.load %arg6[%c0_21, %c0_22, %c0_23] : memref<1x128x128xbf16, #tpu.memory_space<vmem>>, vector<1x128x128xbf16>
      %30 = vector.shape_cast %29 : vector<1x128x128xbf16> to vector<128x128xbf16>
      %31 = vector.shape_cast %28 : vector<128x128xbf16> to vector<1x128x128xbf16>
      tpu.vector_store %arg6[%c0_21, %c0_22, %c0_23], %31 {strides = array<i32>} : memref<1x128x128xbf16, #tpu.memory_space<vmem>>, vector<1x128x128xbf16>,
    } else {
    }
    return
  }
  func.func @transform_0(%arg0: i32, %arg1: i32, %arg2: i32, %arg3: i32) -> (i32, i32, i32) {
    %c0_i32 = arith.constant 0 : i32
    return %arg0, %arg1, %arg3 : i32, i32, i32
  }
  func.func @transform_1(%arg0: i32, %arg1: i32, %arg2: i32, %arg3: i32) -> (i32, i32, i32) {
    %c0_i32 = arith.constant 0 : i32
    return %arg0, %arg3, %arg2 : i32, i32, i32
  }
  func.func @transform_2(%arg0: i32, %arg1: i32, %arg2: i32, %arg3: i32) -> (i32, i32, i32) {
    %c0_i32 = arith.constant 0 : i32
    return %arg0, %arg1, %arg2 : i32, i32, i32
  }
  func.func @transform_3(%arg0: i32, %arg1: i32, %arg2: i32, %arg3: i32) -> (i32, i32, i32) {
    %c1_i32 = arith.constant 1 : i32
    %0 = arith.muli %arg0, %c1_i32 : i32
    %1 = arith.addi %0, %arg1 : i32
    %c0_i32 = arith.constant 0 : i32
    %c0_i32_0 = arith.constant 0 : i32
    return %1, %c0_i32, %arg2 : i32, i32, i32
  }
}

module attributes {stable_mosaic.version = 11 : i64} {
  func.func @_affine_kernel(%arg0: i32, %arg1: memref<32x128xbf16, #tpu.memory_space<vmem>>, %arg2: memref<1x128xf32, #tpu.memory_space<vmem>>, %arg3: memref<1x128xf32, #tpu.memory_space<vmem>>, %arg4: memref<32x128xbf16, #tpu.memory_space<vmem>>) attributes {dimension_semantics = [#tpu.dimension_semantics<parallel>], iteration_bounds = array<i64: 1>, scalar_prefetch = 0 : i64, scratch_operands = 0 : i64, tpu.core_type = #tpu.core_type<tc>, window_params = [{transform_indices = @transform_0, window_bounds = array<i64: 32, 128>}, {pipeline_mode = #tpu.pipeline_mode<synchronous>, transform_indices = @transform_1, window_bounds = array<i64: 1, 128>}, {pipeline_mode = #tpu.pipeline_mode<synchronous>, transform_indices = @transform_2, window_bounds = array<i64: 1, 128>}, {transform_indices = @transform_3, window_bounds = array<i64: 32, 128>}]} {
    %c0 = arith.constant 0 : index
    %c0_0 = arith.constant 0 : index
    %0 = vector.load %arg1[%c0, %c0_0] : memref<32x128xbf16, #tpu.memory_space<vmem>>, vector<32x128xbf16>
    %1 = arith.extf %0 : vector<32x128xbf16> to vector<32x128xf32>
    %c0_1 = arith.constant 0 : index
    %c0_2 = arith.constant 0 : index
    %2 = vector.load %arg2[%c0_1, %c0_2] : memref<1x128xf32, #tpu.memory_space<vmem>>, vector<1x128xf32>
    %3 = vector.broadcast %2 : vector<1x128xf32> to vector<32x128xf32>
    %4 = arith.mulf %1, %3 : vector<32x128xf32>
    %c0_3 = arith.constant 0 : index
    %c0_4 = arith.constant 0 : index
    %5 = vector.load %arg3[%c0_3, %c0_4] : memref<1x128xf32, #tpu.memory_space<vmem>>, vector<1x128xf32>
    %6 = vector.broadcast %5 : vector<1x128xf32> to vector<32x128xf32>
    %7 = arith.addf %4, %6 : vector<32x128xf32>
    %8 = arith.truncf %7 : vector<32x128xf32> to vector<32x128xbf16>
    %c0_5 = arith.constant 0 : index
    %c0_6 = arith.constant 0 : index
    %9 = vector.load %arg4[%c0_5, %c0_6] : memref<32x128xbf16, #tpu.memory_space<vmem>>, vector<32x128xbf16>
    tpu.vector_store %arg4[%c0_5, %c0_6], %8 {strides = array<i32>} : memref<32x128xbf16, #tpu.memory_space<vmem>>, vector<32x128xbf16>,
    return
  }
  func.func @transform_0(%arg0: i32) -> (i32, i32) {
    %c0_i32 = arith.constant 0 : i32
    %c0_i32_0 = arith.constant 0 : i32
    return %arg0, %c0_i32 : i32, i32
  }
  func.func @transform_1(%arg0: i32) -> (i32, i32) {
    %c0_i32 = arith.constant 0 : i32
    %c0_i32_0 = arith.constant 0 : i32
    %c0_i32_1 = arith.constant 0 : i32
    return %c0_i32, %c0_i32_0 : i32, i32
  }
  func.func @transform_2(%arg0: i32) -> (i32, i32) {
    %c0_i32 = arith.constant 0 : i32
    %c0_i32_0 = arith.constant 0 : i32
    %c0_i32_1 = arith.constant 0 : i32
    return %c0_i32, %c0_i32_0 : i32, i32
  }
  func.func @transform_3(%arg0: i32) -> (i32, i32) {
    %c0_i32 = arith.constant 0 : i32
    %c0_i32_0 = arith.constant 0 : i32
    return %arg0, %c0_i32 : i32, i32
  }
}

module attributes {stable_mosaic.version = 11 : i64} {
  func.func @_mm_kernel(%arg0: i32, %arg1: i32, %arg2: i32, %arg3: i32, %arg4: memref<1x128x256xbf16, #tpu.memory_space<vmem>>, %arg5: memref<1x256x128xbf16, #tpu.memory_space<vmem>>, %arg6: memref<1x128x128xbf16, #tpu.memory_space<vmem>>, %arg7: memref<1x2x128xf32, #tpu.memory_space<vmem>>, %arg8: memref<128x128xf32, #tpu.memory_space<vmem>>) attributes {dimension_semantics = [#tpu.dimension_semantics<parallel>, #tpu.dimension_semantics<parallel>, #tpu.dimension_semantics<parallel>, #tpu.dimension_semantics<arbitrary>], iteration_bounds = array<i64: 1, 1, 1, 1>, scalar_prefetch = 0 : i64, scratch_operands = 1 : i64, tpu.core_type = #tpu.core_type<tc>, window_params = [{transform_indices = @transform_0, window_bounds = array<i64: 1, 128, 256>}, {transform_indices = @transform_1, window_bounds = array<i64: 1, 256, 128>}, {transform_indices = @transform_2, window_bounds = array<i64: 1, 128, 128>}, {transform_indices = @transform_3, window_bounds = array<i64: 1, 2, 128>}]} {
    %c0_i32 = arith.constant 0 : i32
    %0 = arith.cmpi eq, %arg3, %c0_i32 : i32
    %1 = arith.extui %0 : i1 to i32
    %c0_i32_0 = arith.constant 0 : i32
    %2 = arith.cmpi ne, %1, %c0_i32_0 : i32
    scf.if %2 {
      %cst_14 = arith.constant 0.000000e+00 : f32
      %19 = vector.broadcast %cst_14 : f32 to vector<128x128xf32>
      %c0_15 = arith.constant 0 : index
      %c0_16 = arith.constant 0 : index
      %20 = vector.load %arg8[%c0_15, %c0_16] : memref<128x128xf32, #tpu.memory_space<vmem>>, vector<128x128xf32>
      tpu.vector_store %arg8[%c0_15, %c0_16], %19 {strides = array<i32>} : memref<128x128xf32, #tpu.memory_space<vmem>>, vector<128x128xf32>,
    } else {
    }
    %c0 = arith.constant 0 : index
    %c0_1 = arith.constant 0 : index
    %c0_2 = arith.constant 0 : index
    %3 = vector.load %arg4[%c0, %c0_1, %c0_2] : memref<1x128x256xbf16, #tpu.memory_space<vmem>>, vector<1x128x256xbf16>
    %4 = vector.shape_cast %3 : vector<1x128x256xbf16> to vector<128x256xbf16>
    %cst = arith.constant 0.000000e+00 : bf16
    %5 = vector.broadcast %cst : bf16 to vector<128x256xbf16>
    %6 = arith.cmpf oge, %4, %5 : vector<128x256xbf16>
    %cst_3 = arith.constant 2.001950e-01 : bf16
    %7 = vector.broadcast %cst_3 : bf16 to vector<128x256xbf16>
    %8 = arith.mulf %4, %7 : vector<128x256xbf16>
    %9 = arith.select %6, %4, %8 : vector<128x256xi1>, vector<128x256xbf16>
    %c0_4 = arith.constant 0 : index
    %c0_5 = arith.constant 0 : index
    %10 = vector.load %arg8[%c0_4, %c0_5] : memref<128x128xf32, #tpu.memory_space<vmem>>, vector<128x128xf32>
    %c0_6 = arith.constant 0 : index
    %c0_7 = arith.constant 0 : index
    %c0_8 = arith.constant 0 : index
    %11 = vector.load %arg5[%c0_6, %c0_7, %c0_8] : memref<1x256x128xbf16, #tpu.memory_space<vmem>>, vector<1x256x128xbf16>
    %12 = vector.shape_cast %11 : vector<1x256x128xbf16> to vector<256x128xbf16>
    %cst_9 = arith.constant dense<0.000000e+00> : vector<128x128xf32>
    %13 = tpu.matmul %9, %12, %cst_9 {dimension_numbers = #tpu.dot_dimension_numbers<[1], [0], [0], [1], [0, 0, 1, 1], [], []>} : vector<128x256xbf16>, vector<256x128xbf16>, vector<128x128xf32> -> vector<128x128xf32>
    %14 = arith.addf %10, %13 : vector<128x128xf32>
    %c0_10 = arith.constant 0 : index
    %c0_11 = arith.constant 0 : index
    %15 = vector.load %arg8[%c0_10, %c0_11] : memref<128x128xf32, #tpu.memory_space<vmem>>, vector<128x128xf32>
    tpu.vector_store %arg8[%c0_10, %c0_11], %14 {strides = array<i32>} : memref<128x128xf32, #tpu.memory_space<vmem>>, vector<128x128xf32>,
    %c0_i32_12 = arith.constant 0 : i32
    %16 = arith.cmpi eq, %arg3, %c0_i32_12 : i32
    %17 = arith.extui %16 : i1 to i32
    %c0_i32_13 = arith.constant 0 : i32
    %18 = arith.cmpi ne, %17, %c0_i32_13 : i32
    scf.if %18 {
      %c0_14 = arith.constant 0 : index
      %c0_15 = arith.constant 0 : index
      %19 = vector.load %arg8[%c0_14, %c0_15] : memref<128x128xf32, #tpu.memory_space<vmem>>, vector<128x128xf32>
      %cst_16 = arith.constant dense<0.000000e+00> : vector<128xf32>
      %20 = vector.multi_reduction <add>, %19, %cst_16 [0] : vector<128x128xf32> to vector<128xf32>
      %21 = vector.shape_cast %20 : vector<128xf32> to vector<1x128xf32>
      %22 = arith.mulf %19, %19 : vector<128x128xf32>
      %cst_17 = arith.constant dense<0.000000e+00> : vector<128xf32>
      %23 = vector.multi_reduction <add>, %22, %cst_17 [0] : vector<128x128xf32> to vector<128xf32>
      %24 = vector.shape_cast %23 : vector<128xf32> to vector<1x128xf32>
      %25 = tpu.concatenate %21, %24 in 0 : vector<1x128xf32>, vector<1x128xf32> -> vector<2x128xf32>
      %26 = vector.shape_cast %25 : vector<2x128xf32> to vector<1x2x128xf32>
      %c0_18 = arith.constant 0 : index
      %c0_19 = arith.constant 0 : index
      %c0_20 = arith.constant 0 : index
      %27 = vector.load %arg7[%c0_18, %c0_19, %c0_20] : memref<1x2x128xf32, #tpu.memory_space<vmem>>, vector<1x2x128xf32>
      tpu.vector_store %arg7[%c0_18, %c0_19, %c0_20], %26 {strides = array<i32>} : memref<1x2x128xf32, #tpu.memory_space<vmem>>, vector<1x2x128xf32>,
      %28 = arith.truncf %19 : vector<128x128xf32> to vector<128x128xbf16>
      %c0_21 = arith.constant 0 : index
      %c0_22 = arith.constant 0 : index
      %c0_23 = arith.constant 0 : index
      %29 = vector.load %arg6[%c0_21, %c0_22, %c0_23] : memref<1x128x128xbf16, #tpu.memory_space<vmem>>, vector<1x128x128xbf16>
      %30 = vector.shape_cast %29 : vector<1x128x128xbf16> to vector<128x128xbf16>
      %31 = vector.shape_cast %28 : vector<128x128xbf16> to vector<1x128x128xbf16>
      tpu.vector_store %arg6[%c0_21, %c0_22, %c0_23], %31 {strides = array<i32>} : memref<1x128x128xbf16, #tpu.memory_space<vmem>>, vector<1x128x128xbf16>,
    } else {
    }
    return
  }
  func.func @transform_0(%arg0: i32, %arg1: i32, %arg2: i32, %arg3: i32) -> (i32, i32, i32) {
    %c0_i32 = arith.constant 0 : i32
    return %arg0, %arg1, %arg3 : i32, i32, i32
  }
  func.func @transform_1(%arg0: i32, %arg1: i32, %arg2: i32, %arg3: i32) -> (i32, i32, i32) {
    %c0_i32 = arith.constant 0 : i32
    return %arg0, %arg3, %arg2 : i32, i32, i32
  }
  func.func @transform_2(%arg0: i32, %arg1: i32, %arg2: i32, %arg3: i32) -> (i32, i32, i32) {
    %c0_i32 = arith.constant 0 : i32
    return %arg0, %arg1, %arg2 : i32, i32, i32
  }
  func.func @transform_3(%arg0: i32, %arg1: i32, %arg2: i32, %arg3: i32) -> (i32, i32, i32) {
    %c1_i32 = arith.constant 1 : i32
    %0 = arith.muli %arg0, %c1_i32 : i32
    %1 = arith.addi %0, %arg1 : i32
    %c0_i32 = arith.constant 0 : i32
    %c0_i32_0 = arith.constant 0 : i32
    return %1, %c0_i32, %arg2 : i32, i32, i32
  }
}

module attributes {stable_mosaic.version = 11 : i64} {
  func.func @_affine_kernel(%arg0: i32, %arg1: memref<8x128xbf16, #tpu.memory_space<vmem>>, %arg2: memref<1x128xf32, #tpu.memory_space<vmem>>, %arg3: memref<1x128xf32, #tpu.memory_space<vmem>>, %arg4: memref<8x128xbf16, #tpu.memory_space<vmem>>) attributes {dimension_semantics = [#tpu.dimension_semantics<parallel>], iteration_bounds = array<i64: 1>, scalar_prefetch = 0 : i64, scratch_operands = 0 : i64, tpu.core_type = #tpu.core_type<tc>, window_params = [{transform_indices = @transform_0, window_bounds = array<i64: 8, 128>}, {pipeline_mode = #tpu.pipeline_mode<synchronous>, transform_indices = @transform_1, window_bounds = array<i64: 1, 128>}, {pipeline_mode = #tpu.pipeline_mode<synchronous>, transform_indices = @transform_2, window_bounds = array<i64: 1, 128>}, {transform_indices = @transform_3, window_bounds = array<i64: 8, 128>}]} {
    %c0 = arith.constant 0 : index
    %c0_0 = arith.constant 0 : index
    %0 = vector.load %arg1[%c0, %c0_0] : memref<8x128xbf16, #tpu.memory_space<vmem>>, vector<8x128xbf16>
    %1 = arith.extf %0 : vector<8x128xbf16> to vector<8x128xf32>
    %c0_1 = arith.constant 0 : index
    %c0_2 = arith.constant 0 : index
    %2 = vector.load %arg2[%c0_1, %c0_2] : memref<1x128xf32, #tpu.memory_space<vmem>>, vector<1x128xf32>
    %3 = vector.broadcast %2 : vector<1x128xf32> to vector<8x128xf32>
    %4 = arith.mulf %1, %3 : vector<8x128xf32>
    %c0_3 = arith.constant 0 : index
    %c0_4 = arith.constant 0 : index
    %5 = vector.load %arg3[%c0_3, %c0_4] : memref<1x128xf32, #tpu.memory_space<vmem>>, vector<1x128xf32>
    %6 = vector.broadcast %5 : vector<1x128xf32> to vector<8x128xf32>
    %7 = arith.addf %4, %6 : vector<8x128xf32>
    %8 = arith.truncf %7 : vector<8x128xf32> to vector<8x128xbf16>
    %c0_5 = arith.constant 0 : index
    %c0_6 = arith.constant 0 : index
    %9 = vector.load %arg4[%c0_5, %c0_6] : memref<8x128xbf16, #tpu.memory_space<vmem>>, vector<8x128xbf16>
    tpu.vector_store %arg4[%c0_5, %c0_6], %8 {strides = array<i32>} : memref<8x128xbf16, #tpu.memory_space<vmem>>, vector<8x128xbf16>,
    return
  }
  func.func @transform_0(%arg0: i32) -> (i32, i32) {
    %c0_i32 = arith.constant 0 : i32
    %c0_i32_0 = arith.constant 0 : i32
    return %arg0, %c0_i32 : i32, i32
  }
  func.func @transform_1(%arg0: i32) -> (i32, i32) {
    %c0_i32 = arith.constant 0 : i32
    %c0_i32_0 = arith.constant 0 : i32
    %c0_i32_1 = arith.constant 0 : i32
    return %c0_i32, %c0_i32_0 : i32, i32
  }
  func.func @transform_2(%arg0: i32) -> (i32, i32) {
    %c0_i32 = arith.constant 0 : i32
    %c0_i32_0 = arith.constant 0 : i32
    %c0_i32_1 = arith.constant 0 : i32
    return %c0_i32, %c0_i32_0 : i32, i32
  }
  func.func @transform_3(%arg0: i32) -> (i32, i32) {
    %c0_i32 = arith.constant 0 : i32
    %c0_i32_0 = arith.constant 0 : i32
    return %arg0, %c0_i32 : i32, i32
  }
}

module attributes {stable_mosaic.version = 11 : i64} {
  func.func @_mm_kernel(%arg0: i32, %arg1: i32, %arg2: i32, %arg3: i32, %arg4: memref<1x128x512xbf16, #tpu.memory_space<vmem>>, %arg5: memref<1x512x128xbf16, #tpu.memory_space<vmem>>, %arg6: memref<1x128x128xbf16, #tpu.memory_space<vmem>>, %arg7: memref<1x2x128xf32, #tpu.memory_space<vmem>>, %arg8: memref<128x128xf32, #tpu.memory_space<vmem>>) attributes {dimension_semantics = [#tpu.dimension_semantics<parallel>, #tpu.dimension_semantics<parallel>, #tpu.dimension_semantics<parallel>, #tpu.dimension_semantics<arbitrary>], iteration_bounds = array<i64: 1, 1, 1, 1>, scalar_prefetch = 0 : i64, scratch_operands = 1 : i64, tpu.core_type = #tpu.core_type<tc>, window_params = [{transform_indices = @transform_0, window_bounds = array<i64: 1, 128, 512>}, {transform_indices = @transform_1, window_bounds = array<i64: 1, 512, 128>}, {transform_indices = @transform_2, window_bounds = array<i64: 1, 128, 128>}, {transform_indices = @transform_3, window_bounds = array<i64: 1, 2, 128>}]} {
    %c0_i32 = arith.constant 0 : i32
    %0 = arith.cmpi eq, %arg3, %c0_i32 : i32
    %1 = arith.extui %0 : i1 to i32
    %c0_i32_0 = arith.constant 0 : i32
    %2 = arith.cmpi ne, %1, %c0_i32_0 : i32
    scf.if %2 {
      %cst_14 = arith.constant 0.000000e+00 : f32
      %19 = vector.broadcast %cst_14 : f32 to vector<128x128xf32>
      %c0_15 = arith.constant 0 : index
      %c0_16 = arith.constant 0 : index
      %20 = vector.load %arg8[%c0_15, %c0_16] : memref<128x128xf32, #tpu.memory_space<vmem>>, vector<128x128xf32>
      tpu.vector_store %arg8[%c0_15, %c0_16], %19 {strides = array<i32>} : memref<128x128xf32, #tpu.memory_space<vmem>>, vector<128x128xf32>,
    } else {
    }
    %c0 = arith.constant 0 : index
    %c0_1 = arith.constant 0 : index
    %c0_2 = arith.constant 0 : index
    %3 = vector.load %arg4[%c0, %c0_1, %c0_2] : memref<1x128x512xbf16, #tpu.memory_space<vmem>>, vector<1x128x512xbf16>
    %4 = vector.shape_cast %3 : vector<1x128x512xbf16> to vector<128x512xbf16>
    %cst = arith.constant 0.000000e+00 : bf16
    %5 = vector.broadcast %cst : bf16 to vector<128x512xbf16>
    %6 = arith.cmpf oge, %4, %5 : vector<128x512xbf16>
    %cst_3 = arith.constant 2.001950e-01 : bf16
    %7 = vector.broadcast %cst_3 : bf16 to vector<128x512xbf16>
    %8 = arith.mulf %4, %7 : vector<128x512xbf16>
    %9 = arith.select %6, %4, %8 : vector<128x512xi1>, vector<128x512xbf16>
    %c0_4 = arith.constant 0 : index
    %c0_5 = arith.constant 0 : index
    %10 = vector.load %arg8[%c0_4, %c0_5] : memref<128x128xf32, #tpu.memory_space<vmem>>, vector<128x128xf32>
    %c0_6 = arith.constant 0 : index
    %c0_7 = arith.constant 0 : index
    %c0_8 = arith.constant 0 : index
    %11 = vector.load %arg5[%c0_6, %c0_7, %c0_8] : memref<1x512x128xbf16, #tpu.memory_space<vmem>>, vector<1x512x128xbf16>
    %12 = vector.shape_cast %11 : vector<1x512x128xbf16> to vector<512x128xbf16>
    %cst_9 = arith.constant dense<0.000000e+00> : vector<128x128xf32>
    %13 = tpu.matmul %9, %12, %cst_9 {dimension_numbers = #tpu.dot_dimension_numbers<[1], [0], [0], [1], [0, 0, 1, 1], [], []>} : vector<128x512xbf16>, vector<512x128xbf16>, vector<128x128xf32> -> vector<128x128xf32>
    %14 = arith.addf %10, %13 : vector<128x128xf32>
    %c0_10 = arith.constant 0 : index
    %c0_11 = arith.constant 0 : index
    %15 = vector.load %arg8[%c0_10, %c0_11] : memref<128x128xf32, #tpu.memory_space<vmem>>, vector<128x128xf32>
    tpu.vector_store %arg8[%c0_10, %c0_11], %14 {strides = array<i32>} : memref<128x128xf32, #tpu.memory_space<vmem>>, vector<128x128xf32>,
    %c0_i32_12 = arith.constant 0 : i32
    %16 = arith.cmpi eq, %arg3, %c0_i32_12 : i32
    %17 = arith.extui %16 : i1 to i32
    %c0_i32_13 = arith.constant 0 : i32
    %18 = arith.cmpi ne, %17, %c0_i32_13 : i32
    scf.if %18 {
      %c0_14 = arith.constant 0 : index
      %c0_15 = arith.constant 0 : index
      %19 = vector.load %arg8[%c0_14, %c0_15] : memref<128x128xf32, #tpu.memory_space<vmem>>, vector<128x128xf32>
      %cst_16 = arith.constant dense<0.000000e+00> : vector<128xf32>
      %20 = vector.multi_reduction <add>, %19, %cst_16 [0] : vector<128x128xf32> to vector<128xf32>
      %21 = vector.shape_cast %20 : vector<128xf32> to vector<1x128xf32>
      %22 = arith.mulf %19, %19 : vector<128x128xf32>
      %cst_17 = arith.constant dense<0.000000e+00> : vector<128xf32>
      %23 = vector.multi_reduction <add>, %22, %cst_17 [0] : vector<128x128xf32> to vector<128xf32>
      %24 = vector.shape_cast %23 : vector<128xf32> to vector<1x128xf32>
      %25 = tpu.concatenate %21, %24 in 0 : vector<1x128xf32>, vector<1x128xf32> -> vector<2x128xf32>
      %26 = vector.shape_cast %25 : vector<2x128xf32> to vector<1x2x128xf32>
      %c0_18 = arith.constant 0 : index
      %c0_19 = arith.constant 0 : index
      %c0_20 = arith.constant 0 : index
      %27 = vector.load %arg7[%c0_18, %c0_19, %c0_20] : memref<1x2x128xf32, #tpu.memory_space<vmem>>, vector<1x2x128xf32>
      tpu.vector_store %arg7[%c0_18, %c0_19, %c0_20], %26 {strides = array<i32>} : memref<1x2x128xf32, #tpu.memory_space<vmem>>, vector<1x2x128xf32>,
      %28 = arith.truncf %19 : vector<128x128xf32> to vector<128x128xbf16>
      %c0_21 = arith.constant 0 : index
      %c0_22 = arith.constant 0 : index
      %c0_23 = arith.constant 0 : index
      %29 = vector.load %arg6[%c0_21, %c0_22, %c0_23] : memref<1x128x128xbf16, #tpu.memory_space<vmem>>, vector<1x128x128xbf16>
      %30 = vector.shape_cast %29 : vector<1x128x128xbf16> to vector<128x128xbf16>
      %31 = vector.shape_cast %28 : vector<128x128xbf16> to vector<1x128x128xbf16>
      tpu.vector_store %arg6[%c0_21, %c0_22, %c0_23], %31 {strides = array<i32>} : memref<1x128x128xbf16, #tpu.memory_space<vmem>>, vector<1x128x128xbf16>,
    } else {
    }
    return
  }
  func.func @transform_0(%arg0: i32, %arg1: i32, %arg2: i32, %arg3: i32) -> (i32, i32, i32) {
    %c0_i32 = arith.constant 0 : i32
    return %arg0, %arg1, %arg3 : i32, i32, i32
  }
  func.func @transform_1(%arg0: i32, %arg1: i32, %arg2: i32, %arg3: i32) -> (i32, i32, i32) {
    %c0_i32 = arith.constant 0 : i32
    return %arg0, %arg3, %arg2 : i32, i32, i32
  }
  func.func @transform_2(%arg0: i32, %arg1: i32, %arg2: i32, %arg3: i32) -> (i32, i32, i32) {
    %c0_i32 = arith.constant 0 : i32
    return %arg0, %arg1, %arg2 : i32, i32, i32
  }
  func.func @transform_3(%arg0: i32, %arg1: i32, %arg2: i32, %arg3: i32) -> (i32, i32, i32) {
    %c1_i32 = arith.constant 1 : i32
    %0 = arith.muli %arg0, %c1_i32 : i32
    %1 = arith.addi %0, %arg1 : i32
    %c0_i32 = arith.constant 0 : i32
    %c0_i32_0 = arith.constant 0 : i32
    return %1, %c0_i32, %arg2 : i32, i32, i32
  }
}

module attributes {stable_mosaic.version = 11 : i64} {
  func.func @_mm_kernel(%arg0: i32, %arg1: i32, %arg2: i32, %arg3: i32, %arg4: memref<1x128x256xbf16, #tpu.memory_space<vmem>>, %arg5: memref<1x256x128xbf16, #tpu.memory_space<vmem>>, %arg6: memref<1x128x128xbf16, #tpu.memory_space<vmem>>, %arg7: memref<1x2x128xf32, #tpu.memory_space<vmem>>, %arg8: memref<128x128xf32, #tpu.memory_space<vmem>>) attributes {dimension_semantics = [#tpu.dimension_semantics<parallel>, #tpu.dimension_semantics<parallel>, #tpu.dimension_semantics<parallel>, #tpu.dimension_semantics<arbitrary>], iteration_bounds = array<i64: 4, 1, 1, 1>, scalar_prefetch = 0 : i64, scratch_operands = 1 : i64, tpu.core_type = #tpu.core_type<tc>, window_params = [{transform_indices = @transform_0, window_bounds = array<i64: 1, 128, 256>}, {transform_indices = @transform_1, window_bounds = array<i64: 1, 256, 128>}, {transform_indices = @transform_2, window_bounds = array<i64: 1, 128, 128>}, {transform_indices = @transform_3, window_bounds = array<i64: 1, 2, 128>}]} {
    %c0_i32 = arith.constant 0 : i32
    %0 = arith.cmpi eq, %arg3, %c0_i32 : i32
    %1 = arith.extui %0 : i1 to i32
    %c0_i32_0 = arith.constant 0 : i32
    %2 = arith.cmpi ne, %1, %c0_i32_0 : i32
    scf.if %2 {
      %cst_13 = arith.constant 0.000000e+00 : f32
      %16 = vector.broadcast %cst_13 : f32 to vector<128x128xf32>
      %c0_14 = arith.constant 0 : index
      %c0_15 = arith.constant 0 : index
      %17 = vector.load %arg8[%c0_14, %c0_15] : memref<128x128xf32, #tpu.memory_space<vmem>>, vector<128x128xf32>
      tpu.vector_store %arg8[%c0_14, %c0_15], %16 {strides = array<i32>} : memref<128x128xf32, #tpu.memory_space<vmem>>, vector<128x128xf32>,
    } else {
    }
    %c0 = arith.constant 0 : index
    %c0_1 = arith.constant 0 : index
    %c0_2 = arith.constant 0 : index
    %3 = vector.load %arg4[%c0, %c0_1, %c0_2] : memref<1x128x256xbf16, #tpu.memory_space<vmem>>, vector<1x128x256xbf16>
    %4 = vector.shape_cast %3 : vector<1x128x256xbf16> to vector<128x256xbf16>
    %cst = arith.constant 0.000000e+00 : bf16
    %5 = vector.broadcast %cst : bf16 to vector<128x256xbf16>
    %6 = arith.maximumf %4, %5 : vector<128x256xbf16>
    %c0_3 = arith.constant 0 : index
    %c0_4 = arith.constant 0 : index
    %7 = vector.load %arg8[%c0_3, %c0_4] : memref<128x128xf32, #tpu.memory_space<vmem>>, vector<128x128xf32>
    %c0_5 = arith.constant 0 : index
    %c0_6 = arith.constant 0 : index
    %c0_7 = arith.constant 0 : index
    %8 = vector.load %arg5[%c0_5, %c0_6, %c0_7] : memref<1x256x128xbf16, #tpu.memory_space<vmem>>, vector<1x256x128xbf16>
    %9 = vector.shape_cast %8 : vector<1x256x128xbf16> to vector<256x128xbf16>
    %cst_8 = arith.constant dense<0.000000e+00> : vector<128x128xf32>
    %10 = tpu.matmul %6, %9, %cst_8 {dimension_numbers = #tpu.dot_dimension_numbers<[1], [0], [0], [1], [0, 0, 1, 1], [], []>} : vector<128x256xbf16>, vector<256x128xbf16>, vector<128x128xf32> -> vector<128x128xf32>
    %11 = arith.addf %7, %10 : vector<128x128xf32>
    %c0_9 = arith.constant 0 : index
    %c0_10 = arith.constant 0 : index
    %12 = vector.load %arg8[%c0_9, %c0_10] : memref<128x128xf32, #tpu.memory_space<vmem>>, vector<128x128xf32>
    tpu.vector_store %arg8[%c0_9, %c0_10], %11 {strides = array<i32>} : memref<128x128xf32, #tpu.memory_space<vmem>>, vector<128x128xf32>,
    %c0_i32_11 = arith.constant 0 : i32
    %13 = arith.cmpi eq, %arg3, %c0_i32_11 : i32
    %14 = arith.extui %13 : i1 to i32
    %c0_i32_12 = arith.constant 0 : i32
    %15 = arith.cmpi ne, %14, %c0_i32_12 : i32
    scf.if %15 {
      %c0_13 = arith.constant 0 : index
      %c0_14 = arith.constant 0 : index
      %16 = vector.load %arg8[%c0_13, %c0_14] : memref<128x128xf32, #tpu.memory_space<vmem>>, vector<128x128xf32>
      %cst_15 = arith.constant dense<0.000000e+00> : vector<128xf32>
      %17 = vector.multi_reduction <add>, %16, %cst_15 [0] : vector<128x128xf32> to vector<128xf32>
      %18 = vector.shape_cast %17 : vector<128xf32> to vector<1x128xf32>
      %19 = arith.mulf %16, %16 : vector<128x128xf32>
      %cst_16 = arith.constant dense<0.000000e+00> : vector<128xf32>
      %20 = vector.multi_reduction <add>, %19, %cst_16 [0] : vector<128x128xf32> to vector<128xf32>
      %21 = vector.shape_cast %20 : vector<128xf32> to vector<1x128xf32>
      %22 = tpu.concatenate %18, %21 in 0 : vector<1x128xf32>, vector<1x128xf32> -> vector<2x128xf32>
      %23 = vector.shape_cast %22 : vector<2x128xf32> to vector<1x2x128xf32>
      %c0_17 = arith.constant 0 : index
      %c0_18 = arith.constant 0 : index
      %c0_19 = arith.constant 0 : index
      %24 = vector.load %arg7[%c0_17, %c0_18, %c0_19] : memref<1x2x128xf32, #tpu.memory_space<vmem>>, vector<1x2x128xf32>
      tpu.vector_store %arg7[%c0_17, %c0_18, %c0_19], %23 {strides = array<i32>} : memref<1x2x128xf32, #tpu.memory_space<vmem>>, vector<1x2x128xf32>,
      %25 = arith.truncf %16 : vector<128x128xf32> to vector<128x128xbf16>
      %c0_20 = arith.constant 0 : index
      %c0_21 = arith.constant 0 : index
      %c0_22 = arith.constant 0 : index
      %26 = vector.load %arg6[%c0_20, %c0_21, %c0_22] : memref<1x128x128xbf16, #tpu.memory_space<vmem>>, vector<1x128x128xbf16>
      %27 = vector.shape_cast %26 : vector<1x128x128xbf16> to vector<128x128xbf16>
      %28 = vector.shape_cast %25 : vector<128x128xbf16> to vector<1x128x128xbf16>
      tpu.vector_store %arg6[%c0_20, %c0_21, %c0_22], %28 {strides = array<i32>} : memref<1x128x128xbf16, #tpu.memory_space<vmem>>, vector<1x128x128xbf16>,
    } else {
    }
    return
  }
  func.func @transform_0(%arg0: i32, %arg1: i32, %arg2: i32, %arg3: i32) -> (i32, i32, i32) {
    %c0_i32 = arith.constant 0 : i32
    return %arg0, %arg1, %arg3 : i32, i32, i32
  }
  func.func @transform_1(%arg0: i32, %arg1: i32, %arg2: i32, %arg3: i32) -> (i32, i32, i32) {
    %c0_i32 = arith.constant 0 : i32
    return %arg0, %arg3, %arg2 : i32, i32, i32
  }
  func.func @transform_2(%arg0: i32, %arg1: i32, %arg2: i32, %arg3: i32) -> (i32, i32, i32) {
    %c0_i32 = arith.constant 0 : i32
    return %arg0, %arg1, %arg2 : i32, i32, i32
  }
  func.func @transform_3(%arg0: i32, %arg1: i32, %arg2: i32, %arg3: i32) -> (i32, i32, i32) {
    %c1_i32 = arith.constant 1 : i32
    %0 = arith.muli %arg0, %c1_i32 : i32
    %1 = arith.addi %0, %arg1 : i32
    %c0_i32 = arith.constant 0 : i32
    %c0_i32_0 = arith.constant 0 : i32
    return %1, %c0_i32, %arg2 : i32, i32, i32
  }
}

module attributes {stable_mosaic.version = 11 : i64} {
  func.func @_mm_kernel(%arg0: i32, %arg1: i32, %arg2: i32, %arg3: i32, %arg4: memref<1x128x128xbf16, #tpu.memory_space<vmem>>, %arg5: memref<1x128x128xbf16, #tpu.memory_space<vmem>>, %arg6: memref<1x128x128xbf16, #tpu.memory_space<vmem>>, %arg7: memref<1x2x128xf32, #tpu.memory_space<vmem>>, %arg8: memref<128x128xf32, #tpu.memory_space<vmem>>) attributes {dimension_semantics = [#tpu.dimension_semantics<parallel>, #tpu.dimension_semantics<parallel>, #tpu.dimension_semantics<parallel>, #tpu.dimension_semantics<arbitrary>], iteration_bounds = array<i64: 4, 1, 1, 1>, scalar_prefetch = 0 : i64, scratch_operands = 1 : i64, tpu.core_type = #tpu.core_type<tc>, window_params = [{transform_indices = @transform_0, window_bounds = array<i64: 1, 128, 128>}, {transform_indices = @transform_1, window_bounds = array<i64: 1, 128, 128>}, {transform_indices = @transform_2, window_bounds = array<i64: 1, 128, 128>}, {transform_indices = @transform_3, window_bounds = array<i64: 1, 2, 128>}]} {
    %c0_i32 = arith.constant 0 : i32
    %0 = arith.cmpi eq, %arg3, %c0_i32 : i32
    %1 = arith.extui %0 : i1 to i32
    %c0_i32_0 = arith.constant 0 : i32
    %2 = arith.cmpi ne, %1, %c0_i32_0 : i32
    scf.if %2 {
      %cst_13 = arith.constant 0.000000e+00 : f32
      %16 = vector.broadcast %cst_13 : f32 to vector<128x128xf32>
      %c0_14 = arith.constant 0 : index
      %c0_15 = arith.constant 0 : index
      %17 = vector.load %arg8[%c0_14, %c0_15] : memref<128x128xf32, #tpu.memory_space<vmem>>, vector<128x128xf32>
      tpu.vector_store %arg8[%c0_14, %c0_15], %16 {strides = array<i32>} : memref<128x128xf32, #tpu.memory_space<vmem>>, vector<128x128xf32>,
    } else {
    }
    %c0 = arith.constant 0 : index
    %c0_1 = arith.constant 0 : index
    %c0_2 = arith.constant 0 : index
    %3 = vector.load %arg4[%c0, %c0_1, %c0_2] : memref<1x128x128xbf16, #tpu.memory_space<vmem>>, vector<1x128x128xbf16>
    %4 = vector.shape_cast %3 : vector<1x128x128xbf16> to vector<128x128xbf16>
    %cst = arith.constant 0.000000e+00 : bf16
    %5 = vector.broadcast %cst : bf16 to vector<128x128xbf16>
    %6 = arith.maximumf %4, %5 : vector<128x128xbf16>
    %c0_3 = arith.constant 0 : index
    %c0_4 = arith.constant 0 : index
    %7 = vector.load %arg8[%c0_3, %c0_4] : memref<128x128xf32, #tpu.memory_space<vmem>>, vector<128x128xf32>
    %c0_5 = arith.constant 0 : index
    %c0_6 = arith.constant 0 : index
    %c0_7 = arith.constant 0 : index
    %8 = vector.load %arg5[%c0_5, %c0_6, %c0_7] : memref<1x128x128xbf16, #tpu.memory_space<vmem>>, vector<1x128x128xbf16>
    %9 = vector.shape_cast %8 : vector<1x128x128xbf16> to vector<128x128xbf16>
    %cst_8 = arith.constant dense<0.000000e+00> : vector<128x128xf32>
    %10 = tpu.matmul %6, %9, %cst_8 {dimension_numbers = #tpu.dot_dimension_numbers<[1], [0], [0], [1], [0, 0, 1, 1], [], []>} : vector<128x128xbf16>, vector<128x128xbf16>, vector<128x128xf32> -> vector<128x128xf32>
    %11 = arith.addf %7, %10 : vector<128x128xf32>
    %c0_9 = arith.constant 0 : index
    %c0_10 = arith.constant 0 : index
    %12 = vector.load %arg8[%c0_9, %c0_10] : memref<128x128xf32, #tpu.memory_space<vmem>>, vector<128x128xf32>
    tpu.vector_store %arg8[%c0_9, %c0_10], %11 {strides = array<i32>} : memref<128x128xf32, #tpu.memory_space<vmem>>, vector<128x128xf32>,
    %c0_i32_11 = arith.constant 0 : i32
    %13 = arith.cmpi eq, %arg3, %c0_i32_11 : i32
    %14 = arith.extui %13 : i1 to i32
    %c0_i32_12 = arith.constant 0 : i32
    %15 = arith.cmpi ne, %14, %c0_i32_12 : i32
    scf.if %15 {
      %c0_13 = arith.constant 0 : index
      %c0_14 = arith.constant 0 : index
      %16 = vector.load %arg8[%c0_13, %c0_14] : memref<128x128xf32, #tpu.memory_space<vmem>>, vector<128x128xf32>
      %cst_15 = arith.constant dense<0.000000e+00> : vector<128xf32>
      %17 = vector.multi_reduction <add>, %16, %cst_15 [0] : vector<128x128xf32> to vector<128xf32>
      %18 = vector.shape_cast %17 : vector<128xf32> to vector<1x128xf32>
      %19 = arith.mulf %16, %16 : vector<128x128xf32>
      %cst_16 = arith.constant dense<0.000000e+00> : vector<128xf32>
      %20 = vector.multi_reduction <add>, %19, %cst_16 [0] : vector<128x128xf32> to vector<128xf32>
      %21 = vector.shape_cast %20 : vector<128xf32> to vector<1x128xf32>
      %22 = tpu.concatenate %18, %21 in 0 : vector<1x128xf32>, vector<1x128xf32> -> vector<2x128xf32>
      %23 = vector.shape_cast %22 : vector<2x128xf32> to vector<1x2x128xf32>
      %c0_17 = arith.constant 0 : index
      %c0_18 = arith.constant 0 : index
      %c0_19 = arith.constant 0 : index
      %24 = vector.load %arg7[%c0_17, %c0_18, %c0_19] : memref<1x2x128xf32, #tpu.memory_space<vmem>>, vector<1x2x128xf32>
      tpu.vector_store %arg7[%c0_17, %c0_18, %c0_19], %23 {strides = array<i32>} : memref<1x2x128xf32, #tpu.memory_space<vmem>>, vector<1x2x128xf32>,
      %25 = arith.truncf %16 : vector<128x128xf32> to vector<128x128xbf16>
      %c0_20 = arith.constant 0 : index
      %c0_21 = arith.constant 0 : index
      %c0_22 = arith.constant 0 : index
      %26 = vector.load %arg6[%c0_20, %c0_21, %c0_22] : memref<1x128x128xbf16, #tpu.memory_space<vmem>>, vector<1x128x128xbf16>
      %27 = vector.shape_cast %26 : vector<1x128x128xbf16> to vector<128x128xbf16>
      %28 = vector.shape_cast %25 : vector<128x128xbf16> to vector<1x128x128xbf16>
      tpu.vector_store %arg6[%c0_20, %c0_21, %c0_22], %28 {strides = array<i32>} : memref<1x128x128xbf16, #tpu.memory_space<vmem>>, vector<1x128x128xbf16>,
    } else {
    }
    return
  }
  func.func @transform_0(%arg0: i32, %arg1: i32, %arg2: i32, %arg3: i32) -> (i32, i32, i32) {
    %c0_i32 = arith.constant 0 : i32
    return %arg0, %arg1, %arg3 : i32, i32, i32
  }
  func.func @transform_1(%arg0: i32, %arg1: i32, %arg2: i32, %arg3: i32) -> (i32, i32, i32) {
    %c0_i32 = arith.constant 0 : i32
    return %arg0, %arg3, %arg2 : i32, i32, i32
  }
  func.func @transform_2(%arg0: i32, %arg1: i32, %arg2: i32, %arg3: i32) -> (i32, i32, i32) {
    %c0_i32 = arith.constant 0 : i32
    return %arg0, %arg1, %arg2 : i32, i32, i32
  }
  func.func @transform_3(%arg0: i32, %arg1: i32, %arg2: i32, %arg3: i32) -> (i32, i32, i32) {
    %c1_i32 = arith.constant 1 : i32
    %0 = arith.muli %arg0, %c1_i32 : i32
    %1 = arith.addi %0, %arg1 : i32
    %c0_i32 = arith.constant 0 : i32
    %c0_i32_0 = arith.constant 0 : i32
    return %1, %c0_i32, %arg2 : i32, i32, i32
  }
}

module attributes {stable_mosaic.version = 11 : i64} {
  func.func @_affine_kernel(%arg0: i32, %arg1: memref<128x128xbf16, #tpu.memory_space<vmem>>, %arg2: memref<1x128xf32, #tpu.memory_space<vmem>>, %arg3: memref<1x128xf32, #tpu.memory_space<vmem>>, %arg4: memref<128x128xbf16, #tpu.memory_space<vmem>>) attributes {dimension_semantics = [#tpu.dimension_semantics<parallel>], iteration_bounds = array<i64: 1>, scalar_prefetch = 0 : i64, scratch_operands = 0 : i64, tpu.core_type = #tpu.core_type<tc>, window_params = [{transform_indices = @transform_0, window_bounds = array<i64: 128, 128>}, {pipeline_mode = #tpu.pipeline_mode<synchronous>, transform_indices = @transform_1, window_bounds = array<i64: 1, 128>}, {pipeline_mode = #tpu.pipeline_mode<synchronous>, transform_indices = @transform_2, window_bounds = array<i64: 1, 128>}, {transform_indices = @transform_3, window_bounds = array<i64: 128, 128>}]} {
    %c0 = arith.constant 0 : index
    %c0_0 = arith.constant 0 : index
    %0 = vector.load %arg1[%c0, %c0_0] : memref<128x128xbf16, #tpu.memory_space<vmem>>, vector<128x128xbf16>
    %1 = arith.extf %0 : vector<128x128xbf16> to vector<128x128xf32>
    %c0_1 = arith.constant 0 : index
    %c0_2 = arith.constant 0 : index
    %2 = vector.load %arg2[%c0_1, %c0_2] : memref<1x128xf32, #tpu.memory_space<vmem>>, vector<1x128xf32>
    %3 = vector.broadcast %2 : vector<1x128xf32> to vector<128x128xf32>
    %4 = arith.mulf %1, %3 : vector<128x128xf32>
    %c0_3 = arith.constant 0 : index
    %c0_4 = arith.constant 0 : index
    %5 = vector.load %arg3[%c0_3, %c0_4] : memref<1x128xf32, #tpu.memory_space<vmem>>, vector<1x128xf32>
    %6 = vector.broadcast %5 : vector<1x128xf32> to vector<128x128xf32>
    %7 = arith.addf %4, %6 : vector<128x128xf32>
    %8 = arith.truncf %7 : vector<128x128xf32> to vector<128x128xbf16>
    %c0_5 = arith.constant 0 : index
    %c0_6 = arith.constant 0 : index
    %9 = vector.load %arg4[%c0_5, %c0_6] : memref<128x128xbf16, #tpu.memory_space<vmem>>, vector<128x128xbf16>
    tpu.vector_store %arg4[%c0_5, %c0_6], %8 {strides = array<i32>} : memref<128x128xbf16, #tpu.memory_space<vmem>>, vector<128x128xbf16>,
    return
  }
  func.func @transform_0(%arg0: i32) -> (i32, i32) {
    %c0_i32 = arith.constant 0 : i32
    %c0_i32_0 = arith.constant 0 : i32
    return %arg0, %c0_i32 : i32, i32
  }
  func.func @transform_1(%arg0: i32) -> (i32, i32) {
    %c0_i32 = arith.constant 0 : i32
    %c0_i32_0 = arith.constant 0 : i32
    %c0_i32_1 = arith.constant 0 : i32
    return %c0_i32, %c0_i32_0 : i32, i32
  }
  func.func @transform_2(%arg0: i32) -> (i32, i32) {
    %c0_i32 = arith.constant 0 : i32
    %c0_i32_0 = arith.constant 0 : i32
    %c0_i32_1 = arith.constant 0 : i32
    return %c0_i32, %c0_i32_0 : i32, i32
  }
  func.func @transform_3(%arg0: i32) -> (i32, i32) {
    %c0_i32 = arith.constant 0 : i32
    %c0_i32_0 = arith.constant 0 : i32
    return %arg0, %c0_i32 : i32, i32
  }
}

module attributes {stable_mosaic.version = 11 : i64} {
  func.func @_mm_kernel(%arg0: i32, %arg1: i32, %arg2: i32, %arg3: i32, %arg4: memref<1x128x128xbf16, #tpu.memory_space<vmem>>, %arg5: memref<1x128x128xbf16, #tpu.memory_space<vmem>>, %arg6: memref<1x128xf32, #tpu.memory_space<vmem>>, %arg7: memref<1x128x128xf32, #tpu.memory_space<vmem>>, %arg8: memref<1x2x128xf32, #tpu.memory_space<vmem>>, %arg9: memref<128x128xf32, #tpu.memory_space<vmem>>) attributes {dimension_semantics = [#tpu.dimension_semantics<parallel>, #tpu.dimension_semantics<parallel>, #tpu.dimension_semantics<parallel>, #tpu.dimension_semantics<arbitrary>], iteration_bounds = array<i64: 4, 1, 1, 1>, scalar_prefetch = 0 : i64, scratch_operands = 1 : i64, tpu.core_type = #tpu.core_type<tc>, window_params = [{transform_indices = @transform_0, window_bounds = array<i64: 1, 128, 128>}, {transform_indices = @transform_1, window_bounds = array<i64: 1, 128, 128>}, {transform_indices = @transform_2, window_bounds = array<i64: 1, 128>}, {transform_indices = @transform_3, window_bounds = array<i64: 1, 128, 128>}, {transform_indices = @transform_4, window_bounds = array<i64: 1, 2, 128>}]} {
    %c0_i32 = arith.constant 0 : i32
    %0 = arith.cmpi eq, %arg3, %c0_i32 : i32
    %1 = arith.extui %0 : i1 to i32
    %c0_i32_0 = arith.constant 0 : i32
    %2 = arith.cmpi ne, %1, %c0_i32_0 : i32
    scf.if %2 {
      %cst_13 = arith.constant 0.000000e+00 : f32
      %16 = vector.broadcast %cst_13 : f32 to vector<128x128xf32>
      %c0_14 = arith.constant 0 : index
      %c0_15 = arith.constant 0 : index
      %17 = vector.load %arg9[%c0_14, %c0_15] : memref<128x128xf32, #tpu.memory_space<vmem>>, vector<128x128xf32>
      tpu.vector_store %arg9[%c0_14, %c0_15], %16 {strides = array<i32>} : memref<128x128xf32, #tpu.memory_space<vmem>>, vector<128x128xf32>,
    } else {
    }
    %c0 = arith.constant 0 : index
    %c0_1 = arith.constant 0 : index
    %c0_2 = arith.constant 0 : index
    %3 = vector.load %arg4[%c0, %c0_1, %c0_2] : memref<1x128x128xbf16, #tpu.memory_space<vmem>>, vector<1x128x128xbf16>
    %4 = vector.shape_cast %3 : vector<1x128x128xbf16> to vector<128x128xbf16>
    %cst = arith.constant 0.000000e+00 : bf16
    %5 = vector.broadcast %cst : bf16 to vector<128x128xbf16>
    %6 = arith.maximumf %4, %5 : vector<128x128xbf16>
    %c0_3 = arith.constant 0 : index
    %c0_4 = arith.constant 0 : index
    %7 = vector.load %arg9[%c0_3, %c0_4] : memref<128x128xf32, #tpu.memory_space<vmem>>, vector<128x128xf32>
    %c0_5 = arith.constant 0 : index
    %c0_6 = arith.constant 0 : index
    %c0_7 = arith.constant 0 : index
    %8 = vector.load %arg5[%c0_5, %c0_6, %c0_7] : memref<1x128x128xbf16, #tpu.memory_space<vmem>>, vector<1x128x128xbf16>
    %9 = vector.shape_cast %8 : vector<1x128x128xbf16> to vector<128x128xbf16>
    %cst_8 = arith.constant dense<0.000000e+00> : vector<128x128xf32>
    %10 = tpu.matmul %6, %9, %cst_8 {dimension_numbers = #tpu.dot_dimension_numbers<[1], [0], [0], [1], [0, 0, 1, 1], [], []>} : vector<128x128xbf16>, vector<128x128xbf16>, vector<128x128xf32> -> vector<128x128xf32>
    %11 = arith.addf %7, %10 : vector<128x128xf32>
    %c0_9 = arith.constant 0 : index
    %c0_10 = arith.constant 0 : index
    %12 = vector.load %arg9[%c0_9, %c0_10] : memref<128x128xf32, #tpu.memory_space<vmem>>, vector<128x128xf32>
    tpu.vector_store %arg9[%c0_9, %c0_10], %11 {strides = array<i32>} : memref<128x128xf32, #tpu.memory_space<vmem>>, vector<128x128xf32>,
    %c0_i32_11 = arith.constant 0 : i32
    %13 = arith.cmpi eq, %arg3, %c0_i32_11 : i32
    %14 = arith.extui %13 : i1 to i32
    %c0_i32_12 = arith.constant 0 : i32
    %15 = arith.cmpi ne, %14, %c0_i32_12 : i32
    scf.if %15 {
      %c0_13 = arith.constant 0 : index
      %c0_14 = arith.constant 0 : index
      %16 = vector.load %arg9[%c0_13, %c0_14] : memref<128x128xf32, #tpu.memory_space<vmem>>, vector<128x128xf32>
      %cst_15 = arith.constant dense<0.000000e+00> : vector<128xf32>
      %17 = vector.multi_reduction <add>, %16, %cst_15 [0] : vector<128x128xf32> to vector<128xf32>
      %18 = vector.shape_cast %17 : vector<128xf32> to vector<1x128xf32>
      %19 = arith.mulf %16, %16 : vector<128x128xf32>
      %cst_16 = arith.constant dense<0.000000e+00> : vector<128xf32>
      %20 = vector.multi_reduction <add>, %19, %cst_16 [0] : vector<128x128xf32> to vector<128xf32>
      %21 = vector.shape_cast %20 : vector<128xf32> to vector<1x128xf32>
      %22 = tpu.concatenate %18, %21 in 0 : vector<1x128xf32>, vector<1x128xf32> -> vector<2x128xf32>
      %23 = vector.shape_cast %22 : vector<2x128xf32> to vector<1x2x128xf32>
      %c0_17 = arith.constant 0 : index
      %c0_18 = arith.constant 0 : index
      %c0_19 = arith.constant 0 : index
      %24 = vector.load %arg8[%c0_17, %c0_18, %c0_19] : memref<1x2x128xf32, #tpu.memory_space<vmem>>, vector<1x2x128xf32>
      tpu.vector_store %arg8[%c0_17, %c0_18, %c0_19], %23 {strides = array<i32>} : memref<1x2x128xf32, #tpu.memory_space<vmem>>, vector<1x2x128xf32>,
      %c0_20 = arith.constant 0 : index
      %c0_21 = arith.constant 0 : index
      %25 = vector.load %arg6[%c0_20, %c0_21] : memref<1x128xf32, #tpu.memory_space<vmem>>, vector<1x128xf32>
      %26 = vector.broadcast %25 : vector<1x128xf32> to vector<128x128xf32>
      %27 = arith.addf %16, %26 : vector<128x128xf32>
      %28 = math.tanh %27 : vector<128x128xf32>
      %c0_22 = arith.constant 0 : index
      %c0_23 = arith.constant 0 : index
      %c0_24 = arith.constant 0 : index
      %29 = vector.load %arg7[%c0_22, %c0_23, %c0_24] : memref<1x128x128xf32, #tpu.memory_space<vmem>>, vector<1x128x128xf32>
      %30 = vector.shape_cast %29 : vector<1x128x128xf32> to vector<128x128xf32>
      %31 = vector.shape_cast %28 : vector<128x128xf32> to vector<1x128x128xf32>
      tpu.vector_store %arg7[%c0_22, %c0_23, %c0_24], %31 {strides = array<i32>} : memref<1x128x128xf32, #tpu.memory_space<vmem>>, vector<1x128x128xf32>,
    } else {
    }
    return
  }
  func.func @transform_0(%arg0: i32, %arg1: i32, %arg2: i32, %arg3: i32) -> (i32, i32, i32) {
    %c0_i32 = arith.constant 0 : i32
    return %arg0, %arg1, %arg3 : i32, i32, i32
  }
  func.func @transform_1(%arg0: i32, %arg1: i32, %arg2: i32, %arg3: i32) -> (i32, i32, i32) {
    %c0_i32 = arith.constant 0 : i32
    return %arg0, %arg3, %arg2 : i32, i32, i32
  }
  func.func @transform_2(%arg0: i32, %arg1: i32, %arg2: i32, %arg3: i32) -> (i32, i32) {
    %c0_i32 = arith.constant 0 : i32
    %c0_i32_0 = arith.constant 0 : i32
    return %c0_i32, %arg2 : i32, i32
  }
  func.func @transform_3(%arg0: i32, %arg1: i32, %arg2: i32, %arg3: i32) -> (i32, i32, i32) {
    %c0_i32 = arith.constant 0 : i32
    return %arg0, %arg1, %arg2 : i32, i32, i32
  }
  func.func @transform_4(%arg0: i32, %arg1: i32, %arg2: i32, %arg3: i32) -> (i32, i32, i32) {
    %c1_i32 = arith.constant 1 : i32
    %0 = arith.muli %arg0, %c1_i32 : i32
    %1 = arith.addi %0, %arg1 : i32
    %c0_i32 = arith.constant 0 : i32
    %c0_i32_0 = arith.constant 0 : i32
    return %1, %c0_i32, %arg2 : i32, i32, i32
  }
}

</mosaic_0001>

<bundles_post_ra>
// kernel: unet_forward.13
= control target key start
LH: loop header
LB: loop body
LE: loop exit
PB: predicated region body
PF: predicated region fallthrough
CT: control target
= control target key end

     0   :  { %s784_s0 = inlined_call_operand.vmem [shape: bf16[1,128,128], index: 0, kind: input, shape index: {}]   ;;  %s785_s1 = inlined_call_operand.vmem [shape: bf16[1,128,128], index: 1, kind: input, shape index: {}]   ;;  %s786_s2 = inlined_call_operand.vmem [shape: bf16[1,128,128], index: 2, kind: output, shape index: {0}]   ;;  %s787_s3 = inlined_call_operand.hbm [shape: f32[1,2,128], index: 3, kind: output, shape index: {1}]  }
   0x1   :  { %v650_v0 = vld [vmem:[%s785_s1 + $0x38] sm:$0xff]   ;;  %v651_v1 = vld [vmem:[%s785_s1 + $0x30] sm:$0xff]   ;;  %v652_v2 = vld [vmem:[%s785_s1 + $0x28] sm:$0xff]  }
   0x2   :  { %601 = vmatprep.subr.bf16.mxu0 %v650_v0  ;;  %633 = vmatprep.subr.bf16.mxu1 %v650_v0  ;;  %v653_v3 = vld [vmem:[%s785_s1 + $0x20] sm:$0xff]   ;;  %v654_v5 = vld [vmem:[%s785_s1 + $0x18] sm:$0xff]   ;;  %v655_v7 = vld [vmem:[%s785_s1 + $0x10] sm:$0xff]  }
   0x3   :  { %602 = vmatpush3.bf16.msra.mxu0 %v650_v0  ;;  %641 = vmatpush3.bf16.msra.mxu1 %v650_v0  ;;  %v658_v4 = vld [vmem:[%s784_s0] sm:$0xff]  }
   0x4   :  { %603 = vmatprep.subr.bf16.mxu0 %v651_v1  ;;  %634 = vmatprep.subr.bf16.mxu1 %v651_v1  ;;  %v662_v6 = vld [vmem:[%s784_s0 + $0x20] sm:$0xff]  }
   0x5   :  { %617 = vmatprep.mubr.bf16.mxu0 %v658_v4  ;;  %625 = vmatprep.mubr.bf16.mxu1 %v662_v6 }
   0x7   :  { %604 = vmatpush3.bf16.msra.mxu0 %v651_v1  ;;  %642 = vmatpush3.bf16.msra.mxu1 %v651_v1 }
   0x8   :  { %605 = vmatprep.subr.bf16.mxu0 %v652_v2  ;;  %635 = vmatprep.subr.bf16.mxu1 %v652_v2 }
   0xb   :  { %606 = vmatpush3.bf16.msra.mxu0 %v652_v2  ;;  %643 = vmatpush3.bf16.msra.mxu1 %v652_v2 }
   0xc   :  { %607 = vmatprep.subr.bf16.mxu0 %v653_v3  ;;  %636 = vmatprep.subr.bf16.mxu1 %v653_v3 }
   0xf   :  { %608 = vmatpush3.bf16.msra.mxu0 %v653_v3  ;;  %644 = vmatpush3.bf16.msra.mxu1 %v653_v3 }
  0x10   :  { %609 = vmatprep.subr.bf16.mxu0 %v654_v5  ;;  %637 = vmatprep.subr.bf16.mxu1 %v654_v5 }
  0x11   :  { %9 = vsyncpa [#allocation4], 0  ;;  %v656_v8 = vld [vmem:[%s785_s1 + $0x8] sm:$0xff]   ;;  %v657_v9 = vld [vmem:[%s785_s1] sm:$0xff]   ;;  %vm386_vm0 = vcmask 1040384  }
  0x12   :  { %v659_v10 = vld [vmem:[%s784_s0 + $0x8] sm:$0xff]   ;;  %v660_v12 = vld [vmem:[%s784_s0 + $0x10] sm:$0xff]   ;;  %v661_v14 = vld [vmem:[%s784_s0 + $0x18] sm:$0xff]  }
  0x13   :  { %610 = vmatpush3.bf16.msra.mxu0 %v654_v5  ;;  %645 = vmatpush3.bf16.msra.mxu1 %v654_v5  ;;  %v663_v11 = vld [vmem:[%s784_s0 + $0x28] sm:$0xff]   ;;  %v664_v13 = vld [vmem:[%s784_s0 + $0x30] sm:$0xff]   ;;  %v665_v15 = vld [vmem:[%s784_s0 + $0x38] sm:$0xff]  }
  0x14   :  { %611 = vmatprep.subr.bf16.mxu0 %v655_v7  ;;  %638 = vmatprep.subr.bf16.mxu1 %v655_v7 }
  0x17   :  { %612 = vmatpush3.bf16.msra.mxu0 %v655_v7  ;;  %646 = vmatpush3.bf16.msra.mxu1 %v655_v7 }
  0x18   :  { %613 = vmatprep.subr.bf16.mxu0 %v656_v8  ;;  %639 = vmatprep.subr.bf16.mxu1 %v656_v8 }
  0x1b   :  { %614 = vmatpush3.bf16.msra.mxu0 %v656_v8  ;;  %647 = vmatpush3.bf16.msra.mxu1 %v656_v8 }
  0x1c   :  { %615 = vmatprep.subr.bf16.mxu0 %v657_v9  ;;  %640 = vmatprep.subr.bf16.mxu1 %v657_v9 }
  0x1f   :  { %616 = vmatpush3.bf16.msra.mxu0 %v657_v9  ;;  %648 = vmatpush3.bf16.msra.mxu1 %v657_v9 }
  0x22   :  { %618 = vmatmul.mubr.bf16.vlgmr.msra.gmra.mxu0 %v659_v10  ;;  %626 = vmatmul.mubr.bf16.vlgmr.msra.gmra.mxu1 %v663_v11 }
  0x23   :  { %621 = vmatprep.mubr.bf16.mxu0 %v660_v12  ;;  %629 = vmatprep.mubr.bf16.mxu1 %v664_v13 }
  0x2a   :  { %622 = vmatmul.mubr.bf16.gmra.mxu0 %v661_v14  ;;  %630 = vmatmul.mubr.bf16.gmra.mxu1 %v665_v15 }
  0xe2   :  { %v619_v16 = vpop.f32.mrf.mxu0  ;;  %v627_v17 = vpop.f32.mrf.mxu1 }
  0xe3   :  { %v351_v33 = vmul.f32 %v619_v16, %v619_v16  ;;  %v359_v3 = vmul.f32 %v627_v17, %v627_v17 }
  0xe4   :  { %v214_v18 = vpop.f32.mrf.mxu0  ;;  %v246_v19 = vpop.f32.mrf.mxu1 }
  0xe5   :  { %v349_v26 = vmul.f32 %v214_v18, %v214_v18  ;;  %v357_v61 = vmul.f32 %v246_v19, %v246_v19 }
  0xe6   :  { %v620_v20 = vpop.f32.mrf.mxu0  ;;  %v628_v21 = vpop.f32.mrf.mxu1 }
  0xe7   :  { %v546_v22 = vpack.c.bf16 %v620_v20, %v619_v16  ;;  %v566_v23 = vpack.c.bf16 %v628_v21, %v627_v17  ;;  %v352_v38 = vmul.f32 %v620_v20, %v620_v20  ;;  %v360_v6 = vmul.f32 %v628_v21, %v628_v21 }
  0xe8   :  { %v217_v24 = vpop.f32.mrf.mxu0  ;;  %v249_v25 = vpop.f32.mrf.mxu1 }
  0xe9   :  { %578 = vst [vmem:[%s786_s2 + $0x8] sm:$0xff] %v546_v22   ;;  %v328_v27 = vadd.f32 %v217_v24, %v214_v18  ;;  %v350_v28 = vmul.f32 %v217_v24, %v217_v24  ;;  %v541_v29 = vpack.c.bf16 %v217_v24, %v214_v18  ;;  %582 = vst [vmem:[%s786_s2 + $0x28] sm:$0xff] %v566_v23  }
  0xea   :  { %v623_v30 = vpop.f32.mrf.mxu0  ;;  %v561_v31 = vpack.c.bf16 %v249_v25, %v246_v19  ;;  %v631_v32 = vpop.f32.mrf.mxu1  ;;  %v358_v1 = vmul.f32 %v249_v25, %v249_v25 }
  0xeb   :  { %v329_v34 = vadd.f32 %v619_v16, %v328_v27  ;;  %v365_v35 = vadd.f32 %v350_v28, %v349_v26  ;;  %542 = vst [vmem:[%s786_s2] sm:$0xff] %v541_v29   ;;  %v355_v55 = vmul.f32 %v623_v30, %v623_v30  ;;  %v363_v15 = vmul.f32 %v631_v32, %v631_v32 }
  0xec   :  { %v230_v36 = vpop.f32.mrf.mxu0  ;;  %581 = vst [vmem:[%s786_s2 + $0x20] sm:$0xff] %v561_v31   ;;  %v262_v37 = vpop.f32.mrf.mxu1 }
  0xed   :  { %v366_v39 = vadd.f32 %v365_v35, %v351_v33  ;;  %v330_v40 = vadd.f32 %v620_v20, %v329_v34  ;;  %v353_v44 = vmul.f32 %v230_v36, %v230_v36  ;;  %v361_v10 = vmul.f32 %v262_v37, %v262_v37 }
  0xee   :  { %v624_v41 = vpop.f32.mrf.mxu0  ;;  %v632_v42 = vpop.f32.mrf.mxu1 }
  0xef   :  { %v331_v43 = vadd.f32 %v330_v40, %v230_v36  ;;  %v367_v45 = vadd.f32 %v366_v39, %v352_v38  ;;  %v556_v46 = vpack.c.bf16 %v624_v41, %v623_v30  ;;  %v576_v48 = vpack.c.bf16 %v632_v42, %v631_v32 }
  0xf0   :  { %v233_v47 = vpop.f32.mrf.mxu0  ;;  %v265_v49 = vpop.f32.mrf.mxu1  ;;  %v356_v58 = vmul.f32 %v624_v41, %v624_v41  ;;  %v364_v20 = vmul.f32 %v632_v42, %v632_v42 }
  0xf1   :  { %v368_v50 = vadd.f32 %v367_v45, %v353_v44  ;;  %580 = vst [vmem:[%s786_s2 + $0x18] sm:$0xff] %v556_v46   ;;  %v332_v51 = vadd.f32 %v331_v43, %v233_v47  ;;  %v354_v52 = vmul.f32 %v233_v47, %v233_v47  ;;  %v551_v53 = vpack.c.bf16 %v233_v47, %v230_v36 }
  0xf2   :  { %584 = vst [vmem:[%s786_s2 + $0x38] sm:$0xff] %v576_v48   ;;  %v571_v54 = vpack.c.bf16 %v265_v49, %v262_v37  ;;  %v362_v14 = vmul.f32 %v265_v49, %v265_v49 }
  0xf3   :  { %v333_v56 = vadd.f32 %v623_v30, %v332_v51  ;;  %v369_v57 = vadd.f32 %v368_v50, %v354_v52  ;;  %579 = vst [vmem:[%s786_s2 + $0x10] sm:$0xff] %v551_v53  }
  0xf4   :  { %583 = vst [vmem:[%s786_s2 + $0x30] sm:$0xff] %v571_v54   ;;  %s688_s2 = smov [#allocation3]  }
  0xf5   :  { %v334_v59 = vadd.f32 %v624_v41, %v333_v56  ;;  %v370_v60 = vadd.f32 %v369_v57, %v355_v55  ;;  %s480_s4 = sshll.u32 %s688_s2, 4  ;;  %s481_s4 = int_to_ptr.vmem [resolvable:$true] %s480_s4 }
  0xf6   :  { %s666_s5 = scalar_lea.vmem %s481_s4, 32  ;;  %p671_p1 = scmp.lt.s32.totalorder %s481_s4, %s481_s4 }
  0xf7   :  { %v371_v62 = vadd.f32 %v370_v60, %v356_v58  ;;  %v335_v63 = vadd.f32 %v334_v59, %v246_v19  ;;  %p667_p0 = scmp.ne.s32.totalorder %s481_s4, %s666_s5  ;;  %p672_p2 = scmp.lt.s32.totalorder %s666_s5, %s666_s5 }
  0xf9   :  { %v336_v0 = vadd.f32 %v335_v63, %v249_v25  ;;  %v372_v2 = vadd.f32 %v371_v62, %v357_v61  ;;  %p673_p3 = por %p672_p2, %p671_p1 }
  0xfb   :  { %v337_v4 = vadd.f32 %v627_v17, %v336_v0  ;;  %v373_v5 = vadd.f32 %v372_v2, %v358_v1  ;;  %p674_p4 = pnand %p673_p3, %p667_p0 }
  0xfd   :  { %v374_v7 = vadd.f32 %v373_v5, %v359_v3  ;;  %v338_v8 = vadd.f32 %v628_v21, %v337_v4 }
  0xff   :  { %v339_v9 = vadd.f32 %v338_v8, %v262_v37  ;;  %v375_v11 = vadd.f32 %v374_v7, %v360_v6 }
 0x101   :  { %v376_v12 = vadd.f32 %v375_v11, %v361_v10  ;;  %v340_v13 = vadd.f32 %v339_v9, %v265_v49 }
 0x103   :  { %v341_v16 = vadd.f32 %v631_v32, %v340_v13  ;;  %v377_v18 = vadd.f32 %v376_v12, %v362_v14 }
 0x105   :  { %v342_v19 = vadd.f32 %v632_v42, %v341_v16  ;;  %v378_v22 = vadd.f32 %v377_v18, %v363_v15 }
 0x107   :  { %v343_v23 = vrot.slane %v342_v19, 4  ;;  %v379_v24 = vadd.f32 %v378_v22, %v364_v20 }
 0x109   :  { %v344_v25 = vadd.f32 %v343_v23, %v342_v19  ;;  %v380_v17 = vrot.slane %v379_v24, 4 }
 0x10b   :  { %v345_v26 = vrot.slane %v344_v25, 2  ;;  %v381_v27 = vadd.f32 %v380_v17, %v379_v24 }
 0x10d   :  { %v346_v28 = vadd.f32 %v345_v26, %v344_v25  ;;  %v382_v21 = vrot.slane %v381_v27, 2 }
 0x10f   :  { %v347_v29 = vrot.slane %v346_v28, 1  ;;  %v383_v30 = vadd.f32 %v382_v21, %v381_v27 }
 0x111   :  { %v384_v31 = vrot.slane %v383_v30, 1  ;;  %v348_v33 = vadd.f32 %v347_v29, %v346_v28 }
 0x113   :  { %v385_v32 = vadd.f32 %v384_v31, %v383_v30 }
 0x115   :  { %v387_v34 = vsel %vm386_vm0, %v348_v33, %v385_v32 }
 0x116   :  { %388 = vst [vmem:[#allocation3] sm:$0x3] %v387_v34 }
 0x117   :  { %677 = shalt.err (!%p674_p4)
}
 0x118   :  { %483 = dma.vmem_to_hbm [thread:$0]  %s481_s4, 32, %s787_s3, [#allocation4]  }
 0x119   :  { %686 = dma.done.wait [#allocation4], 32  }
 0x11a   :  { %687 = vsyncadd [#allocation4], 4294967264 }
 0x11b   :  { %489 = vsyncpa [#allocation4], 1 }

// kernel: unet_forward.15
= control target key start
LH: loop header
LB: loop body
LE: loop exit
PB: predicated region body
PF: predicated region fallthrough
CT: control target
= control target key end

     0   :  { %s136_s0 = inlined_call_operand.vmem [shape: bf16[32,128], index: 0, kind: input, shape index: {}]   ;;  %s137_s1 = inlined_call_operand.vmem [shape: f32[1,128], index: 1, kind: input, shape index: {}]   ;;  %s138_s2 = inlined_call_operand.vmem [shape: f32[1,128], index: 2, kind: input, shape index: {}]   ;;  %s139_s3 = inlined_call_operand.vmem [shape: bf16[32,128], index: 3, kind: output, shape index: {}]  }
   0x1   :  { %v79_v0 = vld [vmem:[%s136_s0] sm:$0xff]   ;;  %v96_v4 = vld [vmem:[%s136_s0 + $0x8] sm:$0xff]  }
   0x2   :  { %v68_v1 = vld [vmem:[%s137_s1] ss:$0 sm:$0xff]  ;;  %v80_v2 = vunpack.c.l.bf16 %v79_v0  ;;  %v81_v3 = vunpack.c.h.bf16 %v79_v0  ;;  %v84_v6 = vunpack.c.l.bf16 %v96_v4  ;;  %v85_v7 = vunpack.c.h.bf16 %v96_v4 }
   0x3   :  { %v69_v5 = vld [vmem:[%s138_s2] ss:$0 sm:$0xff] }
   0x4   :  { %v29_v8 = vmul.f32 %v80_v2, %v68_v1  ;;  %v30_v9 = vmul.f32 %v81_v3, %v68_v1  ;;  %v31_v10 = vmul.f32 %v84_v6, %v68_v1  ;;  %v32_v11 = vmul.f32 %v85_v7, %v68_v1 }
   0x6   :  { %v40_v12 = vadd.f32 %v69_v5, %v29_v8  ;;  %v41_v13 = vadd.f32 %v69_v5, %v30_v9  ;;  %v42_v14 = vadd.f32 %v69_v5, %v31_v10  ;;  %v43_v15 = vadd.f32 %v69_v5, %v32_v11 }
   0x8   :  { %v89_v16 = vpack.c.bf16 %v41_v13, %v40_v12  ;;  %v94_v17 = vpack.c.bf16 %v43_v15, %v42_v14 }
   0xa   :  { %90 = vst [vmem:[%s139_s3] sm:$0xff] %v89_v16   ;;  %97 = vst [vmem:[%s139_s3 + $0x8] sm:$0xff] %v94_v17  }

// kernel: unet_forward.14
= control target key start
LH: loop header
LB: loop body
LE: loop exit
PB: predicated region body
PF: predicated region fallthrough
CT: control target
= control target key end

     0   :  { %s843_s1 = inlined_call_operand.vmem [shape: bf16[1,128,128], index: 1, kind: input, shape index: {}]   ;;  %s844_s0 = inlined_call_operand.vmem [shape: bf16[1,128,128], index: 0, kind: input, shape index: {}]   ;;  %s845_s2 = inlined_call_operand.vmem [shape: bf16[1,128,128], index: 2, kind: output, shape index: {0}]   ;;  %s846_s3 = inlined_call_operand.vmem [shape: f32[1,2,128], index: 3, kind: output, shape index: {1}]  }
   0x1   :  { %v713_v0 = vld [vmem:[%s843_s1 + $0x38] sm:$0xff]   ;;  %v714_v1 = vld [vmem:[%s843_s1 + $0x30] sm:$0xff]   ;;  %v715_v2 = vld [vmem:[%s843_s1 + $0x28] sm:$0xff]  }
   0x2   :  { %665 = vmatprep.subr.bf16.mxu0 %v713_v0  ;;  %697 = vmatprep.subr.bf16.mxu1 %v713_v0  ;;  %v716_v3 = vld [vmem:[%s843_s1 + $0x20] sm:$0xff]   ;;  %v717_v10 = vld [vmem:[%s843_s1 + $0x18] sm:$0xff]   ;;  %v48_v12 = vld [vmem:[%s844_s0 + $0x8] sm:$0xf] }
   0x3   :  { %666 = vmatpush3.bf16.msra.mxu0 %v713_v0  ;;  %705 = vmatpush3.bf16.msra.mxu1 %v713_v0  ;;  %v46_v4 = vld [vmem:[%s844_s0] sm:$0xf]  ;;  %v47_v5 = vld [vmem:[%s844_s0 + $0x4] sm:$0xf]  ;;  %v718_v14 = vld [vmem:[%s843_s1 + $0x10] sm:$0xff]   ;;  %vm64_vm4 = vcmp.ge.bf16.partialorder %v48_v12, 0 }
   0x4   :  { %667 = vmatprep.subr.bf16.mxu0 %v714_v1  ;;  %698 = vmatprep.subr.bf16.mxu1 %v714_v1  ;;  %vm62_vm0 = vcmp.ge.bf16.partialorder %v46_v4, 0  ;;  %vm63_vm1 = vcmp.ge.bf16.partialorder %v47_v5, 0  ;;  %v78_v6 = vmul.bf16 1045249613, %v46_v4  ;;  %v79_v7 = vmul.bf16 1045249613, %v47_v5 }
   0x5   :  { %v54_v13 = vld [vmem:[%s844_s0 + $0x20] sm:$0xf]  ;;  %v55_v15 = vld [vmem:[%s844_s0 + $0x24] sm:$0xf]  ;;  %v719_v19 = vld [vmem:[%s843_s1 + $0x8] sm:$0xff]  }
   0x6   :  { %v94_v8 = vsel %vm62_vm0, %v46_v4, %v78_v6  ;;  %v95_v9 = vsel %vm63_vm1, %v47_v5, %v79_v7  ;;  %vm70_vm2 = vcmp.ge.bf16.partialorder %v54_v13, 0  ;;  %v86_v16 = vmul.bf16 1045249613, %v54_v13  ;;  %v49_v20 = vld [vmem:[%s844_s0 + $0xc] sm:$0xf]  ;;  %v720_v30 = vld [vmem:[%s843_s1] sm:$0xff]  }
   0x7   :  { %668 = vmatpush3.bf16.msra.mxu0 %v714_v1  ;;  %706 = vmatpush3.bf16.msra.mxu1 %v714_v1  ;;  %v554_v11 = vcombine.low %v94_v8, %v95_v9  ;;  %vm71_vm3 = vcmp.ge.bf16.partialorder %v55_v15, 0  ;;  %v87_v17 = vmul.bf16 1045249613, %v55_v15  ;;  %v50_v21 = vld [vmem:[%s844_s0 + $0x10] sm:$0xf]  ;;  %vm65_vm5 = vcmp.ge.bf16.partialorder %v49_v20, 0 }
   0x8   :  { %669 = vmatprep.subr.bf16.mxu0 %v715_v2  ;;  %699 = vmatprep.subr.bf16.mxu1 %v715_v2  ;;  %v102_v18 = vsel %vm70_vm2, %v54_v13, %v86_v16  ;;  %v51_v23 = vld [vmem:[%s844_s0 + $0x14] sm:$0xf]  ;;  %v56_v25 = vld [vmem:[%s844_s0 + $0x28] sm:$0xf]  ;;  %v57_v26 = vld [vmem:[%s844_s0 + $0x2c] sm:$0xf] }
   0x9   :  { %681 = vmatprep.mubr.bf16.mxu0 %v554_v11  ;;  %v103_v22 = vsel %vm71_vm3, %v55_v15, %v87_v17  ;;  %v80_v27 = vmul.bf16 1045249613, %v48_v12  ;;  %v58_v28 = vld [vmem:[%s844_s0 + $0x30] sm:$0xf]  ;;  %v59_v29 = vld [vmem:[%s844_s0 + $0x34] sm:$0xf] }
   0xa   :  { %v558_v24 = vcombine.low %v102_v18, %v103_v22  ;;  %v81_v31 = vmul.bf16 1045249613, %v49_v20  ;;  %vm66_vm6 = vcmp.ge.bf16.partialorder %v50_v21, 0  ;;  %v82_v32 = vmul.bf16 1045249613, %v50_v21 }
   0xb   :  { %670 = vmatpush3.bf16.msra.mxu0 %v715_v2  ;;  %707 = vmatpush3.bf16.msra.mxu1 %v715_v2  ;;  %v83_v33 = vmul.bf16 1045249613, %v51_v23  ;;  %v88_v34 = vmul.bf16 1045249613, %v56_v25  ;;  %v89_v35 = vmul.bf16 1045249613, %v57_v26  ;;  %v96_v38 = vsel %vm64_vm4, %v48_v12, %v80_v27 }
   0xc   :  { %671 = vmatprep.subr.bf16.mxu0 %v716_v3  ;;  %700 = vmatprep.subr.bf16.mxu1 %v716_v3  ;;  %vm72_vm7 = vcmp.ge.bf16.partialorder %v56_v25, 0  ;;  %vm73_vm8 = vcmp.ge.bf16.partialorder %v57_v26, 0  ;;  %v90_v36 = vmul.bf16 1045249613, %v58_v28  ;;  %v91_v37 = vmul.bf16 1045249613, %v59_v29 }
   0xd   :  { %689 = vmatprep.mubr.bf16.mxu1 %v558_v24  ;;  %vm67_vm9 = vcmp.ge.bf16.partialorder %v51_v23, 0  ;;  %vm74_vm10 = vcmp.ge.bf16.partialorder %v58_v28, 0  ;;  %vm75_vm11 = vcmp.ge.bf16.partialorder %v59_v29, 0  ;;  %v97_v39 = vsel %vm65_vm5, %v49_v20, %v81_v31  ;;  %v52_v41 = vld [vmem:[%s844_s0 + $0x18] sm:$0xf] }
   0xe   :  { %v98_v40 = vsel %vm66_vm6, %v50_v21, %v82_v32  ;;  %v53_v42 = vld [vmem:[%s844_s0 + $0x1c] sm:$0xf]  ;;  %v104_v43 = vsel %vm72_vm7, %v56_v25, %v88_v34  ;;  %v105_v44 = vsel %vm73_vm8, %v57_v26, %v89_v35  ;;  %v99_v45 = vsel %vm67_vm9, %v51_v23, %v83_v33  ;;  %v60_v48 = vld [vmem:[%s844_s0 + $0x38] sm:$0xf] }
   0xf   :  { %672 = vmatpush3.bf16.msra.mxu0 %v716_v3  ;;  %708 = vmatpush3.bf16.msra.mxu1 %v716_v3  ;;  %v106_v46 = vsel %vm74_vm10, %v58_v28, %v90_v36  ;;  %v107_v47 = vsel %vm75_vm11, %v59_v29, %v91_v37  ;;  %v61_v49 = vld [vmem:[%s844_s0 + $0x3c] sm:$0xf]  ;;  %v555_v50 = vcombine.low %v96_v38, %v97_v39  ;;  %vm68_vm12 = vcmp.ge.bf16.partialorder %v52_v41, 0 }
  0x10   :  { %673 = vmatprep.subr.bf16.mxu0 %v717_v10  ;;  %701 = vmatprep.subr.bf16.mxu1 %v717_v10  ;;  %v84_v51 = vmul.bf16 1045249613, %v52_v41  ;;  %v85_v52 = vmul.bf16 1045249613, %v53_v42  ;;  %v559_v53 = vcombine.low %v104_v43, %v105_v44  ;;  %v556_v54 = vcombine.low %v98_v40, %v99_v45 }
  0x11   :  { %v560_v55 = vcombine.low %v106_v46, %v107_v47  ;;  %v92_v56 = vmul.bf16 1045249613, %v60_v48  ;;  %v93_v57 = vmul.bf16 1045249613, %v61_v49  ;;  %vm69_vm13 = vcmp.ge.bf16.partialorder %v53_v42, 0 }
  0x12   :  { %vm76_vm14 = vcmp.ge.bf16.partialorder %v60_v48, 0  ;;  %vm77_vm15 = vcmp.ge.bf16.partialorder %v61_v49, 0  ;;  %v100_v58 = vsel %vm68_vm12, %v52_v41, %v84_v51  ;;  %v101_v59 = vsel %vm69_vm13, %v53_v42, %v85_v52 }
  0x13   :  { %674 = vmatpush3.bf16.msra.mxu0 %v717_v10  ;;  %709 = vmatpush3.bf16.msra.mxu1 %v717_v10  ;;  %v108_v60 = vsel %vm76_vm14, %v60_v48, %v92_v56  ;;  %v109_v61 = vsel %vm77_vm15, %v61_v49, %v93_v57  ;;  %v557_v62 = vcombine.low %v100_v58, %v101_v59  ;;  %vm444_vm0 = vcmask 1040384  }
  0x14   :  { %675 = vmatprep.subr.bf16.mxu0 %v718_v14  ;;  %702 = vmatprep.subr.bf16.mxu1 %v718_v14  ;;  %v561_v63 = vcombine.low %v108_v60, %v109_v61 }
  0x17   :  { %676 = vmatpush3.bf16.msra.mxu0 %v718_v14  ;;  %710 = vmatpush3.bf16.msra.mxu1 %v718_v14 }
  0x18   :  { %677 = vmatprep.subr.bf16.mxu0 %v719_v19  ;;  %703 = vmatprep.subr.bf16.mxu1 %v719_v19 }
  0x1b   :  { %678 = vmatpush3.bf16.msra.mxu0 %v719_v19  ;;  %711 = vmatpush3.bf16.msra.mxu1 %v719_v19 }
  0x1c   :  { %679 = vmatprep.subr.bf16.mxu0 %v720_v30  ;;  %704 = vmatprep.subr.bf16.mxu1 %v720_v30 }
  0x1f   :  { %680 = vmatpush3.bf16.msra.mxu0 %v720_v30  ;;  %712 = vmatpush3.bf16.msra.mxu1 %v720_v30 }
  0x22   :  { %682 = vmatmul.mubr.bf16.vlgmr.msra.gmra.mxu0 %v555_v50  ;;  %690 = vmatmul.mubr.bf16.vlgmr.msra.gmra.mxu1 %v559_v53 }
  0x23   :  { %685 = vmatprep.mubr.bf16.mxu0 %v556_v54  ;;  %693 = vmatprep.mubr.bf16.mxu1 %v560_v55 }
  0x2a   :  { %686 = vmatmul.mubr.bf16.gmra.mxu0 %v557_v62  ;;  %694 = vmatmul.mubr.bf16.gmra.mxu1 %v561_v63 }
  0xe2   :  { %v683_v0 = vpop.f32.mrf.mxu0  ;;  %v691_v1 = vpop.f32.mrf.mxu1 }
  0xe3   :  { %v409_v17 = vmul.f32 %v683_v0, %v683_v0  ;;  %v417_v51 = vmul.f32 %v691_v1, %v691_v1 }
  0xe4   :  { %v272_v2 = vpop.f32.mrf.mxu0  ;;  %v304_v3 = vpop.f32.mrf.mxu1 }
  0xe5   :  { %v407_v10 = vmul.f32 %v272_v2, %v272_v2  ;;  %v415_v45 = vmul.f32 %v304_v3, %v304_v3 }
  0xe6   :  { %v684_v4 = vpop.f32.mrf.mxu0  ;;  %v692_v5 = vpop.f32.mrf.mxu1 }
  0xe7   :  { %v610_v6 = vpack.c.bf16 %v684_v4, %v683_v0  ;;  %v630_v7 = vpack.c.bf16 %v692_v5, %v691_v1  ;;  %v410_v22 = vmul.f32 %v684_v4, %v684_v4  ;;  %v418_v54 = vmul.f32 %v692_v5, %v692_v5 }
  0xe8   :  { %v275_v8 = vpop.f32.mrf.mxu0  ;;  %v307_v9 = vpop.f32.mrf.mxu1 }
  0xe9   :  { %642 = vst [vmem:[%s845_s2 + $0x8] sm:$0xff] %v610_v6   ;;  %v386_v11 = vadd.f32 %v275_v8, %v272_v2  ;;  %v408_v12 = vmul.f32 %v275_v8, %v275_v8  ;;  %v605_v13 = vpack.c.bf16 %v275_v8, %v272_v2  ;;  %646 = vst [vmem:[%s845_s2 + $0x28] sm:$0xff] %v630_v7  }
  0xea   :  { %v687_v14 = vpop.f32.mrf.mxu0  ;;  %v625_v15 = vpack.c.bf16 %v307_v9, %v304_v3  ;;  %v695_v16 = vpop.f32.mrf.mxu1  ;;  %v416_v49 = vmul.f32 %v307_v9, %v307_v9 }
  0xeb   :  { %v387_v18 = vadd.f32 %v683_v0, %v386_v11  ;;  %v423_v19 = vadd.f32 %v408_v12, %v407_v10  ;;  %606 = vst [vmem:[%s845_s2] sm:$0xff] %v605_v13   ;;  %v413_v39 = vmul.f32 %v687_v14, %v687_v14  ;;  %v421_v63 = vmul.f32 %v695_v16, %v695_v16 }
  0xec   :  { %v288_v20 = vpop.f32.mrf.mxu0  ;;  %645 = vst [vmem:[%s845_s2 + $0x20] sm:$0xff] %v625_v15   ;;  %v320_v21 = vpop.f32.mrf.mxu1 }
  0xed   :  { %v424_v23 = vadd.f32 %v423_v19, %v409_v17  ;;  %v388_v24 = vadd.f32 %v684_v4, %v387_v18  ;;  %v411_v28 = vmul.f32 %v288_v20, %v288_v20  ;;  %v419_v58 = vmul.f32 %v320_v21, %v320_v21 }
  0xee   :  { %v688_v25 = vpop.f32.mrf.mxu0  ;;  %v696_v26 = vpop.f32.mrf.mxu1 }
  0xef   :  { %v389_v27 = vadd.f32 %v388_v24, %v288_v20  ;;  %v425_v29 = vadd.f32 %v424_v23, %v410_v22  ;;  %v620_v30 = vpack.c.bf16 %v688_v25, %v687_v14  ;;  %v640_v32 = vpack.c.bf16 %v696_v26, %v695_v16 }
  0xf0   :  { %v291_v31 = vpop.f32.mrf.mxu0  ;;  %v323_v33 = vpop.f32.mrf.mxu1  ;;  %v414_v42 = vmul.f32 %v688_v25, %v688_v25  ;;  %v422_v4 = vmul.f32 %v696_v26, %v696_v26 }
  0xf1   :  { %v426_v34 = vadd.f32 %v425_v29, %v411_v28  ;;  %644 = vst [vmem:[%s845_s2 + $0x18] sm:$0xff] %v620_v30   ;;  %v390_v35 = vadd.f32 %v389_v27, %v291_v31  ;;  %v412_v36 = vmul.f32 %v291_v31, %v291_v31  ;;  %v615_v37 = vpack.c.bf16 %v291_v31, %v288_v20 }
  0xf2   :  { %648 = vst [vmem:[%s845_s2 + $0x38] sm:$0xff] %v640_v32   ;;  %v635_v38 = vpack.c.bf16 %v323_v33, %v320_v21  ;;  %v420_v62 = vmul.f32 %v323_v33, %v323_v33 }
  0xf3   :  { %v391_v40 = vadd.f32 %v687_v14, %v390_v35  ;;  %v427_v41 = vadd.f32 %v426_v34, %v412_v36  ;;  %643 = vst [vmem:[%s845_s2 + $0x10] sm:$0xff] %v615_v37  }
  0xf4   :  { %647 = vst [vmem:[%s845_s2 + $0x30] sm:$0xff] %v635_v38  }
  0xf5   :  { %v392_v43 = vadd.f32 %v688_v25, %v391_v40  ;;  %v428_v44 = vadd.f32 %v427_v41, %v413_v39 }
  0xf7   :  { %v429_v46 = vadd.f32 %v428_v44, %v414_v42  ;;  %v393_v47 = vadd.f32 %v392_v43, %v304_v3 }
  0xf9   :  { %v394_v48 = vadd.f32 %v393_v47, %v307_v9  ;;  %v430_v50 = vadd.f32 %v429_v46, %v415_v45 }
  0xfb   :  { %v395_v52 = vadd.f32 %v691_v1, %v394_v48  ;;  %v431_v53 = vadd.f32 %v430_v50, %v416_v49 }
  0xfd   :  { %v432_v55 = vadd.f32 %v431_v53, %v417_v51  ;;  %v396_v56 = vadd.f32 %v692_v5, %v395_v52 }
  0xff   :  { %v397_v57 = vadd.f32 %v396_v56, %v320_v21  ;;  %v433_v59 = vadd.f32 %v432_v55, %v418_v54 }
 0x101   :  { %v434_v60 = vadd.f32 %v433_v59, %v419_v58  ;;  %v398_v61 = vadd.f32 %v397_v57, %v323_v33 }
 0x103   :  { %v399_v0 = vadd.f32 %v695_v16, %v398_v61  ;;  %v435_v2 = vadd.f32 %v434_v60, %v420_v62 }
 0x105   :  { %v400_v3 = vadd.f32 %v696_v26, %v399_v0  ;;  %v436_v6 = vadd.f32 %v435_v2, %v421_v63 }
 0x107   :  { %v401_v7 = vrot.slane %v400_v3, 4  ;;  %v437_v8 = vadd.f32 %v436_v6, %v422_v4 }
 0x109   :  { %v402_v9 = vadd.f32 %v401_v7, %v400_v3  ;;  %v438_v1 = vrot.slane %v437_v8, 4 }
 0x10b   :  { %v403_v10 = vrot.slane %v402_v9, 2  ;;  %v439_v11 = vadd.f32 %v438_v1, %v437_v8 }
 0x10d   :  { %v404_v12 = vadd.f32 %v403_v10, %v402_v9  ;;  %v440_v5 = vrot.slane %v439_v11, 2 }
 0x10f   :  { %v405_v13 = vrot.slane %v404_v12, 1  ;;  %v441_v14 = vadd.f32 %v440_v5, %v439_v11 }
 0x111   :  { %v442_v15 = vrot.slane %v441_v14, 1  ;;  %v406_v17 = vadd.f32 %v405_v13, %v404_v12 }
 0x113   :  { %v443_v18 = vadd.f32 %v442_v15, %v441_v14 }
 0x115   :  { %v445_v19 = vsel %vm444_vm0, %v406_v17, %v443_v18 }
 0x116   :  { %446 = vst [vmem:[%s846_s3] sm:$0x3] %v445_v19 }

// kernel: unet_forward.16
= control target key start
LH: loop header
LB: loop body
LE: loop exit
PB: predicated region body
PF: predicated region fallthrough
CT: control target
= control target key end

     0   :  { %s1024_s1 = inlined_call_operand.vmem [shape: bf16[1,256,128], index: 1, kind: input, shape index: {}]   ;;  %s1025_s0 = inlined_call_operand.vmem [shape: bf16[1,128,256], index: 0, kind: input, shape index: {}]   ;;  %s1026_s2 = inlined_call_operand.vmem [shape: bf16[1,128,128], index: 2, kind: output, shape index: {0}]   ;;  %s1027_s3 = inlined_call_operand.vmem [shape: f32[1,2,128], index: 3, kind: output, shape index: {1}]  }
   0x1   :  { %v841_v0 = vld [vmem:[%s1024_s1 + $0x78] sm:$0xff]   ;;  %v843_v2 = vld [vmem:[%s1024_s1 + $0x70] sm:$0xff]   ;;  %v845_v4 = vld [vmem:[%s1024_s1 + $0x68] sm:$0xff]  }
   0x2   :  { %v842_v1 = vld [vmem:[%s1024_s1 + $0x38] sm:$0xff]   ;;  %761 = vmatprep.subr.bf16.mxu0 %v841_v0  ;;  %825 = vmatprep.subr.bf16.mxu1 %v841_v0  ;;  %v844_v3 = vld [vmem:[%s1024_s1 + $0x30] sm:$0xff]   ;;  %v846_v5 = vld [vmem:[%s1024_s1 + $0x28] sm:$0xff]  }
   0x3   :  { %762 = vmatpush3.bf16.msra.mxu0 %v842_v1  ;;  %833 = vmatpush3.bf16.msra.mxu1 %v842_v1  ;;  %v847_v6 = vld [vmem:[%s1024_s1 + $0x60] sm:$0xff]   ;;  %v849_v8 = vld [vmem:[%s1024_s1 + $0x58] sm:$0xff]   ;;  %v851_v10 = vld [vmem:[%s1024_s1 + $0x50] sm:$0xff]  }
   0x4   :  { %763 = vmatprep.subr.bf16.mxu0 %v843_v2  ;;  %826 = vmatprep.subr.bf16.mxu1 %v843_v2  ;;  %v848_v7 = vld [vmem:[%s1024_s1 + $0x20] sm:$0xff]   ;;  %v850_v9 = vld [vmem:[%s1024_s1 + $0x18] sm:$0xff]   ;;  %v47_v12 = vld [vmem:[%s1025_s0 + $0x8] sm:$0xff] }
   0x5   :  { %v46_v11 = vld [vmem:[%s1025_s0] sm:$0xff]  ;;  %vm63_vm1 = vcmp.ge.bf16.partialorder %v47_v12, 0  ;;  %v79_v14 = vmul.bf16 1045249613, %v47_v12  ;;  %v55_v16 = vld [vmem:[%s1025_s0 + $0x48] sm:$0xff]  ;;  %v852_v17 = vld [vmem:[%s1024_s1 + $0x10] sm:$0xff]  }
   0x6   :  { %vm62_vm0 = vcmp.ge.bf16.partialorder %v46_v11, 0  ;;  %v78_v13 = vmul.bf16 1045249613, %v46_v11  ;;  %v54_v15 = vld [vmem:[%s1025_s0 + $0x40] sm:$0xff]  ;;  %v853_v20 = vld [vmem:[%s1024_s1 + $0x48] sm:$0xff]   ;;  %v48_v22 = vld [vmem:[%s1025_s0 + $0x10] sm:$0xff] }
   0x7   :  { %764 = vmatpush3.bf16.msra.mxu0 %v844_v3  ;;  %834 = vmatpush3.bf16.msra.mxu1 %v844_v3  ;;  %v95_v19 = vsel %vm63_vm1, %v47_v12, %v79_v14  ;;  %vm70_vm2 = vcmp.ge.bf16.partialorder %v54_v15, 0  ;;  %v49_v23 = vld [vmem:[%s1025_s0 + $0x18] sm:$0xff]  ;;  %vm71_vm3 = vcmp.ge.bf16.partialorder %v55_v16, 0  ;;  %v86_v24 = vmul.bf16 1045249613, %v54_v15  ;;  %v56_v26 = vld [vmem:[%s1025_s0 + $0x50] sm:$0xff] }
   0x8   :  { %765 = vmatprep.subr.bf16.mxu0 %v845_v4  ;;  %827 = vmatprep.subr.bf16.mxu1 %v845_v4  ;;  %v94_v18 = vsel %vm62_vm0, %v46_v11, %v78_v13  ;;  %v87_v25 = vmul.bf16 1045249613, %v55_v16  ;;  %v57_v27 = vld [vmem:[%s1025_s0 + $0x58] sm:$0xff]  ;;  %v854_v28 = vld [vmem:[%s1024_s1 + $0x8] sm:$0xff]   ;;  %v80_v29 = vmul.bf16 1045249613, %v48_v22 }
   0x9   :  { %v651_v21 = vcombine.high %v94_v18, %v95_v19  ;;  %v102_v30 = vsel %vm70_vm2, %v54_v15, %v86_v24  ;;  %v855_v32 = vld [vmem:[%s1024_s1 + $0x40] sm:$0xff]   ;;  %vm64_vm4 = vcmp.ge.bf16.partialorder %v48_v22, 0  ;;  %vm65_vm5 = vcmp.ge.bf16.partialorder %v49_v23, 0  ;;  %v51_v43 = vld [vmem:[%s1025_s0 + $0x28] sm:$0xff]  ;;  %v52_v56 = vld [vmem:[%s1025_s0 + $0x30] sm:$0xff] }
   0xa   :  { %v103_v31 = vsel %vm71_vm3, %v55_v16, %v87_v25  ;;  %v81_v33 = vmul.bf16 1045249613, %v49_v23  ;;  %vm72_vm6 = vcmp.ge.bf16.partialorder %v56_v26, 0  ;;  %vm73_vm7 = vcmp.ge.bf16.partialorder %v57_v27, 0  ;;  %v856_v37 = vld [vmem:[%s1024_s1] sm:$0xff]   ;;  %v59_v45 = vld [vmem:[%s1025_s0 + $0x68] sm:$0xff] }
   0xb   :  { %766 = vmatpush3.bf16.msra.mxu0 %v846_v5  ;;  %835 = vmatpush3.bf16.msra.mxu1 %v846_v5  ;;  %v659_v34 = vcombine.high %v102_v30, %v103_v31  ;;  %v88_v35 = vmul.bf16 1045249613, %v56_v26  ;;  %v89_v36 = vmul.bf16 1045249613, %v57_v27  ;;  %v96_v38 = vsel %vm64_vm4, %v48_v22, %v80_v29  ;;  %v50_v40 = vld [vmem:[%s1025_s0 + $0x20] sm:$0xff]  ;;  %v53_v59 = vld [vmem:[%s1025_s0 + $0x38] sm:$0xff] }
   0xc   :  { %767 = vmatprep.subr.bf16.mxu0 %v847_v6  ;;  %828 = vmatprep.subr.bf16.mxu1 %v847_v6  ;;  %v97_v39 = vsel %vm65_vm5, %v49_v23, %v81_v33  ;;  %v58_v44 = vld [vmem:[%s1025_s0 + $0x60] sm:$0xff]  ;;  %v650_v46 = vcombine.low %v94_v18, %v95_v19  ;;  %v658_v47 = vcombine.low %v102_v30, %v103_v31  ;;  %v82_v49 = vmul.bf16 1045249613, %v50_v40  ;;  %v60_v60 = vld [vmem:[%s1025_s0 + $0x70] sm:$0xff]  ;;  %v61_v61 = vld [vmem:[%s1025_s0 + $0x78] sm:$0xff] }
   0xd   :  { %366 = vmatprep.mubr.bf16.mxu0 %v651_v21  ;;  %398 = vmatprep.mubr.bf16.mxu1 %v659_v34  ;;  %v104_v41 = vsel %vm72_vm6, %v56_v26, %v88_v35  ;;  %v105_v42 = vsel %vm73_vm7, %v57_v27, %v89_v36  ;;  %v653_v48 = vcombine.high %v96_v38, %v97_v39  ;;  %v83_v51 = vmul.bf16 1045249613, %v51_v43 }
   0xe   :  { %v661_v50 = vcombine.high %v104_v41, %v105_v42  ;;  %v90_v52 = vmul.bf16 1045249613, %v58_v44  ;;  %v91_v53 = vmul.bf16 1045249613, %v59_v45  ;;  %vm66_vm8 = vcmp.ge.bf16.partialorder %v50_v40, 0 }
   0xf   :  { %768 = vmatpush3.bf16.msra.mxu0 %v848_v7  ;;  %836 = vmatpush3.bf16.msra.mxu1 %v848_v7  ;;  %vm67_vm9 = vcmp.ge.bf16.partialorder %v51_v43, 0  ;;  %vm74_vm10 = vcmp.ge.bf16.partialorder %v58_v44, 0  ;;  %vm75_vm11 = vcmp.ge.bf16.partialorder %v59_v45, 0  ;;  %v98_v54 = vsel %vm66_vm8, %v50_v40, %v82_v49 }
  0x10   :  { %769 = vmatprep.subr.bf16.mxu0 %v849_v8  ;;  %829 = vmatprep.subr.bf16.mxu1 %v849_v8  ;;  %v99_v55 = vsel %vm67_vm9, %v51_v43, %v83_v51  ;;  %v106_v57 = vsel %vm74_vm10, %v58_v44, %v90_v52  ;;  %v107_v58 = vsel %vm75_vm11, %v59_v45, %v91_v53  ;;  %v84_v1 = vmul.bf16 1045249613, %v52_v56 }
  0x11   :  { %v652_v62 = vcombine.low %v96_v38, %v97_v39  ;;  %v660_v63 = vcombine.low %v104_v41, %v105_v42  ;;  %v655_v0 = vcombine.high %v98_v54, %v99_v55  ;;  %v663_v2 = vcombine.high %v106_v57, %v107_v58 }
  0x12   :  { %v85_v3 = vmul.bf16 1045249613, %v53_v59  ;;  %v92_v4 = vmul.bf16 1045249613, %v60_v60  ;;  %v93_v5 = vmul.bf16 1045249613, %v61_v61  ;;  %v662_v11 = vcombine.low %v106_v57, %v107_v58 }
  0x13   :  { %770 = vmatpush3.bf16.msra.mxu0 %v850_v9  ;;  %837 = vmatpush3.bf16.msra.mxu1 %v850_v9  ;;  %vm68_vm12 = vcmp.ge.bf16.partialorder %v52_v56, 0  ;;  %vm69_vm13 = vcmp.ge.bf16.partialorder %v53_v59, 0  ;;  %vm76_vm14 = vcmp.ge.bf16.partialorder %v60_v60, 0  ;;  %vm77_vm15 = vcmp.ge.bf16.partialorder %v61_v61, 0 }
  0x14   :  { %771 = vmatprep.subr.bf16.mxu0 %v851_v10  ;;  %830 = vmatprep.subr.bf16.mxu1 %v851_v10  ;;  %v100_v6 = vsel %vm68_vm12, %v52_v56, %v84_v1  ;;  %v101_v7 = vsel %vm69_vm13, %v53_v59, %v85_v3  ;;  %v108_v8 = vsel %vm76_vm14, %v60_v60, %v92_v4  ;;  %vm540_vm0 = vcmask 1040384  }
  0x15   :  { %v109_v9 = vsel %vm77_vm15, %v61_v61, %v93_v5  ;;  %v654_v10 = vcombine.low %v98_v54, %v99_v55  ;;  %v657_v12 = vcombine.high %v100_v6, %v101_v7  ;;  %v656_v14 = vcombine.low %v100_v6, %v101_v7 }
  0x16   :  { %v665_v13 = vcombine.high %v108_v8, %v109_v9  ;;  %v664_v15 = vcombine.low %v108_v8, %v109_v9 }
  0x17   :  { %772 = vmatpush3.bf16.msra.mxu0 %v852_v17  ;;  %838 = vmatpush3.bf16.msra.mxu1 %v852_v17 }
  0x18   :  { %773 = vmatprep.subr.bf16.mxu0 %v853_v20  ;;  %831 = vmatprep.subr.bf16.mxu1 %v853_v20 }
  0x1b   :  { %774 = vmatpush3.bf16.msra.mxu0 %v854_v28  ;;  %839 = vmatpush3.bf16.msra.mxu1 %v854_v28 }
  0x1c   :  { %775 = vmatprep.subr.bf16.mxu0 %v855_v32  ;;  %832 = vmatprep.subr.bf16.mxu1 %v855_v32 }
  0x1f   :  { %776 = vmatpush3.bf16.msra.mxu0 %v856_v37  ;;  %840 = vmatpush3.bf16.msra.mxu1 %v856_v37 }
  0x22   :  { %367 = vmatmul.mubr.bf16.vlgmr.msra.gmra.mxu0 %v650_v46  ;;  %399 = vmatmul.mubr.bf16.vlgmr.msra.gmra.mxu1 %v658_v47 }
  0x23   :  { %374 = vmatprep.mubr.bf16.mxu0 %v653_v48  ;;  %406 = vmatprep.mubr.bf16.mxu1 %v661_v50 }
  0x2a   :  { %375 = vmatmul.mubr.bf16.gmra.mxu0 %v652_v62  ;;  %407 = vmatmul.mubr.bf16.gmra.mxu1 %v660_v63 }
  0x2b   :  { %382 = vmatprep.mubr.bf16.mxu0 %v655_v0  ;;  %414 = vmatprep.mubr.bf16.mxu1 %v663_v2 }
  0x32   :  { %383 = vmatmul.mubr.bf16.gmra.mxu0 %v654_v10  ;;  %415 = vmatmul.mubr.bf16.gmra.mxu1 %v662_v11 }
  0x33   :  { %390 = vmatprep.mubr.bf16.mxu0 %v657_v12  ;;  %422 = vmatprep.mubr.bf16.mxu1 %v665_v13 }
  0x3a   :  { %391 = vmatmul.mubr.bf16.gmra.mxu0 %v656_v14  ;;  %423 = vmatmul.mubr.bf16.gmra.mxu1 %v664_v15 }
  0xe2   :  { %v777_v16 = vpop.f32.mrf.mxu0  ;;  %v801_v17 = vpop.f32.mrf.mxu1 }
  0xe4   :  { %v778_v18 = vpop.f32.mrf.mxu0  ;;  %v802_v19 = vpop.f32.mrf.mxu1 }
  0xe5   :  { %v973_v23 = vadd.f32 %v802_v19, %v801_v17  ;;  %v779_v25 = vadd.f32 %v778_v18, %v777_v16 }
  0xe6   :  { %v780_v20 = vpop.f32.mrf.mxu0  ;;  %v804_v21 = vpop.f32.mrf.mxu1 }
  0xe7   :  { %v503_v49 = vmul.f32 %v779_v25, %v779_v25 }
  0xe8   :  { %v781_v22 = vpop.f32.mrf.mxu0  ;;  %v805_v24 = vpop.f32.mrf.mxu1 }
  0xe9   :  { %v782_v26 = vadd.f32 %v781_v22, %v780_v20  ;;  %v975_v27 = vadd.f32 %v805_v24, %v804_v21 }
  0xea   :  { %v783_v28 = vpop.f32.mrf.mxu0  ;;  %v807_v29 = vpop.f32.mrf.mxu1 }
  0xeb   :  { %v717_v30 = vpack.c.bf16 %v782_v26, %v779_v25  ;;  %v737_v32 = vpack.c.bf16 %v975_v27, %v973_v23  ;;  %v504_v45 = vmul.f32 %v782_v26, %v782_v26  ;;  %v482_v52 = vadd.f32 %v782_v26, %v779_v25 }
  0xec   :  { %v784_v31 = vpop.f32.mrf.mxu0  ;;  %v808_v33 = vpop.f32.mrf.mxu1 }
  0xed   :  { %718 = vst [vmem:[%s1026_s2] sm:$0xff] %v717_v30   ;;  %757 = vst [vmem:[%s1026_s2 + $0x20] sm:$0xff] %v737_v32   ;;  %v985_v37 = vadd.f32 %v808_v33, %v807_v29  ;;  %v785_v39 = vadd.f32 %v784_v31, %v783_v28  ;;  %v519_v55 = vadd.f32 %v504_v45, %v503_v49 }
  0xee   :  { %v786_v34 = vpop.f32.mrf.mxu0  ;;  %v810_v35 = vpop.f32.mrf.mxu1  ;;  %v511_v31 = vmul.f32 %v973_v23, %v973_v23 }
  0xef   :  { %v505_v53 = vmul.f32 %v785_v39, %v785_v39  ;;  %v483_v59 = vadd.f32 %v785_v39, %v482_v52 }
  0xf0   :  { %v787_v36 = vpop.f32.mrf.mxu0  ;;  %v811_v38 = vpop.f32.mrf.mxu1 }
  0xf1   :  { %v788_v40 = vadd.f32 %v787_v36, %v786_v34  ;;  %v987_v41 = vadd.f32 %v811_v38, %v810_v35  ;;  %v520_v1 = vadd.f32 %v519_v55, %v505_v53  ;;  %v512_v34 = vmul.f32 %v975_v27, %v975_v27 }
  0xf2   :  { %v789_v42 = vpop.f32.mrf.mxu0  ;;  %v813_v43 = vpop.f32.mrf.mxu1  ;;  %v513_v38 = vmul.f32 %v985_v37, %v985_v37 }
  0xf3   :  { %v722_v44 = vpack.c.bf16 %v788_v40, %v785_v39  ;;  %v742_v47 = vpack.c.bf16 %v987_v41, %v985_v37  ;;  %v506_v60 = vmul.f32 %v788_v40, %v788_v40  ;;  %v484_v2 = vadd.f32 %v788_v40, %v483_v59 }
  0xf4   :  { %v790_v46 = vpop.f32.mrf.mxu0  ;;  %v814_v48 = vpop.f32.mrf.mxu1  ;;  %v514_v40 = vmul.f32 %v987_v41, %v987_v41 }
  0xf5   :  { %754 = vst [vmem:[%s1026_s2 + $0x8] sm:$0xff] %v722_v44   ;;  %758 = vst [vmem:[%s1026_s2 + $0x28] sm:$0xff] %v742_v47   ;;  %v791_v54 = vadd.f32 %v790_v46, %v789_v42  ;;  %v815_v57 = vadd.f32 %v814_v48, %v813_v43  ;;  %v521_v8 = vadd.f32 %v520_v1, %v506_v60 }
  0xf6   :  { %v792_v50 = vpop.f32.mrf.mxu0  ;;  %v816_v51 = vpop.f32.mrf.mxu1 }
  0xf7   :  { %v507_v3 = vmul.f32 %v791_v54, %v791_v54  ;;  %v485_v9 = vadd.f32 %v791_v54, %v484_v2  ;;  %v515_v44 = vmul.f32 %v815_v57, %v815_v57 }
  0xf8   :  { %v793_v56 = vpop.f32.mrf.mxu0  ;;  %v817_v58 = vpop.f32.mrf.mxu1 }
  0xf9   :  { %v794_v61 = vadd.f32 %v793_v56, %v792_v50  ;;  %v818_v62 = vadd.f32 %v817_v58, %v816_v51  ;;  %v522_v14 = vadd.f32 %v521_v8, %v507_v3 }
  0xfa   :  { %v795_v63 = vpop.f32.mrf.mxu0  ;;  %v819_v0 = vpop.f32.mrf.mxu1 }
  0xfb   :  { %v727_v4 = vpack.c.bf16 %v794_v61, %v791_v54  ;;  %v747_v6 = vpack.c.bf16 %v818_v62, %v815_v57  ;;  %v508_v10 = vmul.f32 %v794_v61, %v794_v61  ;;  %v486_v15 = vadd.f32 %v794_v61, %v485_v9 }
  0xfc   :  { %v796_v5 = vpop.f32.mrf.mxu0  ;;  %v820_v7 = vpop.f32.mrf.mxu1  ;;  %v516_v48 = vmul.f32 %v818_v62, %v818_v62 }
  0xfd   :  { %755 = vst [vmem:[%s1026_s2 + $0x10] sm:$0xff] %v727_v4   ;;  %v797_v11 = vadd.f32 %v796_v5, %v795_v63  ;;  %759 = vst [vmem:[%s1026_s2 + $0x30] sm:$0xff] %v747_v6   ;;  %v821_v18 = vadd.f32 %v820_v7, %v819_v0  ;;  %v523_v20 = vadd.f32 %v522_v14, %v508_v10 }
  0xfe   :  { %v798_v12 = vpop.f32.mrf.mxu0  ;;  %v822_v13 = vpop.f32.mrf.mxu1 }
  0xff   :  { %v509_v16 = vmul.f32 %v797_v11, %v797_v11  ;;  %v487_v21 = vadd.f32 %v797_v11, %v486_v15  ;;  %v517_v51 = vmul.f32 %v821_v18, %v821_v18 }
 0x100   :  { %v799_v17 = vpop.f32.mrf.mxu0  ;;  %v823_v19 = vpop.f32.mrf.mxu1 }
 0x101   :  { %v800_v22 = vadd.f32 %v799_v17, %v798_v12  ;;  %v824_v24 = vadd.f32 %v823_v19, %v822_v13  ;;  %v524_v25 = vadd.f32 %v523_v20, %v509_v16 }
 0x103   :  { %v488_v26 = vadd.f32 %v800_v22, %v487_v21  ;;  %v510_v28 = vmul.f32 %v800_v22, %v800_v22  ;;  %v732_v29 = vpack.c.bf16 %v800_v22, %v797_v11  ;;  %v752_v30 = vpack.c.bf16 %v824_v24, %v821_v18 }
 0x104   :  { %v518_v54 = vmul.f32 %v824_v24, %v824_v24 }
 0x105   :  { %v489_v32 = vadd.f32 %v973_v23, %v488_v26  ;;  %v525_v33 = vadd.f32 %v524_v25, %v510_v28  ;;  %756 = vst [vmem:[%s1026_s2 + $0x18] sm:$0xff] %v732_v29   ;;  %760 = vst [vmem:[%s1026_s2 + $0x38] sm:$0xff] %v752_v30  }
 0x107   :  { %v490_v35 = vadd.f32 %v975_v27, %v489_v32  ;;  %v526_v36 = vadd.f32 %v525_v33, %v511_v31 }
 0x109   :  { %v527_v39 = vadd.f32 %v526_v36, %v512_v34  ;;  %v491_v23 = vadd.f32 %v985_v37, %v490_v35 }
 0x10b   :  { %v492_v42 = vadd.f32 %v987_v41, %v491_v23  ;;  %v528_v43 = vadd.f32 %v527_v39, %v513_v38 }
 0x10d   :  { %v493_v45 = vadd.f32 %v815_v57, %v492_v42  ;;  %v529_v46 = vadd.f32 %v528_v43, %v514_v40 }
 0x10f   :  { %v494_v47 = vadd.f32 %v818_v62, %v493_v45  ;;  %v530_v49 = vadd.f32 %v529_v46, %v515_v44 }
 0x111   :  { %v531_v27 = vadd.f32 %v530_v49, %v516_v48  ;;  %v495_v50 = vadd.f32 %v821_v18, %v494_v47 }
 0x113   :  { %v532_v52 = vadd.f32 %v531_v27, %v517_v51  ;;  %v496_v53 = vadd.f32 %v824_v24, %v495_v50 }
 0x115   :  { %v497_v55 = vrot.slane %v496_v53, 4  ;;  %v533_v37 = vadd.f32 %v532_v52, %v518_v54 }
 0x117   :  { %v498_v56 = vadd.f32 %v497_v55, %v496_v53  ;;  %v534_v58 = vrot.slane %v533_v37, 4 }
 0x119   :  { %v499_v59 = vrot.slane %v498_v56, 2  ;;  %v535_v60 = vadd.f32 %v534_v58, %v533_v37 }
 0x11b   :  { %v500_v41 = vadd.f32 %v499_v59, %v498_v56  ;;  %v536_v61 = vrot.slane %v535_v60, 2 }
 0x11d   :  { %v501_v63 = vrot.slane %v500_v41, 1  ;;  %v537_v57 = vadd.f32 %v536_v61, %v535_v60 }
 0x11f   :  { %v538_v0 = vrot.slane %v537_v57, 1  ;;  %v502_v62 = vadd.f32 %v501_v63, %v500_v41 }
 0x121   :  { %v539_v1 = vadd.f32 %v538_v0, %v537_v57 }
 0x123   :  { %v541_v2 = vsel %vm540_vm0, %v502_v62, %v539_v1 }
 0x124   :  { %542 = vst [vmem:[%s1027_s3] sm:$0x3] %v541_v2 }

// kernel: unet_forward.17
= control target key start
LH: loop header
LB: loop body
LE: loop exit
PB: predicated region body
PF: predicated region fallthrough
CT: control target
= control target key end

     0   :  { %s72_s0 = inlined_call_operand.vmem [shape: bf16[8,128], index: 0, kind: input, shape index: {}]   ;;  %s73_s1 = inlined_call_operand.vmem [shape: f32[1,128], index: 1, kind: input, shape index: {}]   ;;  %s74_s2 = inlined_call_operand.vmem [shape: f32[1,128], index: 2, kind: input, shape index: {}]   ;;  %s75_s3 = inlined_call_operand.vmem [shape: bf16[8,128], index: 3, kind: output, shape index: {}]  }
   0x1   :  { %v14_v0 = vld [vmem:[%s72_s0] sm:$0xf] }
   0x2   :  { %v38_v1 = vld [vmem:[%s73_s1] ss:$0 sm:$0xff]  ;;  %v15_v2 = vunpack.c.l.bf16 %v14_v0 }
   0x3   :  { %v39_v3 = vld [vmem:[%s74_s2] ss:$0 sm:$0xff] }
   0x4   :  { %v23_v4 = vmul.f32 %v38_v1, %v15_v2 }
   0x6   :  { %v31_v5 = vadd.f32 %v39_v3, %v23_v4 }
   0x8   :  { %v32_v6 = vpack.c.bf16 %v31_v5, %v31_v5 }
   0xa   :  { %33 = vst [vmem:[%s75_s3] sm:$0xf] %v32_v6 }

// kernel: unet_forward.18
= control target key start
LH: loop header
LB: loop body
LE: loop exit
PB: predicated region body
PF: predicated region fallthrough
CT: control target
= control target key end

     0   :  { %s1582_s0 = inlined_call_operand.vmem [shape: bf16[1,128,512], index: 0, kind: input, shape index: {}]   ;;  %s1583_s1 = inlined_call_operand.vmem [shape: bf16[1,512,128], index: 1, kind: input, shape index: {}]   ;;  %s1584_s2 = inlined_call_operand.vmem [shape: bf16[1,128,128], index: 2, kind: output, shape index: {0}]   ;;  %s1585_s3 = inlined_call_operand.hbm [shape: f32[1,2,128], index: 3, kind: output, shape index: {1}]  }
   0x1   :  { %v1276_v0 = vld [vmem:[%s1583_s1 + $0x78] sm:$0xff]   ;;  %v1280_v4 = vld [vmem:[%s1583_s1 + $0x70] sm:$0xff]   ;;  %v1284_v8 = vld [vmem:[%s1583_s1 + $0x68] sm:$0xff]  }
   0x2   :  { %v1277_v1 = vld [vmem:[%s1583_s1 + $0xf8] sm:$0xff]   ;;  %1147 = vmatprep.subr.bf16.mxu0 %v1276_v0  ;;  %v1281_v5 = vld [vmem:[%s1583_s1 + $0xf0] sm:$0xff]   ;;  %v1285_v9 = vld [vmem:[%s1583_s1 + $0xe8] sm:$0xff]  }
   0x3   :  { %v1278_v2 = vld [vmem:[%s1583_s1 + $0x38] sm:$0xff]   ;;  %1211 = vmatprep.subr.bf16.mxu1 %v1277_v1  ;;  %v1282_v6 = vld [vmem:[%s1583_s1 + $0x30] sm:$0xff]   ;;  %v1286_v10 = vld [vmem:[%s1583_s1 + $0x28] sm:$0xff]  }
   0x4   :  { %v1279_v3 = vld [vmem:[%s1583_s1 + $0xb8] sm:$0xff]   ;;  %1148 = vmatpush3.bf16.msra.mxu0 %v1278_v2  ;;  %v1283_v7 = vld [vmem:[%s1583_s1 + $0xb0] sm:$0xff]   ;;  %v1287_v11 = vld [vmem:[%s1583_s1 + $0xa8] sm:$0xff]  }
   0x5   :  { %1212 = vmatpush3.bf16.msra.mxu1 %v1279_v3  ;;  %1149 = vmatprep.subr.bf16.mxu0 %v1280_v4  ;;  %v1288_v12 = vld [vmem:[%s1583_s1 + $0x60] sm:$0xff]   ;;  %v1292_v16 = vld [vmem:[%s1583_s1 + $0x58] sm:$0xff]   ;;  %v1296_v20 = vld [vmem:[%s1583_s1 + $0x50] sm:$0xff]  }
   0x6   :  { %1213 = vmatprep.subr.bf16.mxu1 %v1281_v5  ;;  %v1289_v13 = vld [vmem:[%s1583_s1 + $0xe0] sm:$0xff]   ;;  %v1293_v17 = vld [vmem:[%s1583_s1 + $0xd8] sm:$0xff]   ;;  %v1297_v21 = vld [vmem:[%s1583_s1 + $0xd0] sm:$0xff]  }
   0x7   :  { %v1290_v14 = vld [vmem:[%s1583_s1 + $0x20] sm:$0xff]   ;;  %v1294_v18 = vld [vmem:[%s1583_s1 + $0x18] sm:$0xff]   ;;  %v1298_v22 = vld [vmem:[%s1583_s1 + $0x10] sm:$0xff]  }
   0x8   :  { %1150 = vmatpush3.bf16.msra.mxu0 %v1282_v6  ;;  %v1291_v15 = vld [vmem:[%s1583_s1 + $0xa0] sm:$0xff]   ;;  %v1295_v19 = vld [vmem:[%s1583_s1 + $0x98] sm:$0xff]   ;;  %v1299_v23 = vld [vmem:[%s1583_s1 + $0x90] sm:$0xff]  }
   0x9   :  { %1214 = vmatpush3.bf16.msra.mxu1 %v1283_v7  ;;  %1151 = vmatprep.subr.bf16.mxu0 %v1284_v8  ;;  %v1300_v24 = vld [vmem:[%s1583_s1 + $0x48] sm:$0xff]   ;;  %v1304_v28 = vld [vmem:[%s1583_s1 + $0x40] sm:$0xff]   ;;  %v39_v33 = vld [vmem:[%s1582_s0 + $0x10] sm:$0xff] }
   0xa   :  { %1215 = vmatprep.subr.bf16.mxu1 %v1285_v9  ;;  %v1301_v25 = vld [vmem:[%s1583_s1 + $0xc8] sm:$0xff]   ;;  %v1305_v29 = vld [vmem:[%s1583_s1 + $0xc0] sm:$0xff]   ;;  %vm71_vm1 = vcmp.ge.bf16.partialorder %v39_v33, 0  ;;  %v103_v36 = vmul.bf16 1045249613, %v39_v33  ;;  %v40_v37 = vld [vmem:[%s1582_s0 + $0x18] sm:$0xff] }
   0xb   :  { %v1302_v26 = vld [vmem:[%s1583_s1 + $0x8] sm:$0xff]   ;;  %v1306_v30 = vld [vmem:[%s1583_s1] sm:$0xff]   ;;  %v43_v40 = vld [vmem:[%s1582_s0 + $0x30] sm:$0xff]  ;;  %vm72_vm3 = vcmp.ge.bf16.partialorder %v40_v37, 0  ;;  %v104_v43 = vmul.bf16 1045249613, %v40_v37 }
   0xc   :  { %1152 = vmatpush3.bf16.msra.mxu0 %v1286_v10  ;;  %v1303_v27 = vld [vmem:[%s1583_s1 + $0x88] sm:$0xff]   ;;  %v1307_v31 = vld [vmem:[%s1583_s1 + $0x80] sm:$0xff]   ;;  %v135_v42 = vsel %vm71_vm1, %v39_v33, %v103_v36  ;;  %v44_v45 = vld [vmem:[%s1582_s0 + $0x38] sm:$0xff]  ;;  %vm75_vm5 = vcmp.ge.bf16.partialorder %v43_v40, 0  ;;  %v107_v52 = vmul.bf16 1045249613, %v43_v40 }
   0xd   :  { %1216 = vmatpush3.bf16.msra.mxu1 %v1287_v11  ;;  %1153 = vmatprep.subr.bf16.mxu0 %v1288_v12  ;;  %v37_v32 = vld [vmem:[%s1582_s0] sm:$0xff]  ;;  %v38_v34 = vld [vmem:[%s1582_s0 + $0x8] sm:$0xff]  ;;  %v136_v50 = vsel %vm72_vm3, %v40_v37, %v104_v43  ;;  %v47_v53 = vld [vmem:[%s1582_s0 + $0x50] sm:$0xff]  ;;  %vm76_vm7 = vcmp.ge.bf16.partialorder %v44_v45, 0  ;;  %v108_v59 = vmul.bf16 1045249613, %v44_v45 }
   0xe   :  { %1217 = vmatprep.subr.bf16.mxu1 %v1289_v13  ;;  %vm69_vm0 = vcmp.ge.bf16.partialorder %v37_v32, 0  ;;  %v101_v35 = vmul.bf16 1045249613, %v37_v32  ;;  %vm70_vm2 = vcmp.ge.bf16.partialorder %v38_v34, 0  ;;  %v102_v38 = vmul.bf16 1045249613, %v38_v34 }
   0xf   :  { %v41_v39 = vld [vmem:[%s1582_s0 + $0x20] sm:$0xff]  ;;  %v42_v44 = vld [vmem:[%s1582_s0 + $0x28] sm:$0xff]  ;;  %v139_v57 = vsel %vm75_vm5, %v43_v40, %v107_v52  ;;  %v48_v61 = vld [vmem:[%s1582_s0 + $0x58] sm:$0xff]  ;;  %vm79_vm9 = vcmp.ge.bf16.partialorder %v47_v53, 0  ;;  %v140_v0 = vsel %vm76_vm7, %v44_v45, %v108_v59  ;;  %v111_v2 = vmul.bf16 1045249613, %v47_v53 }
  0x10   :  { %1154 = vmatpush3.bf16.msra.mxu0 %v1290_v14  ;;  %v133_v41 = vsel %vm69_vm0, %v37_v32, %v101_v35  ;;  %v134_v48 = vsel %vm70_vm2, %v38_v34, %v102_v38  ;;  %vm73_vm4 = vcmp.ge.bf16.partialorder %v41_v39, 0  ;;  %v45_v49 = vld [vmem:[%s1582_s0 + $0x40] sm:$0xff]  ;;  %v105_v51 = vmul.bf16 1045249613, %v41_v39  ;;  %v46_v60 = vld [vmem:[%s1582_s0 + $0x48] sm:$0xff]  ;;  %v51_v6 = vld [vmem:[%s1582_s0 + $0x70] sm:$0xff] }
  0x11   :  { %1218 = vmatpush3.bf16.msra.mxu1 %v1291_v15  ;;  %1155 = vmatprep.subr.bf16.mxu0 %v1292_v16  ;;  %v1004_v46 = vcombine.low %v133_v41, %v135_v42  ;;  %v1005_v47 = vcombine.high %v133_v41, %v135_v42  ;;  %v1006_v54 = vcombine.low %v134_v48, %v136_v50  ;;  %vm74_vm6 = vcmp.ge.bf16.partialorder %v42_v44, 0  ;;  %v49_v5 = vld [vmem:[%s1582_s0 + $0x60] sm:$0xff]  ;;  %v50_v13 = vld [vmem:[%s1582_s0 + $0x68] sm:$0xff]  ;;  %v52_v14 = vld [vmem:[%s1582_s0 + $0x78] sm:$0xff] }
  0x12   :  { %1219 = vmatprep.subr.bf16.mxu1 %v1293_v17  ;;  %v1007_v55 = vcombine.high %v134_v48, %v136_v50  ;;  %v137_v56 = vsel %vm73_vm4, %v41_v39, %v105_v51  ;;  %v106_v58 = vmul.bf16 1045249613, %v42_v44  ;;  %vm77_vm8 = vcmp.ge.bf16.partialorder %v45_v49, 0 }
  0x13   :  { %629 = vmatprep.mubr.bf16.mxu0 %v1005_v47  ;;  %v1009_v62 = vcombine.high %v137_v56, %v139_v57  ;;  %v109_v1 = vmul.bf16 1045249613, %v45_v49  ;;  %v1008_v4 = vcombine.low %v137_v56, %v139_v57  ;;  %vm78_vm10 = vcmp.ge.bf16.partialorder %v46_v60, 0 }
  0x14   :  { %1156 = vmatpush3.bf16.msra.mxu0 %v1294_v18  ;;  %726 = vmatprep.mubr.bf16.mxu1 %v1007_v55  ;;  %v138_v63 = vsel %vm74_vm6, %v42_v44, %v106_v58  ;;  %vm80_vm11 = vcmp.ge.bf16.partialorder %v48_v61, 0  ;;  %v143_v8 = vsel %vm79_vm9, %v47_v53, %v111_v2  ;;  %v110_v9 = vmul.bf16 1045249613, %v46_v60 }
  0x15   :  { %1220 = vmatpush3.bf16.msra.mxu1 %v1295_v19  ;;  %1157 = vmatprep.subr.bf16.mxu0 %v1296_v20  ;;  %v1011_v3 = vcombine.high %v138_v63, %v140_v0  ;;  %v141_v7 = vsel %vm77_vm8, %v45_v49, %v109_v1  ;;  %v112_v10 = vmul.bf16 1045249613, %v48_v61  ;;  %v1010_v11 = vcombine.low %v138_v63, %v140_v0 }
  0x16   :  { %1221 = vmatprep.subr.bf16.mxu1 %v1297_v21  ;;  %v1013_v12 = vcombine.high %v141_v7, %v143_v8  ;;  %v142_v15 = vsel %vm78_vm10, %v46_v60, %v110_v9  ;;  %v113_v17 = vmul.bf16 1045249613, %v49_v5  ;;  %v115_v18 = vmul.bf16 1045249613, %v51_v6 }
  0x17   :  { %v144_v16 = vsel %vm80_vm11, %v48_v61, %v112_v10  ;;  %vm81_vm12 = vcmp.ge.bf16.partialorder %v49_v5, 0  ;;  %vm83_vm13 = vcmp.ge.bf16.partialorder %v51_v6, 0 }
  0x18   :  { %1158 = vmatpush3.bf16.msra.mxu0 %v1298_v22  ;;  %v1015_v19 = vcombine.high %v142_v15, %v144_v16 }
  0x19   :  { %1222 = vmatpush3.bf16.msra.mxu1 %v1299_v23  ;;  %1159 = vmatprep.subr.bf16.mxu0 %v1300_v24 }
  0x1a   :  { %1223 = vmatprep.subr.bf16.mxu1 %v1301_v25 }
  0x1c   :  { %1160 = vmatpush3.bf16.msra.mxu0 %v1302_v26 }
  0x1d   :  { %1224 = vmatpush3.bf16.msra.mxu1 %v1303_v27  ;;  %1161 = vmatprep.subr.bf16.mxu0 %v1304_v28 }
  0x1e   :  { %1225 = vmatprep.subr.bf16.mxu1 %v1305_v29 }
  0x20   :  { %1162 = vmatpush3.bf16.msra.mxu0 %v1306_v30 }
  0x21   :  { %1226 = vmatpush3.bf16.msra.mxu1 %v1307_v31 }
  0x23   :  { %630 = vmatmul.mubr.bf16.vlgmr.msra.gmra.mxu0 %v1004_v46 }
  0x24   :  { %727 = vmatmul.mubr.bf16.vlgmr.msra.gmra.mxu1 %v1006_v54  ;;  %637 = vmatprep.mubr.bf16.mxu0 %v1009_v62 }
  0x25   :  { %734 = vmatprep.mubr.bf16.mxu1 %v1011_v3 }
  0x26   :  { %9 = vsyncpa [#allocation4], 0  ;;  %v114_v20 = vmul.bf16 1045249613, %v50_v13  ;;  %v116_v21 = vmul.bf16 1045249613, %v52_v14  ;;  %v145_v22 = vsel %vm81_vm12, %v49_v5, %v113_v17  ;;  %v147_v23 = vsel %vm83_vm13, %v51_v6, %v115_v18 }
  0x27   :  { %vm82_vm14 = vcmp.ge.bf16.partialorder %v50_v13, 0  ;;  %vm84_vm15 = vcmp.ge.bf16.partialorder %v52_v14, 0  ;;  %v53_v24 = vld [vmem:[%s1582_s0 + $0x80] sm:$0xff]  ;;  %v55_v25 = vld [vmem:[%s1582_s0 + $0x90] sm:$0xff]  ;;  %v1012_v26 = vcombine.low %v141_v7, %v143_v8  ;;  %v1017_v29 = vcombine.high %v145_v22, %v147_v23  ;;  %v54_v30 = vld [vmem:[%s1582_s0 + $0x88] sm:$0xff]  ;;  %s1330_s17 = smov [#allocation3]  }
  0x28   :  { %v146_v27 = vsel %vm82_vm14, %v50_v13, %v114_v20  ;;  %v148_v28 = vsel %vm84_vm15, %v52_v14, %v116_v21  ;;  %v56_v31 = vld [vmem:[%s1582_s0 + $0x98] sm:$0xff]  ;;  %v1014_v32 = vcombine.low %v142_v15, %v144_v16  ;;  %v117_v33 = vmul.bf16 1045249613, %v53_v24  ;;  %v57_v40 = vld [vmem:[%s1582_s0 + $0xa0] sm:$0xff]  ;;  %v59_v41 = vld [vmem:[%s1582_s0 + $0xb0] sm:$0xff]  ;;  %s994_s18 = sshll.u32 %s1330_s17, 4  ;;  %s995_s18 = int_to_ptr.vmem [resolvable:$true] %s994_s18 }
  0x29   :  { %v119_v34 = vmul.bf16 1045249613, %v55_v25  ;;  %v1019_v35 = vcombine.high %v146_v27, %v148_v28  ;;  %vm85_vm0 = vcmp.ge.bf16.partialorder %v53_v24, 0  ;;  %vm87_vm1 = vcmp.ge.bf16.partialorder %v55_v25, 0  ;;  %v58_v46 = vld [vmem:[%s1582_s0 + $0xa8] sm:$0xff]  ;;  %v60_v47 = vld [vmem:[%s1582_s0 + $0xb8] sm:$0xff]  ;;  %p1313_p1 = scmp.lt.s32.totalorder %s995_s18, %s995_s18 }
  0x2a   :  { %v118_v36 = vmul.bf16 1045249613, %v54_v30  ;;  %v120_v37 = vmul.bf16 1045249613, %v56_v31  ;;  %vm86_vm2 = vcmp.ge.bf16.partialorder %v54_v30, 0  ;;  %vm88_vm3 = vcmp.ge.bf16.partialorder %v56_v31, 0 }
  0x2b   :  { %638 = vmatmul.mubr.bf16.gmra.mxu0 %v1008_v4  ;;  %v149_v38 = vsel %vm85_vm0, %v53_v24, %v117_v33  ;;  %v151_v39 = vsel %vm87_vm1, %v55_v25, %v119_v34  ;;  %v1016_v42 = vcombine.low %v145_v22, %v147_v23  ;;  %v1018_v48 = vcombine.low %v146_v27, %v148_v28  ;;  %v61_v56 = vld [vmem:[%s1582_s0 + $0xc0] sm:$0xff]  ;;  %v63_v57 = vld [vmem:[%s1582_s0 + $0xd0] sm:$0xff]  ;;  %v62_v62 = vld [vmem:[%s1582_s0 + $0xc8] sm:$0xff]  ;;  %s1308_s19 = scalar_lea.vmem %s995_s18, 32 }
  0x2c   :  { %645 = vmatprep.mubr.bf16.mxu0 %v1013_v12  ;;  %735 = vmatmul.mubr.bf16.gmra.mxu1 %v1010_v11  ;;  %v150_v43 = vsel %vm86_vm2, %v54_v30, %v118_v36  ;;  %v152_v44 = vsel %vm88_vm3, %v56_v31, %v120_v37  ;;  %v1021_v45 = vcombine.high %v149_v38, %v151_v39  ;;  %v121_v49 = vmul.bf16 1045249613, %v57_v40  ;;  %v64_v63 = vld [vmem:[%s1582_s0 + $0xd8] sm:$0xff]  ;;  %v65_v8 = vld [vmem:[%s1582_s0 + $0xe0] sm:$0xff]  ;;  %v67_v9 = vld [vmem:[%s1582_s0 + $0xf0] sm:$0xff]  ;;  %p1309_p0 = scmp.ne.s32.totalorder %s995_s18, %s1308_s19  ;;  %p1314_p2 = scmp.lt.s32.totalorder %s1308_s19, %s1308_s19 }
  0x2d   :  { %742 = vmatprep.mubr.bf16.mxu1 %v1015_v19  ;;  %v123_v50 = vmul.bf16 1045249613, %v59_v41  ;;  %v1023_v51 = vcombine.high %v150_v43, %v152_v44  ;;  %vm89_vm4 = vcmp.ge.bf16.partialorder %v57_v40, 0  ;;  %vm91_vm5 = vcmp.ge.bf16.partialorder %v59_v41, 0  ;;  %v66_v14 = vld [vmem:[%s1582_s0 + $0xe8] sm:$0xff]  ;;  %v68_v15 = vld [vmem:[%s1582_s0 + $0xf8] sm:$0xff] }
  0x2e   :  { %v122_v52 = vmul.bf16 1045249613, %v58_v46  ;;  %v124_v53 = vmul.bf16 1045249613, %v60_v47  ;;  %vm90_vm6 = vcmp.ge.bf16.partialorder %v58_v46, 0  ;;  %vm92_vm7 = vcmp.ge.bf16.partialorder %v60_v47, 0  ;;  %p1315_p3 = por %p1314_p2, %p1313_p1 }
  0x2f   :  { %v153_v54 = vsel %vm89_vm4, %v57_v40, %v121_v49  ;;  %v155_v55 = vsel %vm91_vm5, %v59_v41, %v123_v50  ;;  %v1020_v58 = vcombine.low %v149_v38, %v151_v39  ;;  %v1022_v0 = vcombine.low %v150_v43, %v152_v44 }
  0x30   :  { %v154_v59 = vsel %vm90_vm6, %v58_v46, %v122_v52  ;;  %v156_v60 = vsel %vm92_vm7, %v60_v47, %v124_v53  ;;  %v1025_v61 = vcombine.high %v153_v54, %v155_v55  ;;  %v125_v1 = vmul.bf16 1045249613, %v61_v56  ;;  %p1316_p4 = pnand %p1315_p3, %p1309_p0 }
  0x31   :  { %v127_v2 = vmul.bf16 1045249613, %v63_v57  ;;  %v1027_v3 = vcombine.high %v154_v59, %v156_v60  ;;  %vm93_vm8 = vcmp.ge.bf16.partialorder %v61_v56, 0  ;;  %vm95_vm9 = vcmp.ge.bf16.partialorder %v63_v57, 0 }
  0x32   :  { %v126_v4 = vmul.bf16 1045249613, %v62_v62  ;;  %v128_v5 = vmul.bf16 1045249613, %v64_v63  ;;  %vm94_vm10 = vcmp.ge.bf16.partialorder %v62_v62, 0  ;;  %vm96_vm11 = vcmp.ge.bf16.partialorder %v64_v63, 0 }
  0x33   :  { %646 = vmatmul.mubr.bf16.gmra.mxu0 %v1012_v26  ;;  %v157_v6 = vsel %vm93_vm8, %v61_v56, %v125_v1  ;;  %v159_v7 = vsel %vm95_vm9, %v63_v57, %v127_v2  ;;  %v1024_v10 = vcombine.low %v153_v54, %v155_v55  ;;  %v1026_v16 = vcombine.low %v154_v59, %v156_v60 }
  0x34   :  { %653 = vmatprep.mubr.bf16.mxu0 %v1017_v29  ;;  %743 = vmatmul.mubr.bf16.gmra.mxu1 %v1014_v32  ;;  %v158_v11 = vsel %vm94_vm10, %v62_v62, %v126_v4  ;;  %v160_v12 = vsel %vm96_vm11, %v64_v63, %v128_v5  ;;  %v1029_v13 = vcombine.high %v157_v6, %v159_v7  ;;  %v129_v17 = vmul.bf16 1045249613, %v65_v8 }
  0x35   :  { %750 = vmatprep.mubr.bf16.mxu1 %v1019_v35  ;;  %v131_v18 = vmul.bf16 1045249613, %v67_v9  ;;  %v1031_v19 = vcombine.high %v158_v11, %v160_v12  ;;  %vm97_vm12 = vcmp.ge.bf16.partialorder %v65_v8, 0  ;;  %vm99_vm13 = vcmp.ge.bf16.partialorder %v67_v9, 0 }
  0x36   :  { %v130_v20 = vmul.bf16 1045249613, %v66_v14  ;;  %v132_v21 = vmul.bf16 1045249613, %v68_v15  ;;  %vm98_vm14 = vcmp.ge.bf16.partialorder %v66_v14, 0  ;;  %vm100_vm15 = vcmp.ge.bf16.partialorder %v68_v15, 0 }
  0x37   :  { %v161_v22 = vsel %vm97_vm12, %v65_v8, %v129_v17  ;;  %v163_v23 = vsel %vm99_vm13, %v67_v9, %v131_v18  ;;  %v1028_v24 = vcombine.low %v157_v6, %v159_v7  ;;  %v1030_v28 = vcombine.low %v158_v11, %v160_v12 }
  0x38   :  { %v162_v25 = vsel %vm98_vm14, %v66_v14, %v130_v20  ;;  %v164_v26 = vsel %vm100_vm15, %v68_v15, %v132_v21  ;;  %v1033_v27 = vcombine.high %v161_v22, %v163_v23  ;;  %v1032_v30 = vcombine.low %v161_v22, %v163_v23 }
  0x39   :  { %v1035_v29 = vcombine.high %v162_v25, %v164_v26  ;;  %v1034_v31 = vcombine.low %v162_v25, %v164_v26  ;;  %vm900_vm0 = vcmask 1040384  }
  0x3b   :  { %654 = vmatmul.mubr.bf16.gmra.mxu0 %v1016_v42 }
  0x3c   :  { %661 = vmatprep.mubr.bf16.mxu0 %v1021_v45  ;;  %751 = vmatmul.mubr.bf16.gmra.mxu1 %v1018_v48 }
  0x3d   :  { %758 = vmatprep.mubr.bf16.mxu1 %v1023_v51 }
  0x43   :  { %662 = vmatmul.mubr.bf16.gmra.mxu0 %v1020_v58 }
  0x44   :  { %669 = vmatprep.mubr.bf16.mxu0 %v1025_v61  ;;  %759 = vmatmul.mubr.bf16.gmra.mxu1 %v1022_v0 }
  0x45   :  { %766 = vmatprep.mubr.bf16.mxu1 %v1027_v3 }
  0x4b   :  { %670 = vmatmul.mubr.bf16.gmra.mxu0 %v1024_v10 }
  0x4c   :  { %677 = vmatprep.mubr.bf16.mxu0 %v1029_v13  ;;  %767 = vmatmul.mubr.bf16.gmra.mxu1 %v1026_v16 }
  0x4d   :  { %774 = vmatprep.mubr.bf16.mxu1 %v1031_v19 }
  0x53   :  { %678 = vmatmul.mubr.bf16.gmra.mxu0 %v1028_v24 }
  0x54   :  { %685 = vmatprep.mubr.bf16.mxu0 %v1033_v27  ;;  %775 = vmatmul.mubr.bf16.gmra.mxu1 %v1030_v28 }
  0x55   :  { %782 = vmatprep.mubr.bf16.mxu1 %v1035_v29 }
  0x5b   :  { %686 = vmatmul.mubr.bf16.gmra.mxu0 %v1032_v30 }
  0x5c   :  { %783 = vmatmul.mubr.bf16.gmra.mxu1 %v1034_v31 }
  0xe3   :  { %v1163_v32 = vpop.f32.mrf.mxu0 }
  0xe4   :  { %v1227_v33 = vpop.f32.mrf.mxu1 }
  0xe5   :  { %v1164_v34 = vpop.f32.mrf.mxu0 }
  0xe6   :  { %v1228_v35 = vpop.f32.mrf.mxu1  ;;  %v1165_v39 = vadd.f32 %v1164_v34, %v1163_v32 }
  0xe7   :  { %v1166_v36 = vpop.f32.mrf.mxu0  ;;  %v1229_v40 = vadd.f32 %v1228_v35, %v1227_v33 }
  0xe8   :  { %v1230_v37 = vpop.f32.mrf.mxu1 }
  0xe9   :  { %v1167_v38 = vpop.f32.mrf.mxu0  ;;  %v1543_v47 = vadd.f32 %v1229_v40, %v1165_v39 }
  0xea   :  { %v1168_v41 = vadd.f32 %v1167_v38, %v1166_v36  ;;  %v1231_v42 = vpop.f32.mrf.mxu1 }
  0xeb   :  { %v1169_v43 = vpop.f32.mrf.mxu0  ;;  %v1232_v44 = vadd.f32 %v1231_v42, %v1230_v37  ;;  %v863_v39 = vmul.f32 %v1543_v47, %v1543_v47 }
  0xec   :  { %v1233_v45 = vpop.f32.mrf.mxu1 }
  0xed   :  { %v1170_v46 = vpop.f32.mrf.mxu0  ;;  %v1545_v48 = vadd.f32 %v1232_v44, %v1168_v41 }
  0xee   :  { %v1234_v49 = vpop.f32.mrf.mxu1  ;;  %v1171_v54 = vadd.f32 %v1170_v46, %v1169_v43 }
  0xef   :  { %v1172_v50 = vpop.f32.mrf.mxu0  ;;  %v1103_v51 = vpack.c.bf16 %v1545_v48, %v1543_v47  ;;  %v1235_v55 = vadd.f32 %v1234_v49, %v1233_v45  ;;  %v864_v33 = vmul.f32 %v1545_v48, %v1545_v48  ;;  %v842_v43 = vadd.f32 %v1545_v48, %v1543_v47 }
  0xf0   :  { %v1236_v52 = vpop.f32.mrf.mxu1 }
  0xf1   :  { %v1173_v53 = vpop.f32.mrf.mxu0  ;;  %1104 = vst [vmem:[%s1584_s2] sm:$0xff] %v1103_v51   ;;  %v737_v62 = vadd.f32 %v1235_v55, %v1171_v54  ;;  %v879_v45 = vadd.f32 %v864_v33, %v863_v39 }
  0xf2   :  { %v1174_v56 = vadd.f32 %v1173_v53, %v1172_v50  ;;  %v1237_v57 = vpop.f32.mrf.mxu1 }
  0xf3   :  { %v1175_v58 = vpop.f32.mrf.mxu0  ;;  %v1238_v59 = vadd.f32 %v1237_v57, %v1236_v52  ;;  %v865_v40 = vmul.f32 %v737_v62, %v737_v62  ;;  %v843_v51 = vadd.f32 %v842_v43, %v737_v62 }
  0xf4   :  { %v1239_v60 = vpop.f32.mrf.mxu1 }
  0xf5   :  { %v1176_v61 = vpop.f32.mrf.mxu0  ;;  %v740_v63 = vadd.f32 %v1238_v59, %v1174_v56  ;;  %v880_v54 = vadd.f32 %v879_v45, %v865_v40 }
  0xf6   :  { %v1240_v0 = vpop.f32.mrf.mxu1  ;;  %v1177_v5 = vadd.f32 %v1176_v61, %v1175_v58 }
  0xf7   :  { %v1178_v1 = vpop.f32.mrf.mxu0  ;;  %v1108_v2 = vpack.c.bf16 %v740_v63, %v737_v62  ;;  %v1241_v6 = vadd.f32 %v1240_v0, %v1239_v60  ;;  %v866_v46 = vmul.f32 %v740_v63, %v740_v63  ;;  %v844_v58 = vadd.f32 %v843_v51, %v740_v63 }
  0xf8   :  { %v1242_v3 = vpop.f32.mrf.mxu1 }
  0xf9   :  { %v1179_v4 = vpop.f32.mrf.mxu0  ;;  %1140 = vst [vmem:[%s1584_s2 + $0x8] sm:$0xff] %v1108_v2   ;;  %v745_v13 = vadd.f32 %v1241_v6, %v1177_v5  ;;  %v881_v60 = vadd.f32 %v880_v54, %v866_v46 }
  0xfa   :  { %v1180_v7 = vadd.f32 %v1179_v4, %v1178_v1  ;;  %v1243_v8 = vpop.f32.mrf.mxu1 }
  0xfb   :  { %v1181_v9 = vpop.f32.mrf.mxu0  ;;  %v1244_v10 = vadd.f32 %v1243_v8, %v1242_v3  ;;  %v867_v55 = vmul.f32 %v745_v13, %v745_v13  ;;  %v845_v2 = vadd.f32 %v844_v58, %v745_v13 }
  0xfc   :  { %v1245_v11 = vpop.f32.mrf.mxu1 }
  0xfd   :  { %v1182_v12 = vpop.f32.mrf.mxu0  ;;  %v748_v14 = vadd.f32 %v1244_v10, %v1180_v7  ;;  %v882_v3 = vadd.f32 %v881_v60, %v867_v55 }
  0xfe   :  { %v1246_v15 = vpop.f32.mrf.mxu1  ;;  %v1183_v20 = vadd.f32 %v1182_v12, %v1181_v9 }
  0xff   :  { %v1184_v16 = vpop.f32.mrf.mxu0  ;;  %v1113_v17 = vpack.c.bf16 %v748_v14, %v745_v13  ;;  %v1247_v21 = vadd.f32 %v1246_v15, %v1245_v11  ;;  %v868_v61 = vmul.f32 %v748_v14, %v748_v14  ;;  %v846_v7 = vadd.f32 %v845_v2, %v748_v14 }
 0x100   :  { %v1248_v18 = vpop.f32.mrf.mxu1 }
 0x101   :  { %v1185_v19 = vpop.f32.mrf.mxu0  ;;  %1141 = vst [vmem:[%s1584_s2 + $0x10] sm:$0xff] %v1113_v17   ;;  %v753_v28 = vadd.f32 %v1247_v21, %v1183_v20  ;;  %v883_v63 = vadd.f32 %v882_v3, %v868_v61 }
 0x102   :  { %v1186_v22 = vadd.f32 %v1185_v19, %v1184_v16  ;;  %v1249_v23 = vpop.f32.mrf.mxu1 }
 0x103   :  { %v1187_v24 = vpop.f32.mrf.mxu0  ;;  %v1250_v25 = vadd.f32 %v1249_v23, %v1248_v18  ;;  %v869_v4 = vmul.f32 %v753_v28, %v753_v28  ;;  %v847_v12 = vadd.f32 %v846_v7, %v753_v28 }
 0x104   :  { %v1251_v26 = vpop.f32.mrf.mxu1 }
 0x105   :  { %v1188_v27 = vpop.f32.mrf.mxu0  ;;  %v756_v29 = vadd.f32 %v1250_v25, %v1186_v22  ;;  %v884_v16 = vadd.f32 %v883_v63, %v869_v4 }
 0x106   :  { %v1252_v30 = vpop.f32.mrf.mxu1  ;;  %v1189_v36 = vadd.f32 %v1188_v27, %v1187_v24 }
 0x107   :  { %v1190_v31 = vpop.f32.mrf.mxu0  ;;  %v1118_v32 = vpack.c.bf16 %v756_v29, %v753_v28  ;;  %v1253_v37 = vadd.f32 %v1252_v30, %v1251_v26  ;;  %v870_v9 = vmul.f32 %v756_v29, %v756_v29  ;;  %v848_v20 = vadd.f32 %v847_v12, %v756_v29 }
 0x108   :  { %v1254_v34 = vpop.f32.mrf.mxu1 }
 0x109   :  { %v1191_v35 = vpop.f32.mrf.mxu0  ;;  %1142 = vst [vmem:[%s1584_s2 + $0x18] sm:$0xff] %v1118_v32   ;;  %v761_v52 = vadd.f32 %v1253_v37, %v1189_v36  ;;  %v885_v24 = vadd.f32 %v884_v16, %v870_v9 }
 0x10a   :  { %v1192_v38 = vadd.f32 %v1191_v35, %v1190_v31  ;;  %v1255_v41 = vpop.f32.mrf.mxu1 }
 0x10b   :  { %v1193_v42 = vpop.f32.mrf.mxu0  ;;  %v1256_v44 = vadd.f32 %v1255_v41, %v1254_v34  ;;  %v871_v17 = vmul.f32 %v761_v52, %v761_v52  ;;  %v849_v27 = vadd.f32 %v848_v20, %v761_v52 }
 0x10c   :  { %v1257_v49 = vpop.f32.mrf.mxu1 }
 0x10d   :  { %v1194_v50 = vpop.f32.mrf.mxu0  ;;  %v764_v53 = vadd.f32 %v1256_v44, %v1192_v38  ;;  %v886_v30 = vadd.f32 %v885_v24, %v871_v17 }
 0x10e   :  { %v1258_v56 = vpop.f32.mrf.mxu1  ;;  %v1195_v47 = vadd.f32 %v1194_v50, %v1193_v42 }
 0x10f   :  { %v1196_v57 = vpop.f32.mrf.mxu0  ;;  %v1123_v59 = vpack.c.bf16 %v764_v53, %v761_v52  ;;  %v1259_v48 = vadd.f32 %v1258_v56, %v1257_v49  ;;  %v872_v25 = vmul.f32 %v764_v53, %v764_v53  ;;  %v850_v34 = vadd.f32 %v849_v27, %v764_v53 }
 0x110   :  { %v1260_v0 = vpop.f32.mrf.mxu1 }
 0x111   :  { %v1197_v1 = vpop.f32.mrf.mxu0  ;;  %1143 = vst [vmem:[%s1584_s2 + $0x20] sm:$0xff] %v1123_v59   ;;  %v769_v15 = vadd.f32 %v1259_v48, %v1195_v47  ;;  %v887_v36 = vadd.f32 %v886_v30, %v872_v25 }
 0x112   :  { %v1198_v62 = vadd.f32 %v1197_v1, %v1196_v57  ;;  %v1261_v5 = vpop.f32.mrf.mxu1 }
 0x113   :  { %v1199_v6 = vpop.f32.mrf.mxu0  ;;  %v1262_v8 = vadd.f32 %v1261_v5, %v1260_v0  ;;  %v873_v31 = vmul.f32 %v769_v15, %v769_v15  ;;  %v851_v40 = vadd.f32 %v850_v34, %v769_v15 }
 0x114   :  { %v1263_v10 = vpop.f32.mrf.mxu1 }
 0x115   :  { %v1200_v11 = vpop.f32.mrf.mxu0  ;;  %v772_v13 = vadd.f32 %v1262_v8, %v1198_v62  ;;  %v888_v43 = vadd.f32 %v887_v36, %v873_v31 }
 0x116   :  { %v1264_v18 = vpop.f32.mrf.mxu1  ;;  %v1201_v22 = vadd.f32 %v1200_v11, %v1199_v6 }
 0x117   :  { %v1202_v19 = vpop.f32.mrf.mxu0  ;;  %v1128_v21 = vpack.c.bf16 %v772_v13, %v769_v15  ;;  %v1265_v23 = vadd.f32 %v1264_v18, %v1263_v10  ;;  %v874_v37 = vmul.f32 %v772_v13, %v772_v13  ;;  %v852_v46 = vadd.f32 %v851_v40, %v772_v13 }
 0x118   :  { %v1266_v26 = vpop.f32.mrf.mxu1 }
 0x119   :  { %v1203_v14 = vpop.f32.mrf.mxu0  ;;  %1144 = vst [vmem:[%s1584_s2 + $0x28] sm:$0xff] %v1128_v21   ;;  %v777_v35 = vadd.f32 %v1265_v23, %v1201_v22  ;;  %v889_v52 = vadd.f32 %v888_v43, %v874_v37 }
 0x11a   :  { %v1204_v28 = vadd.f32 %v1203_v14, %v1202_v19  ;;  %v1267_v32 = vpop.f32.mrf.mxu1 }
 0x11b   :  { %v1205_v33 = vpop.f32.mrf.mxu0  ;;  %v1268_v29 = vadd.f32 %v1267_v32, %v1266_v26  ;;  %v875_v49 = vmul.f32 %v777_v35, %v777_v35  ;;  %v853_v53 = vadd.f32 %v852_v46, %v777_v35 }
 0x11c   :  { %v1269_v38 = vpop.f32.mrf.mxu1 }
 0x11d   :  { %v1206_v39 = vpop.f32.mrf.mxu0  ;;  %v780_v41 = vadd.f32 %v1268_v29, %v1204_v28  ;;  %v890_v60 = vadd.f32 %v889_v52, %v875_v49 }
 0x11e   :  { %v1207_v42 = vadd.f32 %v1206_v39, %v1205_v33  ;;  %v1270_v44 = vpop.f32.mrf.mxu1 }
 0x11f   :  { %v1208_v45 = vpop.f32.mrf.mxu0  ;;  %v1133_v50 = vpack.c.bf16 %v780_v41, %v777_v35  ;;  %v1271_v51 = vadd.f32 %v1270_v44, %v1269_v38  ;;  %v876_v56 = vmul.f32 %v780_v41, %v780_v41  ;;  %v854_v61 = vadd.f32 %v853_v53, %v780_v41 }
 0x120   :  { %v1272_v54 = vpop.f32.mrf.mxu1 }
 0x121   :  { %v1209_v55 = vpop.f32.mrf.mxu0  ;;  %1145 = vst [vmem:[%s1584_s2 + $0x30] sm:$0xff] %v1133_v50   ;;  %v785_v57 = vadd.f32 %v1271_v51, %v1207_v42  ;;  %v891_v2 = vadd.f32 %v890_v60, %v876_v56 }
 0x122   :  { %v1210_v58 = vadd.f32 %v1209_v55, %v1208_v45  ;;  %v1273_v59 = vpop.f32.mrf.mxu1 }
 0x123   :  { %v877_v0 = vmul.f32 %v785_v57, %v785_v57  ;;  %v1274_v1 = vadd.f32 %v1273_v59, %v1272_v54  ;;  %v855_v47 = vadd.f32 %v854_v61, %v785_v57 }
 0x125   :  { %v788_v48 = vadd.f32 %v1274_v1, %v1210_v58  ;;  %v892_v62 = vadd.f32 %v891_v2, %v877_v0 }
 0x127   :  { %v856_v3 = vadd.f32 %v855_v47, %v788_v48  ;;  %v878_v4 = vmul.f32 %v788_v48, %v788_v48  ;;  %v1138_v5 = vpack.c.bf16 %v788_v48, %v785_v57 }
 0x129   :  { %v857_v6 = vrot.slane %v856_v3, 4  ;;  %v893_v7 = vadd.f32 %v892_v62, %v878_v4  ;;  %1146 = vst [vmem:[%s1584_s2 + $0x38] sm:$0xff] %v1138_v5  }
 0x12b   :  { %v858_v8 = vadd.f32 %v857_v6, %v856_v3  ;;  %v894_v63 = vrot.slane %v893_v7, 4 }
 0x12d   :  { %v859_v9 = vrot.slane %v858_v8, 2  ;;  %v895_v10 = vadd.f32 %v894_v63, %v893_v7 }
 0x12f   :  { %v860_v11 = vadd.f32 %v859_v9, %v858_v8  ;;  %v896_v12 = vrot.slane %v895_v10, 2 }
 0x131   :  { %v861_v15 = vrot.slane %v860_v11, 1  ;;  %v897_v13 = vadd.f32 %v896_v12, %v895_v10 }
 0x133   :  { %v898_v16 = vrot.slane %v897_v13, 1  ;;  %v862_v17 = vadd.f32 %v861_v15, %v860_v11 }
 0x135   :  { %v899_v18 = vadd.f32 %v898_v16, %v897_v13 }
 0x137   :  { %v901_v19 = vsel %vm900_vm0, %v862_v17, %v899_v18 }
 0x138   :  { %902 = vst [vmem:[#allocation3] sm:$0x3] %v901_v19 }
 0x139   :  { %1319 = shalt.err (!%p1316_p4)
}
 0x13a   :  { %997 = dma.vmem_to_hbm [thread:$0]  %s995_s18, 32, %s1585_s3, [#allocation4]  }
 0x13b   :  { %1328 = dma.done.wait [#allocation4], 32  }
 0x13c   :  { %1329 = vsyncadd [#allocation4], 4294967264 }
 0x13d   :  { %1003 = vsyncpa [#allocation4], 1 }

// kernel: unet_forward.19
= control target key start
LH: loop header
LB: loop body
LE: loop exit
PB: predicated region body
PF: predicated region fallthrough
CT: control target
= control target key end

     0   :  { %s1356_s12 = smov 0   ;;  %s1358_s13 = smov 0   ;;  %s1486_s0 = inlined_call_operand.vmem [shape: bf16[4,128,256], index: 0, kind: input, shape index: {}]   ;;  %s1487_s1 = inlined_call_operand.vmem [shape: bf16[4,256,128], index: 1, kind: input, shape index: {}]   ;;  %s1488_s2 = inlined_call_operand.vmem [shape: bf16[4,128,128], index: 2, kind: output, shape index: {0}]   ;;  %s1489_s3 = inlined_call_operand.vmem [shape: f32[4,2,128], index: 3, kind: output, shape index: {1}]  }
   0x1   :  { %s1360_s14 = smov 0  }
   0x2 LB: > { %s40_s15 = sadd.s32 1, %s1329_s13  ;;  %p1066_p0 = scmp.ge.s32.totalorder %s1333_s14, 1  ;;  %s1333_s14 = sphi %s1360_s14, %s14_s14   ;;  %s1329_s13 = sphi %s1358_s13, %s1491_s13   ;;  %s1325_s12 = sphi %s1356_s12, %s1490_s12  }
   0x3   : > { %p42_p1 = scmp.ge.s32.totalorder %s40_s15, 4  ;;  %p211_p2 = scmp.lt.s32.totalorder %s1333_s14, 5 }
   0x5   : > { %s1493_s15 = smov (%p42_p1, %s40_s15), 0  ;;  %p212_p3 = pnand %p1066_p0, %p211_p2 }
   0x6   : > { %p273_p4 = scmp.lt.s32.totalorder (!%p212_p3), %s1325_s12, 3 }
   0x7   : > { %215 = sbr.rel (%p212_p3) target bundleno = 307 (0x133), region = 28 }
   0xc   : > { %s1495_s12 = smov (!%p273_p4, %s1325_s12), 3  ;;  %v1335_v13 = vmov 0   ;;  %vm805_vm0 = vcmask 1040384  }
   0xd   : > { %s1124_s16 = sshll.u32 %s1495_s12, 7  ;;  %s1126_s23 = sshll.u32 %s1495_s12, 6 }
   0xe   : > { %s1380_s19 = scalar_lea.vmem %s1487_s1, %s1124_s16  ;;  %s1394_s22 = scalar_lea.vmem %s1486_s0, %s1124_s16 }
   0xf   : > { %v1295_v0 = vld [vmem:[%s1380_s19 + $0x78] sm:$0xff]   ;;  %v1297_v2 = vld [vmem:[%s1380_s19 + $0x70] sm:$0xff]   ;;  %v1299_v4 = vld [vmem:[%s1380_s19 + $0x68] sm:$0xff]   ;;  %s1443_s26 = scalar_lea.vmem %s1488_s2, %s1126_s23  ;;  %s1073_s27 = sshll.u32 %s1495_s12, 1 }
  0x10   : > { %v1296_v1 = vld [vmem:[%s1380_s19 + $0x38] sm:$0xff]   ;;  %1190 = vmatprep.subr.bf16.mxu0 %v1295_v0  ;;  %1254 = vmatprep.subr.bf16.mxu1 %v1295_v0  ;;  %v1298_v3 = vld [vmem:[%s1380_s19 + $0x30] sm:$0xff]   ;;  %v1300_v5 = vld [vmem:[%s1380_s19 + $0x28] sm:$0xff]   ;;  %s320_s30 = scalar_lea.vmem %s1489_s3, %s1073_s27 }
  0x11   : > { %1191 = vmatpush3.bf16.msra.mxu0 %v1296_v1  ;;  %1262 = vmatpush3.bf16.msra.mxu1 %v1296_v1  ;;  %v1301_v6 = vld [vmem:[%s1380_s19 + $0x60] sm:$0xff]   ;;  %v1303_v8 = vld [vmem:[%s1380_s19 + $0x58] sm:$0xff]   ;;  %v1305_v10 = vld [vmem:[%s1380_s19 + $0x50] sm:$0xff]  }
  0x12   : > { %1192 = vmatprep.subr.bf16.mxu0 %v1297_v2  ;;  %1255 = vmatprep.subr.bf16.mxu1 %v1297_v2  ;;  %v1302_v7 = vld [vmem:[%s1380_s19 + $0x20] sm:$0xff]   ;;  %v1304_v9 = vld [vmem:[%s1380_s19 + $0x18] sm:$0xff]   ;;  %v344_v12 = vld [vmem:[%s1394_s22 + $0x8] sm:$0xff] }
  0x13   : > { %v343_v11 = vld [vmem:[%s1394_s22] sm:$0xff]  ;;  %v360_v15 = vmax.bf16 %v1335_v13, %v344_v12  ;;  %v352_v17 = vld [vmem:[%s1394_s22 + $0x48] sm:$0xff]  ;;  %v1306_v20 = vld [vmem:[%s1380_s19 + $0x10] sm:$0xff]  }
  0x14   : > { %v359_v14 = vmax.bf16 %v1335_v13, %v343_v11  ;;  %v351_v16 = vld [vmem:[%s1394_s22 + $0x40] sm:$0xff]  ;;  %v368_v19 = vmax.bf16 %v1335_v13, %v352_v17  ;;  %v1307_v22 = vld [vmem:[%s1380_s19 + $0x48] sm:$0xff]   ;;  %v345_v26 = vld [vmem:[%s1394_s22 + $0x10] sm:$0xff] }
  0x15   : > { %1193 = vmatpush3.bf16.msra.mxu0 %v1298_v3  ;;  %1263 = vmatpush3.bf16.msra.mxu1 %v1298_v3  ;;  %v367_v18 = vmax.bf16 %v1335_v13, %v351_v16  ;;  %v1308_v24 = vld [vmem:[%s1380_s19 + $0x8] sm:$0xff]   ;;  %v1309_v25 = vld [vmem:[%s1380_s19 + $0x40] sm:$0xff]   ;;  %v346_v27 = vld [vmem:[%s1394_s22 + $0x18] sm:$0xff]  ;;  %v361_v30 = vmax.bf16 %v1335_v13, %v345_v26 }
  0x16   : > { %1194 = vmatprep.subr.bf16.mxu0 %v1299_v4  ;;  %1256 = vmatprep.subr.bf16.mxu1 %v1299_v4  ;;  %v1075_v21 = vcombine.high %v359_v14, %v360_v15  ;;  %v353_v28 = vld [vmem:[%s1394_s22 + $0x50] sm:$0xff]  ;;  %v354_v29 = vld [vmem:[%s1394_s22 + $0x58] sm:$0xff]  ;;  %v1310_v31 = vld [vmem:[%s1380_s19] sm:$0xff]   ;;  %v362_v32 = vmax.bf16 %v1335_v13, %v346_v27  ;;  %v1074_v35 = vcombine.low %v359_v14, %v360_v15 }
  0x17   : > { %v1083_v23 = vcombine.high %v367_v18, %v368_v19  ;;  %v369_v33 = vmax.bf16 %v1335_v13, %v353_v28  ;;  %v370_v34 = vmax.bf16 %v1335_v13, %v354_v29  ;;  %v1082_v36 = vcombine.low %v367_v18, %v368_v19  ;;  %v347_v38 = vld [vmem:[%s1394_s22 + $0x20] sm:$0xff]  ;;  %v348_v40 = vld [vmem:[%s1394_s22 + $0x28] sm:$0xff]  ;;  %v349_v50 = vld [vmem:[%s1394_s22 + $0x30] sm:$0xff] }
  0x18   : > { %631 = vmatprep.mubr.bf16.mxu0 %v1075_v21  ;;  %v1077_v37 = vcombine.high %v361_v30, %v362_v32  ;;  %v355_v41 = vld [vmem:[%s1394_s22 + $0x60] sm:$0xff]  ;;  %v356_v42 = vld [vmem:[%s1394_s22 + $0x68] sm:$0xff]  ;;  %v363_v43 = vmax.bf16 %v1335_v13, %v347_v38  ;;  %v364_v44 = vmax.bf16 %v1335_v13, %v348_v40  ;;  %v1076_v47 = vcombine.low %v361_v30, %v362_v32  ;;  %v350_v52 = vld [vmem:[%s1394_s22 + $0x38] sm:$0xff] }
  0x19   : > { %1195 = vmatpush3.bf16.msra.mxu0 %v1300_v5  ;;  %1264 = vmatpush3.bf16.msra.mxu1 %v1300_v5  ;;  %v1085_v39 = vcombine.high %v369_v33, %v370_v34  ;;  %v371_v45 = vmax.bf16 %v1335_v13, %v355_v41  ;;  %v372_v46 = vmax.bf16 %v1335_v13, %v356_v42  ;;  %v357_v53 = vld [vmem:[%s1394_s22 + $0x70] sm:$0xff]  ;;  %v358_v54 = vld [vmem:[%s1394_s22 + $0x78] sm:$0xff] }
  0x1a   : > { %1196 = vmatprep.subr.bf16.mxu0 %v1301_v6  ;;  %1257 = vmatprep.subr.bf16.mxu1 %v1301_v6  ;;  %v1084_v48 = vcombine.low %v369_v33, %v370_v34  ;;  %v1079_v49 = vcombine.high %v363_v43, %v364_v44  ;;  %v365_v55 = vmax.bf16 %v1335_v13, %v349_v50 }
  0x1b   : > { %663 = vmatprep.mubr.bf16.mxu1 %v1083_v23  ;;  %v1087_v51 = vcombine.high %v371_v45, %v372_v46  ;;  %v366_v56 = vmax.bf16 %v1335_v13, %v350_v52  ;;  %v373_v57 = vmax.bf16 %v1335_v13, %v357_v53  ;;  %v374_v58 = vmax.bf16 %v1335_v13, %v358_v54 }
  0x1c   : > { %v1078_v59 = vcombine.low %v363_v43, %v364_v44  ;;  %v1086_v60 = vcombine.low %v371_v45, %v372_v46 }
  0x1d   : > { %1197 = vmatpush3.bf16.msra.mxu0 %v1302_v7  ;;  %1265 = vmatpush3.bf16.msra.mxu1 %v1302_v7  ;;  %v1081_v61 = vcombine.high %v365_v55, %v366_v56  ;;  %v1089_v62 = vcombine.high %v373_v57, %v374_v58  ;;  %v1080_v63 = vcombine.low %v365_v55, %v366_v56 }
  0x1e   : > { %1198 = vmatprep.subr.bf16.mxu0 %v1303_v8  ;;  %1258 = vmatprep.subr.bf16.mxu1 %v1303_v8  ;;  %v1088_v0 = vcombine.low %v373_v57, %v374_v58 }
  0x21   : > { %1199 = vmatpush3.bf16.msra.mxu0 %v1304_v9  ;;  %1266 = vmatpush3.bf16.msra.mxu1 %v1304_v9 }
  0x22   : > { %1200 = vmatprep.subr.bf16.mxu0 %v1305_v10  ;;  %1259 = vmatprep.subr.bf16.mxu1 %v1305_v10 }
  0x25   : > { %1201 = vmatpush3.bf16.msra.mxu0 %v1306_v20  ;;  %1267 = vmatpush3.bf16.msra.mxu1 %v1306_v20 }
  0x26   : > { %1202 = vmatprep.subr.bf16.mxu0 %v1307_v22  ;;  %1260 = vmatprep.subr.bf16.mxu1 %v1307_v22 }
  0x29   : > { %1203 = vmatpush3.bf16.msra.mxu0 %v1308_v24  ;;  %1268 = vmatpush3.bf16.msra.mxu1 %v1308_v24 }
  0x2a   : > { %1204 = vmatprep.subr.bf16.mxu0 %v1309_v25  ;;  %1261 = vmatprep.subr.bf16.mxu1 %v1309_v25 }
  0x2d   : > { %1205 = vmatpush3.bf16.msra.mxu0 %v1310_v31  ;;  %1269 = vmatpush3.bf16.msra.mxu1 %v1310_v31 }
  0x30   : > { %632 = vmatmul.mubr.bf16.vlgmr.msra.gmra.mxu0 %v1074_v35  ;;  %664 = vmatmul.mubr.bf16.vlgmr.msra.gmra.mxu1 %v1082_v36 }
  0x31   : > { %639 = vmatprep.mubr.bf16.mxu0 %v1077_v37  ;;  %671 = vmatprep.mubr.bf16.mxu1 %v1085_v39 }
  0x38   : > { %640 = vmatmul.mubr.bf16.gmra.mxu0 %v1076_v47  ;;  %672 = vmatmul.mubr.bf16.gmra.mxu1 %v1084_v48 }
  0x39   : > { %647 = vmatprep.mubr.bf16.mxu0 %v1079_v49  ;;  %679 = vmatprep.mubr.bf16.mxu1 %v1087_v51 }
  0x40   : > { %648 = vmatmul.mubr.bf16.gmra.mxu0 %v1078_v59  ;;  %680 = vmatmul.mubr.bf16.gmra.mxu1 %v1086_v60 }
  0x41   : > { %655 = vmatprep.mubr.bf16.mxu0 %v1081_v61  ;;  %687 = vmatprep.mubr.bf16.mxu1 %v1089_v62 }
  0x48   : > { %656 = vmatmul.mubr.bf16.gmra.mxu0 %v1080_v63  ;;  %688 = vmatmul.mubr.bf16.gmra.mxu1 %v1088_v0 }
  0xf0   : > { %v1206_v1 = vpop.f32.mrf.mxu0  ;;  %v1230_v2 = vpop.f32.mrf.mxu1 }
  0xf2   : > { %v1207_v3 = vpop.f32.mrf.mxu0  ;;  %v1231_v4 = vpop.f32.mrf.mxu1 }
  0xf3   : > { %v1436_v8 = vadd.f32 %v1231_v4, %v1230_v2  ;;  %v1208_v10 = vadd.f32 %v1207_v3, %v1206_v1 }
  0xf4   : > { %v1209_v5 = vpop.f32.mrf.mxu0  ;;  %v1233_v6 = vpop.f32.mrf.mxu1 }
  0xf5   : > { %v768_v34 = vmul.f32 %v1208_v10, %v1208_v10 }
  0xf6   : > { %v1210_v7 = vpop.f32.mrf.mxu0  ;;  %v1234_v9 = vpop.f32.mrf.mxu1 }
  0xf7   : > { %v1211_v11 = vadd.f32 %v1210_v7, %v1209_v5  ;;  %v1438_v12 = vadd.f32 %v1234_v9, %v1233_v6 }
  0xf8   : > { %v1212_v13 = vpop.f32.mrf.mxu0  ;;  %v1236_v14 = vpop.f32.mrf.mxu1 }
  0xf9   : > { %v1146_v15 = vpack.c.bf16 %v1211_v11, %v1208_v10  ;;  %v1166_v17 = vpack.c.bf16 %v1438_v12, %v1436_v8  ;;  %v769_v30 = vmul.f32 %v1211_v11, %v1211_v11  ;;  %v747_v37 = vadd.f32 %v1211_v11, %v1208_v10 }
  0xfa   : > { %v1213_v16 = vpop.f32.mrf.mxu0  ;;  %v1237_v18 = vpop.f32.mrf.mxu1 }
  0xfb   : > { %1147 = vst [vmem:[%s1443_s26] sm:$0xff] %v1146_v15   ;;  %1186 = vst [vmem:[%s1443_s26 + $0x20] sm:$0xff] %v1166_v17   ;;  %v1449_v22 = vadd.f32 %v1237_v18, %v1236_v14  ;;  %v1214_v24 = vadd.f32 %v1213_v16, %v1212_v13  ;;  %v784_v40 = vadd.f32 %v769_v30, %v768_v34 }
  0xfc   : > { %v1215_v19 = vpop.f32.mrf.mxu0  ;;  %v1239_v20 = vpop.f32.mrf.mxu1  ;;  %v776_v16 = vmul.f32 %v1436_v8, %v1436_v8 }
  0xfd   : > { %v770_v38 = vmul.f32 %v1214_v24, %v1214_v24  ;;  %v748_v44 = vadd.f32 %v1214_v24, %v747_v37 }
  0xfe   : > { %v1216_v21 = vpop.f32.mrf.mxu0  ;;  %v1240_v23 = vpop.f32.mrf.mxu1 }
  0xff   : > { %v1217_v25 = vadd.f32 %v1216_v21, %v1215_v19  ;;  %v1451_v26 = vadd.f32 %v1240_v23, %v1239_v20  ;;  %v785_v50 = vadd.f32 %v784_v40, %v770_v38  ;;  %v777_v19 = vmul.f32 %v1438_v12, %v1438_v12 }
 0x100   : > { %v1218_v27 = vpop.f32.mrf.mxu0  ;;  %v1242_v28 = vpop.f32.mrf.mxu1  ;;  %v778_v23 = vmul.f32 %v1449_v22, %v1449_v22 }
 0x101   : > { %v1151_v29 = vpack.c.bf16 %v1217_v25, %v1214_v24  ;;  %v1171_v32 = vpack.c.bf16 %v1451_v26, %v1449_v22  ;;  %v771_v45 = vmul.f32 %v1217_v25, %v1217_v25  ;;  %v749_v51 = vadd.f32 %v1217_v25, %v748_v44 }
 0x102   : > { %v1219_v31 = vpop.f32.mrf.mxu0  ;;  %v1243_v33 = vpop.f32.mrf.mxu1 }
 0x103   : > { %1183 = vst [vmem:[%s1443_s26 + $0x8] sm:$0xff] %v1151_v29   ;;  %1187 = vst [vmem:[%s1443_s26 + $0x28] sm:$0xff] %v1171_v32   ;;  %v1220_v39 = vadd.f32 %v1219_v31, %v1218_v27  ;;  %v1244_v42 = vadd.f32 %v1243_v33, %v1242_v28  ;;  %v786_v57 = vadd.f32 %v785_v50, %v771_v45 }
 0x104   : > { %v1221_v35 = vpop.f32.mrf.mxu0  ;;  %v1245_v36 = vpop.f32.mrf.mxu1  ;;  %v779_v27 = vmul.f32 %v1451_v26, %v1451_v26 }
 0x105   : > { %v772_v52 = vmul.f32 %v1220_v39, %v1220_v39  ;;  %v750_v58 = vadd.f32 %v1220_v39, %v749_v51  ;;  %v780_v29 = vmul.f32 %v1244_v42, %v1244_v42 }
 0x106   : > { %v1222_v41 = vpop.f32.mrf.mxu0  ;;  %v1246_v43 = vpop.f32.mrf.mxu1 }
 0x107   : > { %v1223_v46 = vadd.f32 %v1222_v41, %v1221_v35  ;;  %v1247_v47 = vadd.f32 %v1246_v43, %v1245_v36  ;;  %v787_v63 = vadd.f32 %v786_v57, %v772_v52 }
 0x108   : > { %v1224_v48 = vpop.f32.mrf.mxu0  ;;  %v1248_v49 = vpop.f32.mrf.mxu1 }
 0x109   : > { %v1156_v53 = vpack.c.bf16 %v1223_v46, %v1220_v39  ;;  %v1176_v55 = vpack.c.bf16 %v1247_v47, %v1244_v42  ;;  %v773_v59 = vmul.f32 %v1223_v46, %v1223_v46  ;;  %v751_v0 = vadd.f32 %v1223_v46, %v750_v58 }
 0x10a   : > { %v1225_v54 = vpop.f32.mrf.mxu0  ;;  %v1249_v56 = vpop.f32.mrf.mxu1  ;;  %v781_v33 = vmul.f32 %v1247_v47, %v1247_v47 }
 0x10b   : > { %1184 = vst [vmem:[%s1443_s26 + $0x10] sm:$0xff] %v1156_v53   ;;  %v1226_v60 = vadd.f32 %v1225_v54, %v1224_v48  ;;  %1188 = vst [vmem:[%s1443_s26 + $0x30] sm:$0xff] %v1176_v55   ;;  %v1250_v3 = vadd.f32 %v1249_v56, %v1248_v49  ;;  %v788_v5 = vadd.f32 %v787_v63, %v773_v59 }
 0x10c   : > { %v1227_v61 = vpop.f32.mrf.mxu0  ;;  %v1251_v62 = vpop.f32.mrf.mxu1 }
 0x10d   : > { %v774_v1 = vmul.f32 %v1226_v60, %v1226_v60  ;;  %v752_v6 = vadd.f32 %v1226_v60, %v751_v0  ;;  %v782_v36 = vmul.f32 %v1250_v3, %v1250_v3 }
 0x10e   : > { %v1228_v2 = vpop.f32.mrf.mxu0  ;;  %v1252_v4 = vpop.f32.mrf.mxu1 }
 0x10f   : > { %v1229_v7 = vadd.f32 %v1228_v2, %v1227_v61  ;;  %v1253_v9 = vadd.f32 %v1252_v4, %v1251_v62  ;;  %v789_v10 = vadd.f32 %v788_v5, %v774_v1 }
 0x111   : > { %v753_v11 = vadd.f32 %v1229_v7, %v752_v6  ;;  %v775_v13 = vmul.f32 %v1229_v7, %v1229_v7  ;;  %v1161_v14 = vpack.c.bf16 %v1229_v7, %v1226_v60  ;;  %v1181_v15 = vpack.c.bf16 %v1253_v9, %v1250_v3 }
 0x112   : > { %v783_v39 = vmul.f32 %v1253_v9, %v1253_v9 }
 0x113   : > { %v754_v17 = vadd.f32 %v1436_v8, %v753_v11  ;;  %v790_v18 = vadd.f32 %v789_v10, %v775_v13  ;;  %1185 = vst [vmem:[%s1443_s26 + $0x18] sm:$0xff] %v1161_v14   ;;  %1189 = vst [vmem:[%s1443_s26 + $0x38] sm:$0xff] %v1181_v15  }
 0x115   : > { %v755_v20 = vadd.f32 %v1438_v12, %v754_v17  ;;  %v791_v21 = vadd.f32 %v790_v18, %v776_v16 }
 0x117   : > { %v792_v24 = vadd.f32 %v791_v21, %v777_v19  ;;  %v756_v25 = vadd.f32 %v1449_v22, %v755_v20 }
 0x119   : > { %v757_v8 = vadd.f32 %v1451_v26, %v756_v25  ;;  %v793_v28 = vadd.f32 %v792_v24, %v778_v23 }
 0x11b   : > { %v758_v30 = vadd.f32 %v1244_v42, %v757_v8  ;;  %v794_v31 = vadd.f32 %v793_v28, %v779_v27 }
 0x11d   : > { %v759_v32 = vadd.f32 %v1247_v47, %v758_v30  ;;  %v795_v34 = vadd.f32 %v794_v31, %v780_v29 }
 0x11f   : > { %v796_v12 = vadd.f32 %v795_v34, %v781_v33  ;;  %v760_v35 = vadd.f32 %v1250_v3, %v759_v32 }
 0x121   : > { %v797_v37 = vadd.f32 %v796_v12, %v782_v36  ;;  %v761_v38 = vadd.f32 %v1253_v9, %v760_v35 }
 0x123   : > { %v762_v22 = vrot.slane %v761_v38, 4  ;;  %v798_v40 = vadd.f32 %v797_v37, %v783_v39 }
 0x125   : > { %v763_v41 = vadd.f32 %v762_v22, %v761_v38  ;;  %v799_v43 = vrot.slane %v798_v40, 4 }
 0x127   : > { %v764_v44 = vrot.slane %v763_v41, 2  ;;  %v800_v26 = vadd.f32 %v799_v43, %v798_v40 }
 0x129   : > { %v765_v45 = vadd.f32 %v764_v44, %v763_v41  ;;  %v801_v46 = vrot.slane %v800_v26, 2 }
 0x12b   : > { %v766_v42 = vrot.slane %v765_v45, 1  ;;  %v802_v48 = vadd.f32 %v801_v46, %v800_v26 }
 0x12d   : > { %v803_v47 = vrot.slane %v802_v48, 1  ;;  %v767_v49 = vadd.f32 %v766_v42, %v765_v45 }
 0x12f   : > { %v804_v50 = vadd.f32 %v803_v47, %v802_v48 }
 0x131   : > { %v806_v51 = vsel %vm805_vm0, %v767_v49, %v804_v50 }
 0x132   : > { %807 = vst [vmem:[%s320_s30] sm:$0x3] %v806_v51 }
 0x133 PF: > { %s14_s14 = sadd.s32 1, %s1333_s14   ;;  %s1490_s12 = smov %s1329_s13 }
 0x134   : > { %p11_p5 = scmp.ge.s32.totalorder %s14_s14, 6   ;;  %s1491_s13 = smov %s1493_s15 }
 0x136   :  { %13 = sbr.rel (!%p11_p5) target bundleno = 2 (0x2), region = 81 }

// kernel: unet_forward.23
= control target key start
LH: loop header
LB: loop body
LE: loop exit
PB: predicated region body
PF: predicated region fallthrough
CT: control target
= control target key end

     0   :  { %s1209_s12 = smov 0   ;;  %s1211_s13 = smov 0   ;;  %s1311_s0 = inlined_call_operand.vmem [shape: bf16[4,128,128], index: 0, kind: input, shape index: {}]   ;;  %s1312_s1 = inlined_call_operand.vmem [shape: bf16[4,128,128], index: 1, kind: input, shape index: {}]   ;;  %s1313_s2 = inlined_call_operand.vmem [shape: bf16[4,128,128], index: 2, kind: output, shape index: {0}]   ;;  %s1314_s3 = inlined_call_operand.vmem [shape: f32[4,2,128], index: 3, kind: output, shape index: {1}]  }
   0x1   :  { %s1213_s14 = smov 0  }
   0x2 LB: > { %s40_s15 = sadd.s32 1, %s1182_s13  ;;  %p959_p0 = scmp.ge.s32.totalorder %s1186_s14, 1  ;;  %s1186_s14 = sphi %s1213_s14, %s14_s14   ;;  %s1182_s13 = sphi %s1211_s13, %s1316_s13   ;;  %s1178_s12 = sphi %s1209_s12, %s1315_s12  }
   0x3   : > { %p42_p1 = scmp.ge.s32.totalorder %s40_s15, 4  ;;  %p208_p2 = scmp.lt.s32.totalorder %s1186_s14, 5 }
   0x5   : > { %s1318_s15 = smov (%p42_p1, %s40_s15), 0  ;;  %p209_p3 = pnand %p959_p0, %p208_p2 }
   0x6   : > { %p267_p4 = scmp.lt.s32.totalorder (!%p209_p3), %s1178_s12, 3 }
   0x7   : > { %212 = sbr.rel (%p209_p3) target bundleno = 293 (0x125), region = 28 }
   0xc   : > { %s1320_s12 = smov (!%p267_p4, %s1178_s12), 3  ;;  %v1188_v6 = vmov 0   ;;  %vm701_vm0 = vcmask 1040384  }
   0xd   : > { %s1230_s16 = sshll.u32 %s1320_s12, 6  ;;  %s966_s26 = sshll.u32 %s1320_s12, 1 }
   0xe   : > { %s1236_s19 = scalar_lea.vmem %s1312_s1, %s1230_s16  ;;  %s1245_s22 = scalar_lea.vmem %s1311_s0, %s1230_s16 }
   0xf   : > { %v1156_v0 = vld [vmem:[%s1236_s19 + $0x38] sm:$0xff]   ;;  %v1157_v1 = vld [vmem:[%s1236_s19 + $0x30] sm:$0xff]   ;;  %v1158_v2 = vld [vmem:[%s1236_s19 + $0x28] sm:$0xff]   ;;  %s1288_s25 = scalar_lea.vmem %s1313_s2, %s1230_s16  ;;  %s312_s29 = scalar_lea.vmem %s1314_s3, %s966_s26 }
  0x10   : > { %1083 = vmatprep.subr.bf16.mxu0 %v1156_v0  ;;  %1115 = vmatprep.subr.bf16.mxu1 %v1156_v0  ;;  %v1159_v3 = vld [vmem:[%s1236_s19 + $0x20] sm:$0xff]   ;;  %v1160_v12 = vld [vmem:[%s1236_s19 + $0x18] sm:$0xff]   ;;  %v1161_v16 = vld [vmem:[%s1236_s19 + $0x10] sm:$0xff]  }
  0x11   : > { %1084 = vmatpush3.bf16.msra.mxu0 %v1156_v0  ;;  %1123 = vmatpush3.bf16.msra.mxu1 %v1156_v0  ;;  %v335_v4 = vld [vmem:[%s1245_s22] sm:$0xf]  ;;  %v336_v5 = vld [vmem:[%s1245_s22 + $0x4] sm:$0xf]  ;;  %v1162_v17 = vld [vmem:[%s1236_s19 + $0x8] sm:$0xff]  }
  0x12   : > { %1085 = vmatprep.subr.bf16.mxu0 %v1157_v1  ;;  %1116 = vmatprep.subr.bf16.mxu1 %v1157_v1  ;;  %v351_v7 = vmax.bf16 %v1188_v6, %v335_v4  ;;  %v352_v8 = vmax.bf16 %v1188_v6, %v336_v5  ;;  %v343_v9 = vld [vmem:[%s1245_s22 + $0x20] sm:$0xf]  ;;  %v344_v11 = vld [vmem:[%s1245_s22 + $0x24] sm:$0xf]  ;;  %v337_v19 = vld [vmem:[%s1245_s22 + $0x8] sm:$0xf] }
  0x13   : > { %v359_v13 = vmax.bf16 %v1188_v6, %v343_v9  ;;  %v360_v14 = vmax.bf16 %v1188_v6, %v344_v11  ;;  %v1163_v18 = vld [vmem:[%s1236_s19] sm:$0xff]   ;;  %v338_v20 = vld [vmem:[%s1245_s22 + $0xc] sm:$0xf]  ;;  %v339_v21 = vld [vmem:[%s1245_s22 + $0x10] sm:$0xf]  ;;  %v353_v27 = vmax.bf16 %v1188_v6, %v337_v19 }
  0x14   : > { %v967_v10 = vcombine.low %v351_v7, %v352_v8  ;;  %v345_v22 = vld [vmem:[%s1245_s22 + $0x28] sm:$0xf]  ;;  %v346_v23 = vld [vmem:[%s1245_s22 + $0x2c] sm:$0xf]  ;;  %v340_v24 = vld [vmem:[%s1245_s22 + $0x14] sm:$0xf]  ;;  %v354_v28 = vmax.bf16 %v1188_v6, %v338_v20  ;;  %v355_v29 = vmax.bf16 %v1188_v6, %v339_v21 }
  0x15   : > { %1086 = vmatpush3.bf16.msra.mxu0 %v1157_v1  ;;  %1124 = vmatpush3.bf16.msra.mxu1 %v1157_v1  ;;  %v971_v15 = vcombine.low %v359_v13, %v360_v14  ;;  %v347_v25 = vld [vmem:[%s1245_s22 + $0x30] sm:$0xf]  ;;  %v348_v26 = vld [vmem:[%s1245_s22 + $0x34] sm:$0xf]  ;;  %v361_v30 = vmax.bf16 %v1188_v6, %v345_v22  ;;  %v362_v31 = vmax.bf16 %v1188_v6, %v346_v23  ;;  %v341_v36 = vld [vmem:[%s1245_s22 + $0x18] sm:$0xf] }
  0x16   : > { %1087 = vmatprep.subr.bf16.mxu0 %v1158_v2  ;;  %1117 = vmatprep.subr.bf16.mxu1 %v1158_v2  ;;  %v356_v32 = vmax.bf16 %v1188_v6, %v340_v24  ;;  %v363_v33 = vmax.bf16 %v1188_v6, %v347_v25  ;;  %v364_v34 = vmax.bf16 %v1188_v6, %v348_v26  ;;  %v342_v39 = vld [vmem:[%s1245_s22 + $0x1c] sm:$0xf]  ;;  %v349_v41 = vld [vmem:[%s1245_s22 + $0x38] sm:$0xf] }
  0x17   : > { %1099 = vmatprep.mubr.bf16.mxu0 %v967_v10  ;;  %1107 = vmatprep.mubr.bf16.mxu1 %v971_v15  ;;  %v968_v35 = vcombine.low %v353_v27, %v354_v28  ;;  %v972_v37 = vcombine.low %v361_v30, %v362_v31  ;;  %v350_v42 = vld [vmem:[%s1245_s22 + $0x3c] sm:$0xf]  ;;  %v357_v43 = vmax.bf16 %v1188_v6, %v341_v36 }
  0x18   : > { %v969_v38 = vcombine.low %v355_v29, %v356_v32  ;;  %v973_v40 = vcombine.low %v363_v33, %v364_v34  ;;  %v358_v44 = vmax.bf16 %v1188_v6, %v342_v39  ;;  %v365_v45 = vmax.bf16 %v1188_v6, %v349_v41 }
  0x19   : > { %1088 = vmatpush3.bf16.msra.mxu0 %v1158_v2  ;;  %1125 = vmatpush3.bf16.msra.mxu1 %v1158_v2  ;;  %v366_v46 = vmax.bf16 %v1188_v6, %v350_v42 }
  0x1a   : > { %1089 = vmatprep.subr.bf16.mxu0 %v1159_v3  ;;  %1118 = vmatprep.subr.bf16.mxu1 %v1159_v3  ;;  %v970_v47 = vcombine.low %v357_v43, %v358_v44 }
  0x1b   : > { %v974_v48 = vcombine.low %v365_v45, %v366_v46 }
  0x1d   : > { %1090 = vmatpush3.bf16.msra.mxu0 %v1159_v3  ;;  %1126 = vmatpush3.bf16.msra.mxu1 %v1159_v3 }
  0x1e   : > { %1091 = vmatprep.subr.bf16.mxu0 %v1160_v12  ;;  %1119 = vmatprep.subr.bf16.mxu1 %v1160_v12 }
  0x21   : > { %1092 = vmatpush3.bf16.msra.mxu0 %v1160_v12  ;;  %1127 = vmatpush3.bf16.msra.mxu1 %v1160_v12 }
  0x22   : > { %1093 = vmatprep.subr.bf16.mxu0 %v1161_v16  ;;  %1120 = vmatprep.subr.bf16.mxu1 %v1161_v16 }
  0x25   : > { %1094 = vmatpush3.bf16.msra.mxu0 %v1161_v16  ;;  %1128 = vmatpush3.bf16.msra.mxu1 %v1161_v16 }
  0x26   : > { %1095 = vmatprep.subr.bf16.mxu0 %v1162_v17  ;;  %1121 = vmatprep.subr.bf16.mxu1 %v1162_v17 }
  0x29   : > { %1096 = vmatpush3.bf16.msra.mxu0 %v1162_v17  ;;  %1129 = vmatpush3.bf16.msra.mxu1 %v1162_v17 }
  0x2a   : > { %1097 = vmatprep.subr.bf16.mxu0 %v1163_v18  ;;  %1122 = vmatprep.subr.bf16.mxu1 %v1163_v18 }
  0x2d   : > { %1098 = vmatpush3.bf16.msra.mxu0 %v1163_v18  ;;  %1130 = vmatpush3.bf16.msra.mxu1 %v1163_v18 }
  0x30   : > { %1100 = vmatmul.mubr.bf16.vlgmr.msra.gmra.mxu0 %v968_v35  ;;  %1108 = vmatmul.mubr.bf16.vlgmr.msra.gmra.mxu1 %v972_v37 }
  0x31   : > { %1103 = vmatprep.mubr.bf16.mxu0 %v969_v38  ;;  %1111 = vmatprep.mubr.bf16.mxu1 %v973_v40 }
  0x38   : > { %1104 = vmatmul.mubr.bf16.gmra.mxu0 %v970_v47  ;;  %1112 = vmatmul.mubr.bf16.gmra.mxu1 %v974_v48 }
  0xf0   : > { %v1101_v49 = vpop.f32.mrf.mxu0  ;;  %v1109_v50 = vpop.f32.mrf.mxu1 }
  0xf1   : > { %v666_v2 = vmul.f32 %v1101_v49, %v1101_v49  ;;  %v674_v36 = vmul.f32 %v1109_v50, %v1109_v50 }
  0xf2   : > { %v529_v51 = vpop.f32.mrf.mxu0  ;;  %v561_v52 = vpop.f32.mrf.mxu1 }
  0xf3   : > { %v664_v59 = vmul.f32 %v529_v51, %v529_v51  ;;  %v672_v30 = vmul.f32 %v561_v52, %v561_v52 }
  0xf4   : > { %v1102_v53 = vpop.f32.mrf.mxu0  ;;  %v1110_v54 = vpop.f32.mrf.mxu1 }
  0xf5   : > { %v1028_v55 = vpack.c.bf16 %v1102_v53, %v1101_v49  ;;  %v1048_v56 = vpack.c.bf16 %v1110_v54, %v1109_v50  ;;  %v667_v7 = vmul.f32 %v1102_v53, %v1102_v53  ;;  %v675_v39 = vmul.f32 %v1110_v54, %v1110_v54 }
  0xf6   : > { %v532_v57 = vpop.f32.mrf.mxu0  ;;  %v564_v58 = vpop.f32.mrf.mxu1 }
  0xf7   : > { %1060 = vst [vmem:[%s1288_s25 + $0x8] sm:$0xff] %v1028_v55   ;;  %v643_v60 = vadd.f32 %v532_v57, %v529_v51  ;;  %v665_v61 = vmul.f32 %v532_v57, %v532_v57  ;;  %v1023_v62 = vpack.c.bf16 %v532_v57, %v529_v51  ;;  %1064 = vst [vmem:[%s1288_s25 + $0x28] sm:$0xff] %v1048_v56  }
  0xf8   : > { %v1105_v63 = vpop.f32.mrf.mxu0  ;;  %v1043_v0 = vpack.c.bf16 %v564_v58, %v561_v52  ;;  %v1113_v1 = vpop.f32.mrf.mxu1  ;;  %v673_v34 = vmul.f32 %v564_v58, %v564_v58 }
  0xf9   : > { %v644_v3 = vadd.f32 %v1101_v49, %v643_v60  ;;  %v680_v4 = vadd.f32 %v665_v61, %v664_v59  ;;  %1024 = vst [vmem:[%s1288_s25] sm:$0xff] %v1023_v62   ;;  %v670_v24 = vmul.f32 %v1105_v63, %v1105_v63  ;;  %v678_v48 = vmul.f32 %v1113_v1, %v1113_v1 }
  0xfa   : > { %v545_v5 = vpop.f32.mrf.mxu0  ;;  %1063 = vst [vmem:[%s1288_s25 + $0x20] sm:$0xff] %v1043_v0   ;;  %v577_v6 = vpop.f32.mrf.mxu1 }
  0xfb   : > { %v681_v8 = vadd.f32 %v680_v4, %v666_v2  ;;  %v645_v9 = vadd.f32 %v1102_v53, %v644_v3  ;;  %v668_v13 = vmul.f32 %v545_v5, %v545_v5  ;;  %v676_v43 = vmul.f32 %v577_v6, %v577_v6 }
  0xfc   : > { %v1106_v10 = vpop.f32.mrf.mxu0  ;;  %v1114_v11 = vpop.f32.mrf.mxu1 }
  0xfd   : > { %v646_v12 = vadd.f32 %v645_v9, %v545_v5  ;;  %v682_v14 = vadd.f32 %v681_v8, %v667_v7  ;;  %v1038_v15 = vpack.c.bf16 %v1106_v10, %v1105_v63  ;;  %v1058_v17 = vpack.c.bf16 %v1114_v11, %v1113_v1 }
  0xfe   : > { %v548_v16 = vpop.f32.mrf.mxu0  ;;  %v580_v18 = vpop.f32.mrf.mxu1  ;;  %v671_v27 = vmul.f32 %v1106_v10, %v1106_v10 }
  0xff   : > { %v683_v19 = vadd.f32 %v682_v14, %v668_v13  ;;  %1062 = vst [vmem:[%s1288_s25 + $0x18] sm:$0xff] %v1038_v15   ;;  %v647_v20 = vadd.f32 %v646_v12, %v548_v16  ;;  %v669_v21 = vmul.f32 %v548_v16, %v548_v16  ;;  %v1033_v22 = vpack.c.bf16 %v548_v16, %v545_v5 }
 0x100   : > { %1066 = vst [vmem:[%s1288_s25 + $0x38] sm:$0xff] %v1058_v17   ;;  %v1053_v23 = vpack.c.bf16 %v580_v18, %v577_v6  ;;  %v677_v47 = vmul.f32 %v580_v18, %v580_v18 }
 0x101   : > { %v648_v25 = vadd.f32 %v1105_v63, %v647_v20  ;;  %v684_v26 = vadd.f32 %v683_v19, %v669_v21  ;;  %1061 = vst [vmem:[%s1288_s25 + $0x10] sm:$0xff] %v1033_v22  }
 0x102   : > { %1065 = vst [vmem:[%s1288_s25 + $0x30] sm:$0xff] %v1053_v23  }
 0x103   : > { %v649_v28 = vadd.f32 %v1106_v10, %v648_v25  ;;  %v685_v29 = vadd.f32 %v684_v26, %v670_v24 }
 0x105   : > { %v686_v31 = vadd.f32 %v685_v29, %v671_v27  ;;  %v650_v32 = vadd.f32 %v649_v28, %v561_v52  ;;  %v679_v52 = vmul.f32 %v1114_v11, %v1114_v11 }
 0x107   : > { %v651_v33 = vadd.f32 %v650_v32, %v564_v58  ;;  %v687_v35 = vadd.f32 %v686_v31, %v672_v30 }
 0x109   : > { %v652_v37 = vadd.f32 %v1109_v50, %v651_v33  ;;  %v688_v38 = vadd.f32 %v687_v35, %v673_v34 }
 0x10b   : > { %v689_v40 = vadd.f32 %v688_v38, %v674_v36  ;;  %v653_v41 = vadd.f32 %v1110_v54, %v652_v37 }
 0x10d   : > { %v654_v42 = vadd.f32 %v653_v41, %v577_v6  ;;  %v690_v44 = vadd.f32 %v689_v40, %v675_v39 }
 0x10f   : > { %v691_v45 = vadd.f32 %v690_v44, %v676_v43  ;;  %v655_v46 = vadd.f32 %v654_v42, %v580_v18 }
 0x111   : > { %v656_v49 = vadd.f32 %v1113_v1, %v655_v46  ;;  %v692_v51 = vadd.f32 %v691_v45, %v677_v47 }
 0x113   : > { %v657_v53 = vadd.f32 %v1114_v11, %v656_v49  ;;  %v693_v55 = vadd.f32 %v692_v51, %v678_v48 }
 0x115   : > { %v658_v56 = vrot.slane %v657_v53, 4  ;;  %v694_v57 = vadd.f32 %v693_v55, %v679_v52 }
 0x117   : > { %v659_v50 = vadd.f32 %v658_v56, %v657_v53  ;;  %v695_v58 = vrot.slane %v694_v57, 4 }
 0x119   : > { %v660_v59 = vrot.slane %v659_v50, 2  ;;  %v696_v60 = vadd.f32 %v695_v58, %v694_v57 }
 0x11b   : > { %v661_v54 = vadd.f32 %v660_v59, %v659_v50  ;;  %v697_v61 = vrot.slane %v696_v60, 2 }
 0x11d   : > { %v662_v62 = vrot.slane %v661_v54, 1  ;;  %v698_v63 = vadd.f32 %v697_v61, %v696_v60 }
 0x11f   : > { %v699_v0 = vrot.slane %v698_v63, 1  ;;  %v663_v1 = vadd.f32 %v662_v62, %v661_v54 }
 0x121   : > { %v700_v2 = vadd.f32 %v699_v0, %v698_v63 }
 0x123   : > { %v702_v3 = vsel %vm701_vm0, %v663_v1, %v700_v2 }
 0x124   : > { %703 = vst [vmem:[%s312_s29] sm:$0x3] %v702_v3 }
 0x125 PF: > { %s14_s14 = sadd.s32 1, %s1186_s14   ;;  %s1315_s12 = smov %s1182_s13 }
 0x126   : > { %p11_p5 = scmp.ge.s32.totalorder %s14_s14, 6   ;;  %s1316_s13 = smov %s1318_s15 }
 0x128   :  { %13 = sbr.rel (!%p11_p5) target bundleno = 2 (0x2), region = 81 }

// kernel: unet_forward.24
= control target key start
LH: loop header
LB: loop body
LE: loop exit
PB: predicated region body
PF: predicated region fallthrough
CT: control target
= control target key end

     0   :  { %s370_s0 = inlined_call_operand.vmem [shape: bf16[128,128], index: 0, kind: input, shape index: {}]   ;;  %s371_s1 = inlined_call_operand.vmem [shape: f32[1,128], index: 1, kind: input, shape index: {}]   ;;  %s372_s2 = inlined_call_operand.vmem [shape: f32[1,128], index: 2, kind: input, shape index: {}]   ;;  %s373_s3 = inlined_call_operand.vmem [shape: bf16[128,128], index: 3, kind: output, shape index: {}]  }
   0x1   :  { %v211_v0 = vld [vmem:[%s370_s0] sm:$0xff]   ;;  %v282_v4 = vld [vmem:[%s370_s0 + $0x8] sm:$0xff]   ;;  %v283_v5 = vld [vmem:[%s370_s0 + $0x10] sm:$0xff]  }
   0x2   :  { %v176_v1 = vld [vmem:[%s371_s1] ss:$0 sm:$0xff]  ;;  %v212_v2 = vunpack.c.l.bf16 %v211_v0  ;;  %v213_v3 = vunpack.c.h.bf16 %v211_v0  ;;  %v284_v6 = vld [vmem:[%s370_s0 + $0x18] sm:$0xff]   ;;  %v216_v8 = vunpack.c.l.bf16 %v282_v4  ;;  %v217_v9 = vunpack.c.h.bf16 %v282_v4  ;;  %v286_v25 = vld [vmem:[%s370_s0 + $0x28] sm:$0xff]  }
   0x3   :  { %v177_v7 = vld [vmem:[%s372_s2] ss:$0 sm:$0xff]  ;;  %v220_v10 = vunpack.c.l.bf16 %v283_v5  ;;  %v221_v11 = vunpack.c.h.bf16 %v283_v5  ;;  %v224_v14 = vunpack.c.l.bf16 %v284_v6  ;;  %v225_v15 = vunpack.c.h.bf16 %v284_v6  ;;  %v287_v30 = vld [vmem:[%s370_s0 + $0x30] sm:$0xff]   ;;  %v288_v35 = vld [vmem:[%s370_s0 + $0x38] sm:$0xff]  }
   0x4   :  { %v53_v12 = vmul.f32 %v212_v2, %v176_v1  ;;  %v54_v13 = vmul.f32 %v213_v3, %v176_v1  ;;  %v55_v16 = vmul.f32 %v216_v8, %v176_v1  ;;  %v56_v17 = vmul.f32 %v217_v9, %v176_v1  ;;  %v285_v20 = vld [vmem:[%s370_s0 + $0x20] sm:$0xff]  }
   0x5   :  { %v57_v18 = vmul.f32 %v220_v10, %v176_v1  ;;  %v58_v19 = vmul.f32 %v221_v11, %v176_v1  ;;  %v59_v23 = vmul.f32 %v224_v14, %v176_v1  ;;  %v60_v24 = vmul.f32 %v225_v15, %v176_v1 }
   0x6   :  { %v76_v21 = vadd.f32 %v177_v7, %v53_v12  ;;  %v77_v22 = vadd.f32 %v177_v7, %v54_v13  ;;  %v78_v26 = vadd.f32 %v177_v7, %v55_v16  ;;  %v79_v27 = vadd.f32 %v177_v7, %v56_v17 }
   0x7   :  { %v80_v28 = vadd.f32 %v177_v7, %v57_v18  ;;  %v81_v29 = vadd.f32 %v177_v7, %v58_v19  ;;  %v82_v32 = vadd.f32 %v177_v7, %v59_v23  ;;  %v83_v33 = vadd.f32 %v177_v7, %v60_v24 }
   0x8   :  { %v245_v31 = vpack.c.bf16 %v77_v22, %v76_v21  ;;  %v228_v34 = vunpack.c.l.bf16 %v285_v20  ;;  %v250_v36 = vpack.c.bf16 %v79_v27, %v78_v26  ;;  %v229_v38 = vunpack.c.h.bf16 %v285_v20 }
   0x9   :  { %v255_v37 = vpack.c.bf16 %v81_v29, %v80_v28  ;;  %v232_v39 = vunpack.c.l.bf16 %v286_v25  ;;  %v260_v40 = vpack.c.bf16 %v83_v33, %v82_v32  ;;  %v233_v42 = vunpack.c.h.bf16 %v286_v25 }
   0xa   :  { %246 = vst [vmem:[%s373_s3] sm:$0xff] %v245_v31   ;;  %v61_v41 = vmul.f32 %v228_v34, %v176_v1  ;;  %v236_v43 = vunpack.c.l.bf16 %v287_v30  ;;  %289 = vst [vmem:[%s373_s3 + $0x8] sm:$0xff] %v250_v36   ;;  %v62_v44 = vmul.f32 %v229_v38, %v176_v1  ;;  %v237_v46 = vunpack.c.h.bf16 %v287_v30 }
   0xb   :  { %290 = vst [vmem:[%s373_s3 + $0x10] sm:$0xff] %v255_v37   ;;  %v63_v45 = vmul.f32 %v232_v39, %v176_v1  ;;  %v240_v47 = vunpack.c.l.bf16 %v288_v35  ;;  %291 = vst [vmem:[%s373_s3 + $0x18] sm:$0xff] %v260_v40   ;;  %v64_v49 = vmul.f32 %v233_v42, %v176_v1  ;;  %v241_v51 = vunpack.c.h.bf16 %v288_v35 }
   0xc   :  { %v84_v48 = vadd.f32 %v177_v7, %v61_v41  ;;  %v65_v50 = vmul.f32 %v236_v43, %v176_v1  ;;  %v85_v52 = vadd.f32 %v177_v7, %v62_v44  ;;  %v66_v54 = vmul.f32 %v237_v46, %v176_v1 }
   0xd   :  { %v86_v53 = vadd.f32 %v177_v7, %v63_v45  ;;  %v67_v55 = vmul.f32 %v240_v47, %v176_v1  ;;  %v87_v56 = vadd.f32 %v177_v7, %v64_v49  ;;  %v68_v58 = vmul.f32 %v241_v51, %v176_v1 }
   0xe   :  { %v88_v57 = vadd.f32 %v177_v7, %v65_v50  ;;  %v265_v59 = vpack.c.bf16 %v85_v52, %v84_v48  ;;  %v89_v60 = vadd.f32 %v177_v7, %v66_v54 }
   0xf   :  { %v90_v61 = vadd.f32 %v177_v7, %v67_v55  ;;  %v270_v62 = vpack.c.bf16 %v87_v56, %v86_v53  ;;  %v91_v63 = vadd.f32 %v177_v7, %v68_v58 }
  0x10   :  { %292 = vst [vmem:[%s373_s3 + $0x20] sm:$0xff] %v265_v59   ;;  %v275_v0 = vpack.c.bf16 %v89_v60, %v88_v57 }
  0x11   :  { %293 = vst [vmem:[%s373_s3 + $0x28] sm:$0xff] %v270_v62   ;;  %v280_v2 = vpack.c.bf16 %v91_v63, %v90_v61 }
  0x12   :  { %294 = vst [vmem:[%s373_s3 + $0x30] sm:$0xff] %v275_v0  }
  0x13   :  { %295 = vst [vmem:[%s373_s3 + $0x38] sm:$0xff] %v280_v2  }

// kernel: unet_forward.25
= control target key start
LH: loop header
LB: loop body
LE: loop exit
PB: predicated region body
PF: predicated region fallthrough
CT: control target
= control target key end

     0   :  { %10 = vsyncpa [#allocation4], 0  ;;  %s1509_s0 = inlined_call_operand.vmem [shape: bf16[4,128,128], index: 0, kind: input, shape index: {}]   ;;  %s1510_s1 = inlined_call_operand.vmem [shape: bf16[4,128,128], index: 1, kind: input, shape index: {}]   ;;  %s1511_s2 = inlined_call_operand.vmem [shape: f32[1,128], index: 2, kind: input, shape index: {}]   ;;  %s1512_s3 = inlined_call_operand.vmem [shape: f32[4,128,128], index: 3, kind: output, shape index: {0}]   ;;  %s1513_s4 = inlined_call_operand.hbm [shape: f32[4,2,128], index: 4, kind: output, shape index: {1}]  }
   0x1   :  { %12 = vsyncpa [#allocation4 + $0x1], 0  ;;  %s1287_s15 = smov 0   ;;  %s1289_s16 = smov 0  }
   0x2   :  { %s1291_s17 = smov 0   ;;  %s1293_s18 = smov 0  }
   0x3   :  { %s1295_s19 = smov 0   ;;  %s1297_s20 = smov 0  }
   0x4 LB: > { %s985_s21 = sadd.s32 4294967295, %s1258_s20   ;;  %s986_s22 = sadd.s32 4294967294, %s1258_s20   ;;  %s1258_s20 = sphi %s1297_s20, %s18_s20   ;;  %s1254_s19 = sphi %s1295_s19, %s1520_s19   ;;  %s1250_s18 = sphi %s1293_s18, %s1519_s18   ;;  %s1246_s17 = sphi %s1291_s17, %s1518_s17   ;;  %s1242_s16 = sphi %s1289_s16, %s1517_s16   ;;  %s1238_s15 = sphi %s1287_s15, %s1516_s15  }
   0x5   : > { %s44_s23 = sadd.s32 1, %s1254_s19  ;;  %s171_s24 = sadd.s32 1, %s1246_s17 }
   0x6   : > { %p46_p0 = scmp.ge.s32.totalorder %s44_s23, 4  ;;  %p181_p1 = scmp.ne.s32.totalorder %s1246_s17, %s1242_s16 }
   0x7   : > { %p182_p2 = scmp.eq.s32.totalorder %s985_s21, 3  ;;  %p187_p3 = scmp.ne.s32.totalorder %s1242_s16, %s1238_s15 }
   0x8   : > { %s1522_s23 = smov (%p46_p0, %s44_s23), 0  ;;  %p188_p5 = scmp.eq.s32.totalorder %s986_s22, 3 }
   0x9   : > { %p1327_p4 = por %p182_p2, %p181_p1  ;;  %s166_s26 = ssub.s32 %s1254_s19, %s1522_s23 }
   0xa   : > { %p990_p6 = scmp.ge.s32.totalorder %s1258_s20, 1  ;;  %p169_p7 = scmp.eq.s32.totalorder %s166_s26, 0 }
   0xb   : > { %p1334_p8 = por %p188_p5, %p187_p3  ;;  %p244_p9 = scmp.lt.s32.totalorder %s1258_s20, 5 }
   0xc   : > { %s1340_s28 = scalar_select %p169_p7, %s1246_s17, %s171_s24  }
   0xd   : > { %p245_p10 = pnand %p990_p6, %p244_p9 }
   0xe   : > { %p305_p11 = scmp.lt.s32.totalorder (!%p245_p10), %s1250_s18, 3  ;;  %s301_s24 = sand.u32 (!%p245_p10), 1, %s1242_s16  }
   0xf   : > { %248 = sbr.rel (%p245_p10) target bundleno = 314 (0x13a), region = 32  ;;  %s991_s26 = sshll.u32 (!%p245_p10), %s301_s24, 1 }
  0x10   : > { %s805_s9 = scalar_lea.sflag (!%p245_p10), [#allocation4], %s301_s24 }
  0x14   : > { %s1344_s29 = scalar_select %p305_p11, %s1250_s18, 3  ;;  %v1260_v6 = vmov 0   ;;  %v1014_v49 = vld [vmem:[%s1511_s2] ss:$0 sm:$0xff]  ;;  %vm734_vm0 = vcmask 1040384  }
  0x16   : > { %s1019_s30 = sshll.u32 %s1344_s29, 6  ;;  %s1021_s13 = sshll.u32 %s1344_s29, 7 }
  0x17   : > { %s1350_s7 = scalar_lea.vmem %s1510_s1, %s1019_s30  ;;  %s1358_s10 = scalar_lea.vmem %s1509_s0, %s1019_s30 }
  0x18   : > { %v1142_v0 = vld [vmem:[%s1350_s7 + $0x38] sm:$0xff]   ;;  %v1143_v1 = vld [vmem:[%s1350_s7 + $0x30] sm:$0xff]   ;;  %v1144_v2 = vld [vmem:[%s1350_s7 + $0x28] sm:$0xff]   ;;  %s1423_s22 = scalar_lea.vmem %s1512_s3, %s1021_s13  ;;  %s1016_s29 = sshll.u32 %s1250_s18, 5 }
  0x19   : > { %1038 = vmatprep.subr.bf16.mxu0 %v1142_v0  ;;  %1070 = vmatprep.subr.bf16.mxu1 %v1142_v0  ;;  %v1145_v3 = vld [vmem:[%s1350_s7 + $0x20] sm:$0xff]   ;;  %v1146_v12 = vld [vmem:[%s1350_s7 + $0x18] sm:$0xff]   ;;  %v1147_v16 = vld [vmem:[%s1350_s7 + $0x10] sm:$0xff]   ;;  %s303_s30 = scalar_lea.vmem [#allocation3], %s991_s26  ;;  %s1469_s8 = scalar_lea.hbm %s1513_s4, %s1016_s29 }
  0x1a   : > { %1039 = vmatpush3.bf16.msra.mxu0 %v1142_v0  ;;  %1078 = vmatpush3.bf16.msra.mxu1 %v1142_v0  ;;  %v368_v4 = vld [vmem:[%s1358_s10] sm:$0xf]  ;;  %v369_v5 = vld [vmem:[%s1358_s10 + $0x4] sm:$0xf]  ;;  %v1148_v17 = vld [vmem:[%s1350_s7 + $0x8] sm:$0xff]   ;;  %s824_s5 = sshll.u32 %s303_s30, 4  ;;  %s825_s5 = int_to_ptr.vmem [resolvable:$true] %s824_s5 }
  0x1b   : > { %1040 = vmatprep.subr.bf16.mxu0 %v1143_v1  ;;  %1071 = vmatprep.subr.bf16.mxu1 %v1143_v1  ;;  %v384_v7 = vmax.bf16 %v1260_v6, %v368_v4  ;;  %v385_v8 = vmax.bf16 %v1260_v6, %v369_v5  ;;  %v376_v9 = vld [vmem:[%s1358_s10 + $0x20] sm:$0xf]  ;;  %v377_v11 = vld [vmem:[%s1358_s10 + $0x24] sm:$0xf]  ;;  %v370_v19 = vld [vmem:[%s1358_s10 + $0x8] sm:$0xf] }
  0x1c   : > { %v392_v13 = vmax.bf16 %v1260_v6, %v376_v9  ;;  %v393_v14 = vmax.bf16 %v1260_v6, %v377_v11  ;;  %v1149_v18 = vld [vmem:[%s1350_s7] sm:$0xff]   ;;  %v371_v20 = vld [vmem:[%s1358_s10 + $0xc] sm:$0xf]  ;;  %v372_v21 = vld [vmem:[%s1358_s10 + $0x10] sm:$0xf]  ;;  %v386_v27 = vmax.bf16 %v1260_v6, %v370_v19  ;;  %s1261_s18 = smov [#allocation3]  }
  0x1d   : > { %v998_v10 = vcombine.low %v384_v7, %v385_v8  ;;  %v378_v22 = vld [vmem:[%s1358_s10 + $0x28] sm:$0xf]  ;;  %v379_v23 = vld [vmem:[%s1358_s10 + $0x2c] sm:$0xf]  ;;  %v373_v24 = vld [vmem:[%s1358_s10 + $0x14] sm:$0xf]  ;;  %v387_v28 = vmax.bf16 %v1260_v6, %v371_v20  ;;  %v388_v29 = vmax.bf16 %v1260_v6, %v372_v21 }
  0x1e   : > { %1041 = vmatpush3.bf16.msra.mxu0 %v1143_v1  ;;  %1079 = vmatpush3.bf16.msra.mxu1 %v1143_v1  ;;  %v1002_v15 = vcombine.low %v392_v13, %v393_v14  ;;  %v380_v25 = vld [vmem:[%s1358_s10 + $0x30] sm:$0xf]  ;;  %v381_v26 = vld [vmem:[%s1358_s10 + $0x34] sm:$0xf]  ;;  %v394_v30 = vmax.bf16 %v1260_v6, %v378_v22  ;;  %v395_v31 = vmax.bf16 %v1260_v6, %v379_v23  ;;  %v374_v36 = vld [vmem:[%s1358_s10 + $0x18] sm:$0xf] }
  0x1f   : > { %1042 = vmatprep.subr.bf16.mxu0 %v1144_v2  ;;  %1072 = vmatprep.subr.bf16.mxu1 %v1144_v2  ;;  %v389_v32 = vmax.bf16 %v1260_v6, %v373_v24  ;;  %v396_v33 = vmax.bf16 %v1260_v6, %v380_v25  ;;  %v397_v34 = vmax.bf16 %v1260_v6, %v381_v26  ;;  %v375_v39 = vld [vmem:[%s1358_s10 + $0x1c] sm:$0xf]  ;;  %v382_v41 = vld [vmem:[%s1358_s10 + $0x38] sm:$0xf]  ;;  %s1186_s11 = sshll.u32 %s1261_s18, 4  ;;  %s1187_s11 = int_to_ptr.vmem [resolvable:$false] %s1186_s11 }
  0x20   : > { %1054 = vmatprep.mubr.bf16.mxu0 %v998_v10  ;;  %1062 = vmatprep.mubr.bf16.mxu1 %v1002_v15  ;;  %v999_v35 = vcombine.low %v386_v27, %v387_v28  ;;  %v1003_v37 = vcombine.low %v394_v30, %v395_v31  ;;  %v383_v42 = vld [vmem:[%s1358_s10 + $0x3c] sm:$0xf]  ;;  %v390_v43 = vmax.bf16 %v1260_v6, %v374_v36  ;;  %s1182_s10 = scalar_lea.vmem %s825_s5, 32  ;;  %s1188_s12 = scalar_lea.vmem %s1187_s11, 64 }
  0x21   : > { %v1000_v38 = vcombine.low %v388_v29, %v389_v32  ;;  %v1004_v40 = vcombine.low %v396_v33, %v397_v34  ;;  %v391_v44 = vmax.bf16 %v1260_v6, %v375_v39  ;;  %v398_v45 = vmax.bf16 %v1260_v6, %v382_v41  ;;  %p1183_p12 = scmp.ne.s32.totalorder %s825_s5, %s1182_s10  ;;  %p1189_p1 = scmp.lt.s32.totalorder %s825_s5, %s1187_s11 }
  0x22   : > { %1043 = vmatpush3.bf16.msra.mxu0 %v1144_v2  ;;  %1080 = vmatpush3.bf16.msra.mxu1 %v1144_v2  ;;  %v399_v46 = vmax.bf16 %v1260_v6, %v383_v42  ;;  %p1190_p2 = scmp.lt.s32.totalorder %s1188_s12, %s1182_s10 }
  0x23   : > { %1044 = vmatprep.subr.bf16.mxu0 %v1145_v3  ;;  %1073 = vmatprep.subr.bf16.mxu1 %v1145_v3  ;;  %v1001_v47 = vcombine.low %v390_v43, %v391_v44  ;;  %p1184_p13 = pnand %p1183_p12, %p1327_p4 }
  0x24   : > { %v1005_v48 = vcombine.low %v398_v45, %v399_v46  ;;  %p1191_p3 = por %p1190_p2, %p1189_p1 }
  0x25   : > { %p1185_p0 = pneg %p1184_p13 }
  0x26   : > { %1045 = vmatpush3.bf16.msra.mxu0 %v1145_v3  ;;  %1081 = vmatpush3.bf16.msra.mxu1 %v1145_v3 }
  0x27   : > { %1046 = vmatprep.subr.bf16.mxu0 %v1146_v12  ;;  %1074 = vmatprep.subr.bf16.mxu1 %v1146_v12  ;;  %p1192_p5 = pnand %p1191_p3, %p1185_p0 }
  0x2a   : > { %1047 = vmatpush3.bf16.msra.mxu0 %v1146_v12  ;;  %1082 = vmatpush3.bf16.msra.mxu1 %v1146_v12 }
  0x2b   : > { %1048 = vmatprep.subr.bf16.mxu0 %v1147_v16  ;;  %1075 = vmatprep.subr.bf16.mxu1 %v1147_v16 }
  0x2e   : > { %1049 = vmatpush3.bf16.msra.mxu0 %v1147_v16  ;;  %1083 = vmatpush3.bf16.msra.mxu1 %v1147_v16 }
  0x2f   : > { %1050 = vmatprep.subr.bf16.mxu0 %v1148_v17  ;;  %1076 = vmatprep.subr.bf16.mxu1 %v1148_v17 }
  0x32   : > { %1051 = vmatpush3.bf16.msra.mxu0 %v1148_v17  ;;  %1084 = vmatpush3.bf16.msra.mxu1 %v1148_v17 }
  0x33   : > { %1052 = vmatprep.subr.bf16.mxu0 %v1149_v18  ;;  %1077 = vmatprep.subr.bf16.mxu1 %v1149_v18 }
  0x36   : > { %1053 = vmatpush3.bf16.msra.mxu0 %v1149_v18  ;;  %1085 = vmatpush3.bf16.msra.mxu1 %v1149_v18 }
  0x39   : > { %1055 = vmatmul.mubr.bf16.vlgmr.msra.gmra.mxu0 %v999_v35  ;;  %1063 = vmatmul.mubr.bf16.vlgmr.msra.gmra.mxu1 %v1003_v37 }
  0x3a   : > { %1058 = vmatprep.mubr.bf16.mxu0 %v1000_v38  ;;  %1066 = vmatprep.mubr.bf16.mxu1 %v1004_v40 }
  0x41   : > { %1059 = vmatmul.mubr.bf16.gmra.mxu0 %v1001_v47  ;;  %1067 = vmatmul.mubr.bf16.gmra.mxu1 %v1005_v48 }
  0xf9   : > { %v1056_v50 = vpop.f32.mrf.mxu0  ;;  %v1400_v51 = vpop.f32.mrf.mxu1 }
  0xfa   : > { %v746_v52 = vadd.f32 %v1056_v50, %v1014_v49  ;;  %v754_v53 = vadd.f32 %v1400_v51, %v1014_v49  ;;  %v699_v7 = vmul.f32 %v1056_v50, %v1056_v50 }
  0xfb   : > { %v562_v54 = vpop.f32.mrf.mxu0  ;;  %v1403_v55 = vpop.f32.mrf.mxu1 }
  0xfc   : > { %1150 = vtanh.f32 %v746_v52  ;;  %v744_v56 = vadd.f32 %v1014_v49, %v562_v54  ;;  %v752_v58 = vadd.f32 %v1014_v49, %v1403_v55  ;;  %v697_v61 = vmul.f32 %v562_v54, %v562_v54 }
  0xfd   : > { %v1057_v57 = vpop.f32.mrf.mxu0  ;;  %1152 = vtanh.f32 %v754_v53  ;;  %v1406_v59 = vpop.f32.mrf.mxu1  ;;  %v705_v45 = vmul.f32 %v1403_v55, %v1403_v55 }
  0xfe   : > { %1154 = vtanh.f32 %v744_v56  ;;  %v747_v60 = vadd.f32 %v1057_v57, %v1014_v49  ;;  %v755_v63 = vadd.f32 %v1406_v59, %v1014_v49  ;;  %v700_v14 = vmul.f32 %v1057_v57, %v1057_v57 }
  0xff   : > { %v565_v62 = vpop.f32.mrf.mxu0  ;;  %1156 = vtanh.f32 %v752_v58  ;;  %v1409_v0 = vpop.f32.mrf.mxu1  ;;  %v707_v56 = vmul.f32 %v1400_v51, %v1400_v51 }
 0x100   : > { %1158 = vtanh.f32 %v747_v60  ;;  %v676_v1 = vadd.f32 %v565_v62, %v562_v54  ;;  %v698_v2 = vmul.f32 %v565_v62, %v565_v62  ;;  %v745_v3 = vadd.f32 %v1014_v49, %v565_v62 }
 0x101   : > { %v1060_v4 = vpop.f32.mrf.mxu0  ;;  %1160 = vtanh.f32 %v755_v63  ;;  %v753_v5 = vadd.f32 %v1014_v49, %v1409_v0  ;;  %v1412_v6 = vpop.f32.mrf.mxu1  ;;  %v706_v52 = vmul.f32 %v1409_v0, %v1409_v0 }
 0x102   : > { %v677_v8 = vadd.f32 %v1056_v50, %v676_v1  ;;  %v713_v9 = vadd.f32 %v698_v2, %v697_v61  ;;  %1162 = vtanh.f32 %v745_v3  ;;  %v750_v10 = vadd.f32 %v1060_v4, %v1014_v49 }
 0x103   : > { %v578_v11 = vpop.f32.mrf.mxu0  ;;  %1164 = vtanh.f32 %v753_v5  ;;  %v758_v12 = vadd.f32 %v1412_v6, %v1014_v49  ;;  %v1415_v13 = vpop.f32.mrf.mxu1  ;;  %v703_v35 = vmul.f32 %v1060_v4, %v1060_v4  ;;  %v708_v61 = vmul.f32 %v1406_v59, %v1406_v59 }
 0x104   : > { %v714_v15 = vadd.f32 %v713_v9, %v699_v7  ;;  %v678_v16 = vadd.f32 %v1057_v57, %v677_v8  ;;  %v748_v17 = vadd.f32 %v1014_v49, %v578_v11  ;;  %1166 = vtanh.f32 %v750_v10 }
 0x105   : > { %v1061_v18 = vpop.f32.mrf.mxu0  ;;  %v1418_v19 = vpop.f32.mrf.mxu1  ;;  %v701_v21 = vmul.f32 %v578_v11, %v578_v11  ;;  %v756_v25 = vadd.f32 %v1014_v49, %v1415_v13  ;;  %v711_v10 = vmul.f32 %v1412_v6, %v1412_v6 }
 0x106   : > { %v679_v20 = vadd.f32 %v678_v16, %v578_v11  ;;  %v715_v22 = vadd.f32 %v714_v15, %v700_v14  ;;  %1168 = vtanh.f32 %v748_v17  ;;  %v751_v23 = vadd.f32 %v1061_v18, %v1014_v49 }
 0x107   : > { %v581_v24 = vpop.f32.mrf.mxu0  ;;  %1170 = vtanh.f32 %v758_v12  ;;  %v759_v26 = vadd.f32 %v1418_v19, %v1014_v49  ;;  %v613_v27 = vpop.f32.mrf.mxu1  ;;  %v704_v40 = vmul.f32 %v1061_v18, %v1061_v18 }
 0x108   : > { %v716_v28 = vadd.f32 %v715_v22, %v701_v21  ;;  %v680_v29 = vadd.f32 %v679_v20, %v581_v24  ;;  %v702_v30 = vmul.f32 %v581_v24, %v581_v24  ;;  %v749_v31 = vadd.f32 %v1014_v49, %v581_v24 }
 0x109   : > { %v1151_v32 = vpop.eup %1150  ;;  %1172 = vtanh.f32 %v751_v23  ;;  %v757_v33 = vadd.f32 %v1014_v49, %v613_v27  ;;  %v710_v8 = vmul.f32 %v613_v27, %v613_v27 }
 0x10a   : > { %v1153_v34 = vpop.eup %1152  ;;  %778 = vst [vmem:[%s1423_s22 + $0x10] sm:$0xff] %v1151_v32  ;;  %v681_v36 = vadd.f32 %v1060_v4, %v680_v29  ;;  %v717_v37 = vadd.f32 %v716_v28, %v702_v30  ;;  %1174 = vtanh.f32 %v749_v31 }
 0x10b   : > { %v1155_v38 = vpop.eup %1154  ;;  %786 = vst [vmem:[%s1423_s22 + $0x50] sm:$0xff] %v1153_v34  ;;  %1176 = vtanh.f32 %v756_v25 }
 0x10c   : > { %v1157_v39 = vpop.eup %1156  ;;  %776 = vst [vmem:[%s1423_s22] sm:$0xff] %v1155_v38  ;;  %v682_v41 = vadd.f32 %v1061_v18, %v681_v36  ;;  %v718_v42 = vadd.f32 %v717_v37, %v703_v35  ;;  %1178 = vtanh.f32 %v759_v26 }
 0x10d   : > { %v1159_v43 = vpop.eup %1158  ;;  %784 = vst [vmem:[%s1423_s22 + $0x40] sm:$0xff] %v1157_v39  ;;  %1180 = vtanh.f32 %v757_v33 }
 0x10e   : > { %v1161_v44 = vpop.eup %1160  ;;  %779 = vst [vmem:[%s1423_s22 + $0x18] sm:$0xff] %v1159_v43  ;;  %v719_v46 = vadd.f32 %v718_v42, %v704_v40  ;;  %v683_v47 = vadd.f32 %v682_v41, %v1403_v55 }
 0x10f   : > { %v1163_v48 = vpop.eup %1162  ;;  %787 = vst [vmem:[%s1423_s22 + $0x58] sm:$0xff] %v1161_v44 }
 0x110   : > { %v1165_v49 = vpop.eup %1164  ;;  %777 = vst [vmem:[%s1423_s22 + $0x8] sm:$0xff] %v1163_v48  ;;  %v684_v50 = vadd.f32 %v683_v47, %v1409_v0  ;;  %v720_v53 = vadd.f32 %v719_v46, %v705_v45 }
 0x111   : > { %785 = vst [vmem:[%s1423_s22 + $0x48] sm:$0xff] %v1165_v49  ;;  %v1167_v54 = vpop.eup %1166 }
 0x112   : > { %v685_v55 = vadd.f32 %v1400_v51, %v684_v50  ;;  %v721_v57 = vadd.f32 %v720_v53, %v706_v52  ;;  %782 = vst [vmem:[%s1423_s22 + $0x30] sm:$0xff] %v1167_v54  ;;  %v709_v51 = vmul.f32 %v1415_v13, %v1415_v13 }
 0x113   : > { %v1169_v58 = vpop.eup %1168 }
 0x114   : > { %v1171_v60 = vpop.eup %1170  ;;  %780 = vst [vmem:[%s1423_s22 + $0x20] sm:$0xff] %v1169_v58  ;;  %v722_v62 = vadd.f32 %v721_v57, %v707_v56  ;;  %v686_v63 = vadd.f32 %v1406_v59, %v685_v55 }
 0x115   : > { %790 = vst [vmem:[%s1423_s22 + $0x70] sm:$0xff] %v1171_v60 }
 0x116   : > { %v1173_v0 = vpop.eup %1172  ;;  %v687_v1 = vadd.f32 %v686_v63, %v1415_v13  ;;  %v723_v2 = vadd.f32 %v722_v62, %v708_v61  ;;  %v712_v13 = vmul.f32 %v1418_v19, %v1418_v19 }
 0x117   : > { %v1175_v3 = vpop.eup %1174  ;;  %783 = vst [vmem:[%s1423_s22 + $0x38] sm:$0xff] %v1173_v0 }
 0x118   : > { %v1177_v4 = vpop.eup %1176  ;;  %781 = vst [vmem:[%s1423_s22 + $0x28] sm:$0xff] %v1175_v3  ;;  %v724_v5 = vadd.f32 %v723_v2, %v709_v51  ;;  %v688_v7 = vadd.f32 %v687_v1, %v613_v27 }
 0x119   : > { %v1179_v9 = vpop.eup %1178  ;;  %788 = vst [vmem:[%s1423_s22 + $0x60] sm:$0xff] %v1177_v4 }
 0x11a   : > { %v1181_v59 = vpop.eup %1180  ;;  %791 = vst [vmem:[%s1423_s22 + $0x78] sm:$0xff] %v1179_v9  ;;  %v689_v11 = vadd.f32 %v1412_v6, %v688_v7  ;;  %v725_v12 = vadd.f32 %v724_v5, %v710_v8 }
 0x11b   : > { %789 = vst [vmem:[%s1423_s22 + $0x68] sm:$0xff] %v1181_v59 }
 0x11c   : > { %v690_v14 = vadd.f32 %v1418_v19, %v689_v11  ;;  %v726_v15 = vadd.f32 %v725_v12, %v711_v10 }
 0x11e   : > { %v691_v16 = vrot.slane %v690_v14, 4  ;;  %v727_v17 = vadd.f32 %v726_v15, %v712_v13 }
 0x120   : > { %v692_v18 = vadd.f32 %v691_v16, %v690_v14  ;;  %v728_v20 = vrot.slane %v727_v17, 4 }
 0x122   : > { %v693_v21 = vrot.slane %v692_v18, 2  ;;  %v729_v22 = vadd.f32 %v728_v20, %v727_v17 }
 0x124   : > { %v694_v23 = vadd.f32 %v693_v21, %v692_v18  ;;  %v730_v24 = vrot.slane %v729_v22, 2 }
 0x126   : > { %v695_v6 = vrot.slane %v694_v23, 1  ;;  %v731_v25 = vadd.f32 %v730_v24, %v729_v22 }
 0x128   : > { %v732_v26 = vrot.slane %v731_v25, 1  ;;  %v696_v19 = vadd.f32 %v695_v6, %v694_v23 }
 0x12a   : > { %v733_v27 = vadd.f32 %v732_v26, %v731_v25 }
 0x12c   : > { %v735_v28 = vsel %vm734_vm0, %v696_v19, %v733_v27 }
 0x12d   : > { %736 = vst [vmem:[%s303_s30] sm:$0x3] %v735_v28 }
 0x12e   : > { %1195 = shalt.err (!%p1192_p5)
}
 0x12f   : > { %s1196_s13 = scalar_lea.hbm %s1469_s8, 32  ;;  %s1200_s22 = scalar_lea.hbm %s1513_s4, 128 }
 0x130   : > { %p1197_p6 = scmp.ne.s32.totalorder %s1469_s8, %s1196_s13  ;;  %p1201_p10 = scmp.lt.s32.totalorder %s1469_s8, %s1513_s4 }
 0x131   : > { %p1202_p11 = scmp.lt.s32.totalorder %s1200_s22, %s1196_s13 }
 0x132   : > { %p1198_p7 = pnand %p1197_p6, %p1327_p4 }
 0x133   : > { %p1203_p12 = por %p1202_p11, %p1201_p10 }
 0x134   : > { %p1199_p9 = pneg %p1198_p7 }
 0x136   : > { %p1204_p13 = pnand %p1203_p12, %p1199_p9 }
 0x138   : > { %1207 = shalt.err (!%p1204_p13)
}
 0x139   : > { %1086 = dma.vmem_to_hbm [thread:$0]  (%p1327_p4), %s825_s5, 32, %s1469_s8, %s805_s9  }
 0x13a PF: > { %p1092_p0 = scmp.ge.s32.totalorder %s1258_s20, 2  ;;  %s851_s29 = sand.u32 1, %s1238_s15  }
 0x13b   : > { %s852_s30 = scalar_lea.sflag [#allocation4], %s851_s29 }
 0x13c   : > { %p1089_p1 = pnand %p1092_p0, %p1334_p8 }
 0x13e   : > { %p1090_p2 = pneg %p1089_p1 }
 0x140   : > { %1233 = dma.done.wait (%p1090_p2), %s852_s30, 32  }
 0x141   : > { %1235 = vsyncadd (%p1090_p2), %s852_s30, 4294967264  ;;  %s18_s20 = sadd.s32 1, %s1258_s20   ;;  %s1516_s15 = smov %s1242_s16 }
 0x142   : > { %p15_p3 = scmp.ge.s32.totalorder %s18_s20, 6   ;;  %s1517_s16 = smov %s1246_s17 }
 0x143   : > { %s1518_s17 = smov %s1340_s28  ;;  %s1519_s18 = smov %s1254_s19 }
 0x144   : > { %s1520_s19 = smov %s1522_s23  ;;  %17 = sbr.rel (!%p15_p3) target bundleno = 4 (0x4), region = 93 }
 0x149   :  { %857 = vsyncpa [#allocation4], 1 }
 0x14a   :  { %859 = vsyncpa [#allocation4 + $0x1], 1 }

</bundles_post_ra>
